<compile_context>
chip_gen: v5e
topology: v5e:2x2
jax: 0.10.0
libtpu: 0.0.40
codegen_flags: <defaults>
</compile_context>

<pallas_src>
import jax
import jax.numpy as jnp
import numpy as np
from jax.experimental import pallas as pl
from jax.experimental.pallas import tpu as pltpu

K = 9            # conv1 kernel size
PAD = 4          # conv1 padding
CIN = 6          # 2 frames * 3 channels
KCIN = K * CIN   # 54: (ky, cin) folded into the channel axis by the wrapper
KTOT = K * KCIN  # 486: full conv1 contraction (kx folded in-kernel)
CMID = 64
COUT = 3


def tof_resblock_kernel(x_ref, w1_ref, b1_ref, w2_ref, b2_ref, w3_ref, b3_ref,
                        avg_ref, o_ref):
    # x_ref  : (1, TH, Wp, 54) bf16   ky-unfolded, W-padded input rows (this tile)
    # w1_ref : (64, 486) bf16         conv1 weights, [cout, kx*54 + ky*6 + cin]
    # b1_ref : (64, 1)   f32
    # w2_ref : (64, 64)  bf16         conv2 weights, transposed (cout, cin)
    # b2_ref : (64, 1)   f32
    # w3_ref : (3, 64)   bf16         conv3 weights, transposed (cout, cin)
    # b3_ref : (3, 1)    f32
    # avg_ref: (1, 3, TH*W) f32       residual (frame average), channel-major
    # o_ref  : (1, 3, TH*W) f32       output, channel-major (lane-dense store)
    th = x_ref.shape[1]
    wp = x_ref.shape[2]
    w = wp - 2 * PAD
    p = th * w

    # ---- Conv2d(6, 64, k=9, p=4) as ONE MXU contraction of depth 486 ---------
    # In-VMEM kx unfold: 9 shifted windows concatenated on the channel axis.
    patch = jnp.concatenate(
        [x_ref[0, :, kx:kx + w, :] for kx in range(K)], axis=-1)   # (TH, W, 486)
    patch = patch.reshape(p, KTOT)                                  # (P, 486) bf16

    # Channel-major q.k^T-style contraction: (64,486) x (P,486)^T -> (64, P).
    h1 = jax.lax.dot_general(
        w1_ref[...], patch,
        dimension_numbers=(((1,), (1,)), ((), ())),
        preferred_element_type=jnp.float32)
    h1 = jnp.maximum(h1 + b1_ref[...], 0.0)                         # (64, P) f32

    # ---- Conv2d(64, 64, k=1) + ReLU (channel-major, lane-dense) --------------
    h2 = jnp.dot(w2_ref[...], h1.astype(jnp.bfloat16),
                 preferred_element_type=jnp.float32)
    h2 = jnp.maximum(h2 + b2_ref[...], 0.0)                         # (64, P) f32

    # ---- Conv2d(64, 3, k=1) + bias + residual + lane-dense store -------------
    res = jnp.dot(w3_ref[...], h2.astype(jnp.bfloat16),
                  preferred_element_type=jnp.float32) + b3_ref[...]  # (3, P) f32
    o_ref[0] = (res + avg_ref[0]).astype(o_ref.dtype)


def _vmem_budget():
    """Generation-aware (VMEM limit, pixel budget).

    Per-pixel VMEM cost (bf16 x54 tile lane-padded 54->128 and double-buffered,
    (P,486->512) bf16 patch, two (64,P) f32 intermediates, out/avg f32 blocks)
    is ~2.4 KB/px; keep the working set around half of the scoped limit.
    """
    try:
        cap = int(pltpu.get_tpu_info().vmem_capacity_bytes)
    except Exception:
        cap = 64 * 1024 * 1024
    vmem_limit = min((cap * 3) // 4, 96 * 1024 * 1024)   # 96 MiB v5e/v6e, 48 MiB v7x
    per_px = 2432
    budget_pixels = max(1024, min((vmem_limit // 2) // per_px, 32 * 1024))
    return vmem_limit, budget_pixels


def _pick_tile_rows(b, h, w, budget_pixels):
    """Largest row-tile TH such that TH divides h, the flattened pixel count is
    a multiple of 128 lanes (lane-dense out/avg blocks), the tile fits the VMEM
    pixel budget, and (when possible) the total grid has an even number (>= 2)
    of steps so both v7x TensorCores are used."""
    dense = [th for th in range(1, h + 1)
             if h % th == 0 and (th * w) % 128 == 0]
    if not dense:
        # Fall back to one full-image tile (block == full dims is always legal;
        # stores become lane-masked).
        return h
    fit = [th for th in dense if th * w <= budget_pixels]
    pool = fit if fit else [min(dense)]
    even = [th for th in pool if b * (h // th) >= 2 and (b * (h // th)) % 2 == 0]
    return max(even) if even else max(pool)


def tof_resblock(frames, params):
    """frames: (b, 2, 3, h, w) float32. Returns (b, 3, h, w) float32."""
    w1, b1, w2, b2, w3, b3 = params
    b, two, c, h, w = frames.shape
    assert two == 2 and c == 3

    # ---- wrapper-side layout plumbing ----------------------------------------
    x = jnp.transpose(frames.reshape(b, 2 * c, h, w), (0, 2, 3, 1))    # (b,h,w,6)

    # residual = mean over the 2 frames, stored channel-major / lane-dense (f32).
    avg = 0.5 * (x[..., :COUT] + x[..., COUT:])                        # (b,h,w,3)
    avg_cm = jnp.transpose(avg, (0, 3, 1, 2)).reshape(b, COUT, h * w)  # (b,3,HW)

    # pad spatially by 4 and unfold the 9 ky taps into the channel axis (54 ch).
    xp = jnp.pad(x, ((0, 0), (PAD, PAD), (PAD, PAD), (0, 0)))          # (b,h+8,w+8,6)
    x54 = jnp.concatenate([xp[:, ky:ky + h, :, :] for ky in range(K)],
                          axis=-1).astype(jnp.bfloat16)                # (b,h,w+8,54)
    wp = w + 2 * PAD

    # weights reshaped / transposed / cast ONCE in the wrapper.
    # w1 is HWIO = (ky, kx, cin, cout) -> (cout, kx*54 + ky*6 + cin).
    w1r = jnp.transpose(w1, (3, 1, 0, 2)).reshape(CMID, KTOT).astype(jnp.bfloat16)
    w2t = jnp.transpose(w2).astype(jnp.bfloat16)                       # (64, 64)
    w3t = jnp.transpose(w3).astype(jnp.bfloat16)                       # (3, 64)
    b1c = b1.reshape(CMID, 1)
    b2c = b2.reshape(CMID, 1)
    b3c = b3.reshape(COUT, 1)

    vmem_limit, budget_pixels = _vmem_budget()
    th = _pick_tile_rows(b, h, w, budget_pixels)
    n_row_tiles = h // th
    tile_pix = th * w

    flops = 2 * b * h * w * (K * K * CIN * CMID + CMID * CMID + CMID * COUT)
    bytes_accessed = (x54.size * 2 + w1r.size * 2 + w2t.size * 2 + w3t.size * 2
                      + (b1.size + b2.size + b3.size) * 4
                      + avg_cm.size * 4 + b * COUT * h * w * 4)

    out_cm = pl.pallas_call(
        tof_resblock_kernel,
        out_shape=jax.ShapeDtypeStruct((b, COUT, h * w), jnp.float32),
        grid=(b, n_row_tiles),
        in_specs=[
            pl.BlockSpec((1, th, wp, KCIN), lambda bi, hi: (bi, hi, 0, 0)),
            pl.BlockSpec((CMID, KTOT), lambda bi, hi: (0, 0)),
            pl.BlockSpec((CMID, 1), lambda bi, hi: (0, 0)),
            pl.BlockSpec((CMID, CMID), lambda bi, hi: (0, 0)),
            pl.BlockSpec((CMID, 1), lambda bi, hi: (0, 0)),
            pl.BlockSpec((COUT, CMID), lambda bi, hi: (0, 0)),
            pl.BlockSpec((COUT, 1), lambda bi, hi: (0, 0)),
            pl.BlockSpec((1, COUT, tile_pix), lambda bi, hi: (bi, 0, hi)),
        ],
        out_specs=pl.BlockSpec((1, COUT, tile_pix), lambda bi, hi: (bi, 0, hi)),
        compiler_params=pltpu.CompilerParams(
            dimension_semantics=("parallel", "parallel"),
            vmem_limit_bytes=vmem_limit),
        cost_estimate=pl.CostEstimate(flops=flops, transcendentals=0,
                                      bytes_accessed=bytes_accessed),
    )(x54, w1r, b1c, w2t, b2c, w3t, b3c, avg_cm)

    return out_cm.reshape(b, COUT, h, w)


def ref_forward(frames, params):
    """Pure-JAX reference with the same numerical policy as the kernel
    (bf16 matmul operands, f32 accumulation, f32 residual path)."""
    w1, b1, w2, b2, w3, b3 = params
    b, two, c, h, w = frames.shape
    x = jnp.transpose(frames.reshape(b, 2 * c, h, w), (0, 2, 3, 1))    # (b,h,w,6)
    avg = 0.5 * (x[..., :COUT] + x[..., COUT:])
    y = jax.lax.conv_general_dilated(
        x.astype(jnp.bfloat16), w1.astype(jnp.bfloat16),
        window_strides=(1, 1), padding=((PAD, PAD), (PAD, PAD)),
        dimension_numbers=('NHWC', 'HWIO', 'NHWC'),
        preferred_element_type=jnp.float32) + b1[0]
    y = jnp.maximum(y, 0.0)
    y = jnp.einsum('bhwc,cd->bhwd', y.astype(jnp.bfloat16),
                   w2.astype(jnp.bfloat16),
                   preferred_element_type=jnp.float32) + b2[0]
    y = jnp.maximum(y, 0.0)
    y = jnp.einsum('bhwc,cd->bhwd', y.astype(jnp.bfloat16),
                   w3.astype(jnp.bfloat16),
                   preferred_element_type=jnp.float32) + b3[0]
    out = y + avg
    return jnp.transpose(out, (0, 3, 1, 2))


def init_params(key):
    k1, k2, k3, k4, k5, k6 = jax.random.split(key, 6)
    w1 = jax.random.normal(k1, (K, K, CIN, CMID), jnp.float32) / np.sqrt(K * K * CIN)
    b1 = jax.random.normal(k2, (1, CMID), jnp.float32) * 0.01
    w2 = jax.random.normal(k3, (CMID, CMID), jnp.float32) / np.sqrt(CMID)
    b2 = jax.random.normal(k4, (1, CMID), jnp.float32) * 0.01
    w3 = jax.random.normal(k5, (CMID, COUT), jnp.float32) / np.sqrt(CMID)
    b3 = jax.random.normal(k6, (1, COUT), jnp.float32) * 0.01
    return (w1, b1, w2, b2, w3, b3)


if __name__ == "__main__":
    key = jax.random.PRNGKey(0)
    pkey, xkey = jax.random.split(key)
    params = init_params(pkey)

    # frames: (b=2, 2 frames, 3 channels, h=16, w=16)
    frames = jax.random.normal(xkey, (2, 2, 3, 16, 16), jnp.float32)

    out = jax.block_until_ready(tof_resblock(frames, params))
    ref = jax.block_until_ready(ref_forward(frames, params))

    # bf16 operands + f32 accumulation in both paths; tolerance covers the
    # bf16 re-rounding noise of intermediate activations.
    np.testing.assert_allclose(np.asarray(out), np.asarray(ref),
                               rtol=2e-2, atol=2e-2)
    print("KERNEL_OK")
</pallas_src>

<mosaic_0001>
module attributes {stable_mosaic.version = 11 : i64} {
  func.func @tof_resblock_kernel(%arg0: i32, %arg1: i32, %arg2: memref<1x16x24x54xbf16, #tpu.memory_space<vmem>>, %arg3: memref<64x486xbf16, #tpu.memory_space<vmem>>, %arg4: memref<64x1xf32, #tpu.memory_space<vmem>>, %arg5: memref<64x64xbf16, #tpu.memory_space<vmem>>, %arg6: memref<64x1xf32, #tpu.memory_space<vmem>>, %arg7: memref<3x64xbf16, #tpu.memory_space<vmem>>, %arg8: memref<3x1xf32, #tpu.memory_space<vmem>>, %arg9: memref<1x3x256xf32, #tpu.memory_space<vmem>>, %arg10: memref<1x3x256xf32, #tpu.memory_space<vmem>>) attributes {dimension_semantics = [#tpu.dimension_semantics<parallel>, #tpu.dimension_semantics<parallel>], iteration_bounds = array<i64: 2, 1>, scalar_prefetch = 0 : i64, scratch_operands = 0 : i64, tpu.core_type = #tpu.core_type<tc>, window_params = [{transform_indices = @transform_0, window_bounds = array<i64: 1, 16, 24, 54>}, {pipeline_mode = #tpu.pipeline_mode<synchronous>, transform_indices = @transform_1, window_bounds = array<i64: 64, 486>}, {pipeline_mode = #tpu.pipeline_mode<synchronous>, transform_indices = @transform_2, window_bounds = array<i64: 64, 1>}, {pipeline_mode = #tpu.pipeline_mode<synchronous>, transform_indices = @transform_3, window_bounds = array<i64: 64, 64>}, {pipeline_mode = #tpu.pipeline_mode<synchronous>, transform_indices = @transform_4, window_bounds = array<i64: 64, 1>}, {pipeline_mode = #tpu.pipeline_mode<synchronous>, transform_indices = @transform_5, window_bounds = array<i64: 3, 64>}, {pipeline_mode = #tpu.pipeline_mode<synchronous>, transform_indices = @transform_6, window_bounds = array<i64: 3, 1>}, {transform_indices = @transform_7, window_bounds = array<i64: 1, 3, 256>}, {transform_indices = @transform_8, window_bounds = array<i64: 1, 3, 256>}]} {
    %c0 = arith.constant 0 : index
    %c0_0 = arith.constant 0 : index
    %c0_1 = arith.constant 0 : index
    %c0_2 = arith.constant 0 : index
    %0 = vector.load %arg2[%c0, %c0_0, %c0_1, %c0_2] : memref<1x16x24x54xbf16, #tpu.memory_space<vmem>>, vector<1x16x16x54xbf16>
    %1 = vector.shape_cast %0 : vector<1x16x16x54xbf16> to vector<16x16x54xbf16>
    %c0_3 = arith.constant 0 : index
    %c0_4 = arith.constant 0 : index
    %c1 = arith.constant 1 : index
    %c0_5 = arith.constant 0 : index
    %2 = vector.load %arg2[%c0_3, %c0_4, %c1, %c0_5] : memref<1x16x24x54xbf16, #tpu.memory_space<vmem>>, vector<1x16x16x54xbf16>
    %3 = vector.shape_cast %2 : vector<1x16x16x54xbf16> to vector<16x16x54xbf16>
    %c0_6 = arith.constant 0 : index
    %c0_7 = arith.constant 0 : index
    %c2 = arith.constant 2 : index
    %c0_8 = arith.constant 0 : index
    %4 = vector.load %arg2[%c0_6, %c0_7, %c2, %c0_8] : memref<1x16x24x54xbf16, #tpu.memory_space<vmem>>, vector<1x16x16x54xbf16>
    %5 = vector.shape_cast %4 : vector<1x16x16x54xbf16> to vector<16x16x54xbf16>
    %c0_9 = arith.constant 0 : index
    %c0_10 = arith.constant 0 : index
    %c3 = arith.constant 3 : index
    %c0_11 = arith.constant 0 : index
    %6 = vector.load %arg2[%c0_9, %c0_10, %c3, %c0_11] : memref<1x16x24x54xbf16, #tpu.memory_space<vmem>>, vector<1x16x16x54xbf16>
    %7 = vector.shape_cast %6 : vector<1x16x16x54xbf16> to vector<16x16x54xbf16>
    %c0_12 = arith.constant 0 : index
    %c0_13 = arith.constant 0 : index
    %c4 = arith.constant 4 : index
    %c0_14 = arith.constant 0 : index
    %8 = vector.load %arg2[%c0_12, %c0_13, %c4, %c0_14] : memref<1x16x24x54xbf16, #tpu.memory_space<vmem>>, vector<1x16x16x54xbf16>
    %9 = vector.shape_cast %8 : vector<1x16x16x54xbf16> to vector<16x16x54xbf16>
    %c0_15 = arith.constant 0 : index
    %c0_16 = arith.constant 0 : index
    %c5 = arith.constant 5 : index
    %c0_17 = arith.constant 0 : index
    %10 = vector.load %arg2[%c0_15, %c0_16, %c5, %c0_17] : memref<1x16x24x54xbf16, #tpu.memory_space<vmem>>, vector<1x16x16x54xbf16>
    %11 = vector.shape_cast %10 : vector<1x16x16x54xbf16> to vector<16x16x54xbf16>
    %c0_18 = arith.constant 0 : index
    %c0_19 = arith.constant 0 : index
    %c6 = arith.constant 6 : index
    %c0_20 = arith.constant 0 : index
    %12 = vector.load %arg2[%c0_18, %c0_19, %c6, %c0_20] : memref<1x16x24x54xbf16, #tpu.memory_space<vmem>>, vector<1x16x16x54xbf16>
    %13 = vector.shape_cast %12 : vector<1x16x16x54xbf16> to vector<16x16x54xbf16>
    %c0_21 = arith.constant 0 : index
    %c0_22 = arith.constant 0 : index
    %c7 = arith.constant 7 : index
    %c0_23 = arith.constant 0 : index
    %14 = vector.load %arg2[%c0_21, %c0_22, %c7, %c0_23] : memref<1x16x24x54xbf16, #tpu.memory_space<vmem>>, vector<1x16x16x54xbf16>
    %15 = vector.shape_cast %14 : vector<1x16x16x54xbf16> to vector<16x16x54xbf16>
    %c0_24 = arith.constant 0 : index
    %c0_25 = arith.constant 0 : index
    %c8 = arith.constant 8 : index
    %c0_26 = arith.constant 0 : index
    %16 = vector.load %arg2[%c0_24, %c0_25, %c8, %c0_26] : memref<1x16x24x54xbf16, #tpu.memory_space<vmem>>, vector<1x16x16x54xbf16>
    %17 = vector.shape_cast %16 : vector<1x16x16x54xbf16> to vector<16x16x54xbf16>
    %18 = tpu.concatenate %1, %3, %5, %7, %9, %11, %13, %15, %17 in 2 : vector<16x16x54xbf16>, vector<16x16x54xbf16>, vector<16x16x54xbf16>, vector<16x16x54xbf16>, vector<16x16x54xbf16>, vector<16x16x54xbf16>, vector<16x16x54xbf16>, vector<16x16x54xbf16>, vector<16x16x54xbf16> -> vector<16x16x486xbf16>
    %19 = vector.shape_cast %18 : vector<16x16x486xbf16> to vector<256x486xbf16>
    %c0_27 = arith.constant 0 : index
    %c0_28 = arith.constant 0 : index
    %20 = vector.load %arg3[%c0_27, %c0_28] : memref<64x486xbf16, #tpu.memory_space<vmem>>, vector<64x486xbf16>
    %cst = arith.constant dense<0.000000e+00> : vector<64x256xf32>
    %21 = tpu.matmul %20, %19, %cst {dimension_numbers = #tpu.dot_dimension_numbers<[1], [1], [0], [0], [0, 0, 1, 0], [], []>} : vector<64x486xbf16>, vector<256x486xbf16>, vector<64x256xf32> -> vector<64x256xf32>
    %c0_29 = arith.constant 0 : index
    %c0_30 = arith.constant 0 : index
    %22 = vector.load %arg4[%c0_29, %c0_30] : memref<64x1xf32, #tpu.memory_space<vmem>>, vector<64x1xf32>
    %23 = vector.broadcast %22 : vector<64x1xf32> to vector<64x256xf32>
    %24 = arith.addf %21, %23 : vector<64x256xf32>
    %cst_31 = arith.constant 0.000000e+00 : f32
    %25 = vector.broadcast %cst_31 : f32 to vector<64x256xf32>
    %26 = arith.maximumf %24, %25 : vector<64x256xf32>
    %c0_32 = arith.constant 0 : index
    %c0_33 = arith.constant 0 : index
    %27 = vector.load %arg5[%c0_32, %c0_33] : memref<64x64xbf16, #tpu.memory_space<vmem>>, vector<64x64xbf16>
    %28 = arith.truncf %26 : vector<64x256xf32> to vector<64x256xbf16>
    %cst_34 = arith.constant dense<0.000000e+00> : vector<64x256xf32>
    %29 = tpu.matmul %27, %28, %cst_34 {dimension_numbers = #tpu.dot_dimension_numbers<[1], [0], [0], [1], [0, 0, 1, 1], [], []>} : vector<64x64xbf16>, vector<64x256xbf16>, vector<64x256xf32> -> vector<64x256xf32>
    %c0_35 = arith.constant 0 : index
    %c0_36 = arith.constant 0 : index
    %30 = vector.load %arg6[%c0_35, %c0_36] : memref<64x1xf32, #tpu.memory_space<vmem>>, vector<64x1xf32>
    %31 = vector.broadcast %30 : vector<64x1xf32> to vector<64x256xf32>
    %32 = arith.addf %29, %31 : vector<64x256xf32>
    %cst_37 = arith.constant 0.000000e+00 : f32
    %33 = vector.broadcast %cst_37 : f32 to vector<64x256xf32>
    %34 = arith.maximumf %32, %33 : vector<64x256xf32>
    %c0_38 = arith.constant 0 : index
    %c0_39 = arith.constant 0 : index
    %35 = vector.load %arg7[%c0_38, %c0_39] : memref<3x64xbf16, #tpu.memory_space<vmem>>, vector<3x64xbf16>
    %36 = arith.truncf %34 : vector<64x256xf32> to vector<64x256xbf16>
    %cst_40 = arith.constant dense<0.000000e+00> : vector<3x256xf32>
    %37 = tpu.matmul %35, %36, %cst_40 {dimension_numbers = #tpu.dot_dimension_numbers<[1], [0], [0], [1], [0, 0, 1, 1], [], []>} : vector<3x64xbf16>, vector<64x256xbf16>, vector<3x256xf32> -> vector<3x256xf32>
    %c0_41 = arith.constant 0 : index
    %c0_42 = arith.constant 0 : index
    %38 = vector.load %arg8[%c0_41, %c0_42] : memref<3x1xf32, #tpu.memory_space<vmem>>, vector<3x1xf32>
    %39 = vector.broadcast %38 : vector<3x1xf32> to vector<3x256xf32>
    %40 = arith.addf %37, %39 : vector<3x256xf32>
    %c0_43 = arith.constant 0 : index
    %c0_44 = arith.constant 0 : index
    %c0_45 = arith.constant 0 : index
    %41 = vector.load %arg9[%c0_43, %c0_44, %c0_45] : memref<1x3x256xf32, #tpu.memory_space<vmem>>, vector<1x3x256xf32>
    %42 = vector.shape_cast %41 : vector<1x3x256xf32> to vector<3x256xf32>
    %43 = arith.addf %40, %42 : vector<3x256xf32>
    %c0_46 = arith.constant 0 : index
    %c0_47 = arith.constant 0 : index
    %c0_48 = arith.constant 0 : index
    %44 = vector.load %arg10[%c0_46, %c0_47, %c0_48] : memref<1x3x256xf32, #tpu.memory_space<vmem>>, vector<1x3x256xf32>
    %45 = vector.shape_cast %44 : vector<1x3x256xf32> to vector<3x256xf32>
    %46 = vector.shape_cast %43 : vector<3x256xf32> to vector<1x3x256xf32>
    tpu.vector_store %arg10[%c0_46, %c0_47, %c0_48], %46 {strides = array<i32>} : memref<1x3x256xf32, #tpu.memory_space<vmem>>, vector<1x3x256xf32>,
    return
  }
  func.func @transform_0(%arg0: i32, %arg1: i32) -> (i32, i32, i32, i32) {
    %c0_i32 = arith.constant 0 : i32
    %c0_i32_0 = arith.constant 0 : i32
    %c0_i32_1 = arith.constant 0 : i32
    return %arg0, %arg1, %c0_i32, %c0_i32_0 : i32, i32, i32, i32
  }
  func.func @transform_1(%arg0: i32, %arg1: i32) -> (i32, i32) {
    %c0_i32 = arith.constant 0 : i32
    %c0_i32_0 = arith.constant 0 : i32
    %c0_i32_1 = arith.constant 0 : i32
    return %c0_i32, %c0_i32_0 : i32, i32
  }
  func.func @transform_2(%arg0: i32, %arg1: i32) -> (i32, i32) {
    %c0_i32 = arith.constant 0 : i32
    %c0_i32_0 = arith.constant 0 : i32
    %c0_i32_1 = arith.constant 0 : i32
    return %c0_i32, %c0_i32_0 : i32, i32
  }
  func.func @transform_3(%arg0: i32, %arg1: i32) -> (i32, i32) {
    %c0_i32 = arith.constant 0 : i32
    %c0_i32_0 = arith.constant 0 : i32
    %c0_i32_1 = arith.constant 0 : i32
    return %c0_i32, %c0_i32_0 : i32, i32
  }
  func.func @transform_4(%arg0: i32, %arg1: i32) -> (i32, i32) {
    %c0_i32 = arith.constant 0 : i32
    %c0_i32_0 = arith.constant 0 : i32
    %c0_i32_1 = arith.constant 0 : i32
    return %c0_i32, %c0_i32_0 : i32, i32
  }
  func.func @transform_5(%arg0: i32, %arg1: i32) -> (i32, i32) {
    %c0_i32 = arith.constant 0 : i32
    %c0_i32_0 = arith.constant 0 : i32
    %c0_i32_1 = arith.constant 0 : i32
    return %c0_i32, %c0_i32_0 : i32, i32
  }
  func.func @transform_6(%arg0: i32, %arg1: i32) -> (i32, i32) {
    %c0_i32 = arith.constant 0 : i32
    %c0_i32_0 = arith.constant 0 : i32
    %c0_i32_1 = arith.constant 0 : i32
    return %c0_i32, %c0_i32_0 : i32, i32
  }
  func.func @transform_7(%arg0: i32, %arg1: i32) -> (i32, i32, i32) {
    %c0_i32 = arith.constant 0 : i32
    %c0_i32_0 = arith.constant 0 : i32
    return %arg0, %c0_i32, %arg1 : i32, i32, i32
  }
  func.func @transform_8(%arg0: i32, %arg1: i32) -> (i32, i32, i32) {
    %c0_i32 = arith.constant 0 : i32
    %c0_i32_0 = arith.constant 0 : i32
    return %arg0, %c0_i32, %arg1 : i32, i32, i32
  }
}

</mosaic_0001>

<bundles_post_ra>
// kernel: tpu_custom_call.1
= control target key start
LH: loop header
LB: loop body
LE: loop exit
PB: predicated region body
PF: predicated region fallthrough
CT: control target
= control target key end

     0   :  { %13 = vsyncpa [#allocation3], 0  ;;  %s5529_s0 = inlined_call_operand.hbm [shape: bf16[2,16,24,54], index: 0, kind: input, shape index: {}]   ;;  %s5530_s1 = inlined_call_operand.vmem [shape: bf16[64,486], index: 1, kind: input, shape index: {}]   ;;  %s5531_s2 = inlined_call_operand.vmem [shape: f32[64,1], index: 2, kind: input, shape index: {}]   ;;  %s5532_s3 = inlined_call_operand.vmem [shape: bf16[64,64], index: 3, kind: input, shape index: {}]   ;;  %s5533_s4 = inlined_call_operand.vmem [shape: f32[64,1], index: 4, kind: input, shape index: {}]   ;;  %s5534_s5 = inlined_call_operand.vmem [shape: bf16[3,64], index: 5, kind: input, shape index: {}]   ;;  %s5535_s6 = inlined_call_operand.vmem [shape: f32[3,1], index: 6, kind: input, shape index: {}]   ;;  %s5536_s7 = inlined_call_operand.vmem [shape: f32[2,3,256], index: 7, kind: input, shape index: {}]   ;;  %s5537_s8 = inlined_call_operand.vmem [shape: f32[2,3,256], index: 8, kind: output, shape index: {}]  }
   0x1   :  { %15 = vsyncpa [#allocation3 + $0x1], 0  ;;  %s3869_s27 = smov 0   ;;  %s3871_s28 = smov 0  }
   0x2   :  { %s3873_s29 = smov 0   ;;  %s3875_s30 = smov 0  }
   0x3   :  { %s3877_s9 = smov 0   ;;  %s3879_s10 = smov 0  }
   0x4 LB: > { %s3474_s11 = sadd.s32 4294967295, %s3811_s10   ;;  %s33_s12 = sadd.s32 1, %s3807_s9  ;;  %s3811_s10 = sphi %s3879_s10, %s21_s10   ;;  %s3807_s9 = sphi %s3877_s9, %s5549_s9   ;;  %s3803_s30 = sphi %s3875_s30, %s5548_s30   ;;  %s3799_s29 = sphi %s3873_s29, %s5547_s29   ;;  %s3795_s28 = sphi %s3871_s28, %s5546_s28   ;;  %s3791_s27 = sphi %s3869_s27, %s5545_s27  }
   0x5   : > { %p35_p0 = scmp.ge.s32.totalorder %s33_s12, 2  ;;  %s42_s13 = sadd.s32 1, %s3799_s29 }
   0x6   : > { %p49_p1 = scmp.ne.s32.totalorder %s3799_s29, %s3795_s28  ;;  %p50_p2 = scmp.eq.s32.totalorder %s3811_s10, 0 }
   0x7   : > { %s5551_s12 = smov (%p35_p0, %s33_s12), 0  ;;  %p55_p4 = scmp.ne.s32.totalorder %s3795_s28, %s3791_s27 }
   0x8   : > { %p51_p3 = por %p50_p2, %p49_p1  ;;  %s37_s14 = ssub.s32 %s3807_s9, %s5551_s12 }
   0x9   : > { %p56_p5 = scmp.eq.s32.totalorder %s3474_s11, 0  ;;  %p40_p6 = scmp.eq.s32.totalorder %s37_s14, 0 }
   0xa   : > { %p3662_p8 = scmp.lt.s32.totalorder %s3811_s10, 2  ;;  %s279_s17 = sand.u32 1, %s3799_s29  }
   0xb   : > { %p3908_p7 = por %p56_p5, %p55_p4  ;;  %s3654_s18 = smul.u32 192, %s3807_s9 }
   0xc   : > { %s3914_s16 = scalar_select %p40_p6, %s3799_s29, %s42_s13  }
   0xd   : > { %s3653_s19 = smul.u32 192, %s279_s17  ;;  %s291_s22 = scalar_lea.hbm %s5529_s0, %s3654_s18 }
   0xe   : > { %p3659_p9 = pnand %p3662_p8, %p51_p3  ;;  %s292_s23 = sshll.u32 %s291_s22, 4  ;;  %s293_s23 = int_to_ptr.hbm [resolvable:$true] %s292_s23 }
   0xf   : > { %s283_s24 = scalar_lea.vmem [#allocation2], %s3653_s19  ;;  %s280_s26 = scalar_lea.sflag [#allocation3], %s279_s17 }
  0x10   : > { %s294_s25 = sshll.u32 %s283_s24, 4  ;;  %s3813_s27 = smov 64   ;;  %s295_s25 = int_to_ptr.vmem [resolvable:$true] %s294_s25 }
  0x11   : > { %s3814_s11 = smov 4   ;;  %p3479_p10 = scmp.ge.s32.totalorder %s3811_s10, 1 }
  0x12   : > { %3661 = dma.hbm_to_vmem [thread:$0]  (!%p3659_p9), %s293_s23, 3072, %s295_s25, %s280_s26, %s3813_s27, %s3813_s27, %s3814_s11  }
  0x13   : > { %p315_p11 = scmp.lt.s32.totalorder %s3811_s10, 3 }
  0x15   : > { %p316_p12 = pnand %p3479_p10, %p315_p11 }
  0x16   : > { %s321_s13 = sand.u32 (!%p316_p12), 1, %s3795_s28  }
  0x17   : > { %319 = sbr.rel (%p316_p12) target bundleno = 1030 (0x406), region = 52  ;;  %s322_s20 = scalar_lea.sflag (!%p316_p12), [#allocation3], %s321_s13 }
  0x18   : > { %s3655_s14 = smul.u32 (!%p316_p12), 192, %s321_s13 }
  0x1a   : > { %s3924_s18 = scalar_lea.vmem (!%p316_p12), [#allocation2], %s3655_s14 }
  0x1c   : > { %3786 = dma.done.wait (%p3908_p7), %s322_s20, 3072  }
  0x1d   : > { %3788 = vsyncadd (%p3908_p7), %s322_s20, 4294964224  ;;  %vm1903_vm0 = vcmask 1044480   ;;  %v409_v0 = vld [vmem:[%s3924_s18 + $0x58] sm:$0xff]   ;;  %v513_v2 = vld [vmem:[%s3924_s18 + $0x54] sm:$0x8]  ;;  %vm1421_vm1 = vcmask 1045504  }
  0x1e   : > { %v497_v1 = vld [vmem:[%s3924_s18 + $0x5c] sm:$0x7]  ;;  %v3933_v3 = vunpack.c.l.b16 %v409_v0  ;;  %v1878_v5 = vunpack.c.l.b16 %v513_v2  ;;  %v481_v7 = vld [vmem:[%s3924_s18 + $0x54] sm:$0xc]  ;;  %v2007_v8 = vunpack.c.h.b16 %v409_v0  ;;  %vm2032_vm2 = vsmask.f32 4352 }
  0x1f   : > { %v1525_v4 = vunpack.c.l.b16 %v497_v1  ;;  %v465_v6 = vld [vmem:[%s3924_s18 + $0x5c] sm:$0x3]  ;;  %v1396_v11 = vunpack.c.l.b16 %v481_v7  ;;  %v449_v12 = vld [vmem:[%s3924_s18 + $0x54] sm:$0xe]  ;;  %vm939_vm3 = vcmask 1046528   ;;  %s5538_s15 = smov 48  }
  0x20   : > { %v433_v9 = vld [vmem:[%s3924_s18 + $0x5c] sm:$0x1]  ;;  %v1043_v10 = vunpack.c.l.b16 %v465_v6  ;;  %v1894_v15 = vpack.c.b16 %v3933_v3, %v1878_v5  ;;  %v2023_v16 = vpack.c.b16 %v2007_v8, %v2007_v8  ;;  %v914_v17 = vunpack.c.l.b16 %v449_v12  ;;  %2367 = vrot.lane.b32.xlu2 %v409_v0, %s5538_s15  ;;  %s3816_s17 = smov 68   ;;  %s3817_s19 = smov 88   ;;  %v464_v45 = vld [vmem:[%s3924_s18 + $0x50] sm:$0x3] }
  0x21   : > { %v641_v13 = vunpack.c.l.b16 %v433_v9  ;;  %v1541_v14 = vpack.c.b16 %v1525_v4, %v1525_v4  ;;  %v1412_v19 = vpack.c.b16 %v3933_v3, %v1396_v11  ;;  %v3952_v49 = vld [vmem:[%s3924_s18 + $0x48] sm:$0xff]   ;;  %vm1068_vm4 = vsmask.f32 6400  ;;  %v496_v54 = vld [vmem:[%s3924_s18 + $0x50] sm:$0x7]  ;;  %s3818_s21 = smov 122  }
  0x22   : > { %v1059_v18 = vpack.c.b16 %v1043_v10, %v1043_v10  ;;  %v1925_v21 = vrot.slane %v1894_v15, 3  ;;  %v2153_v23 = vshrl.u32 %v1894_v15, 16  ;;  %v2156_v24 = vshll.u32 %v1894_v15, 16  ;;  %v480_v50 = vld [vmem:[%s3924_s18 + $0x48] sm:$0xc]  ;;  %v408_v0 = vld [vmem:[%s3924_s18 + $0x50] sm:$0xff]  }
  0x23   : > { %v3941_v20 = vpack.c.b16 %v641_v13, %v641_v13  ;;  %v1926_v22 = vrot.slane %v1541_v14, 3  ;;  %v1443_v25 = vrot.slane %v1412_v19, 2  ;;  %v2161_v27 = vshrl.u32 %v2023_v16, 16  ;;  %v512_v59 = vld [vmem:[%s3924_s18 + $0x48] sm:$0x8]  ;;  %s3819_s22 = smov 108  }
  0x24   : > { %v1444_v26 = vrot.slane %v1059_v18, 2  ;;  %v2164_v28 = vshll.u32 %v2023_v16, 16  ;;  %v2155_v30 = vrot.slane %v2153_v23, 3  ;;  %v2158_v31 = vrot.slane %v2156_v24, 4  ;;  %s3820_s23 = smov 34   ;;  %s3821_s24 = smov 14  }
  0x25   : > { %v1927_v29 = vsel %vm1903_vm0, %v1925_v21, %v1926_v22  ;;  %v930_v32 = vpack.c.b16 %v3933_v3, %v914_v17  ;;  %v2163_v34 = vrot.slane %v2161_v27, 3  ;;  %v962_v36 = vrot.slane %v3941_v20, 1  ;;  %s5540_s25 = smov 54   ;;  %p374_p13 = scmp.lt.s32.totalorder %s3803_s30, 1 }
  0x26   : > { %1966 = vrot.lane.b32.xlu1 %v1927_v29, %s3816_s17  ;;  %v1445_v33 = vsel %vm1421_vm1, %v1443_v25, %v1444_v26  ;;  %v2166_v35 = vrot.slane %v2164_v28, 4  ;;  %v2159_v37 = vor.u32 %v2158_v31, %v2155_v30  ;;  %v1197_v42 = vshrl.u32 %v1059_v18, 16 }
  0x27   : > { %1484 = vrot.lane.b32.xlu0 %v1445_v33, %s3817_s19  ;;  %v961_v38 = vrot.slane %v930_v32, 1  ;;  %v1189_v39 = vshrl.u32 %v930_v32, 16  ;;  %v1192_v40 = vshll.u32 %v930_v32, 16  ;;  %v1200_v43 = vshll.u32 %v1059_v18, 16  ;;  %v448_v33 = vld [vmem:[%s3924_s18 + $0x48] sm:$0xe] }
  0x28   : > { %v2167_v41 = vor.u32 %v2166_v35, %v2163_v34  ;;  %v1671_v44 = vshrl.u32 %v1412_v19, 16  ;;  %v1674_v48 = vshll.u32 %v1412_v19, 16  ;;  %v1199_v52 = vrot.slane %v1197_v42, 1  ;;  %v432_v19 = vld [vmem:[%s3924_s18 + $0x50] sm:$0x1]  ;;  %s5553_s30 = smov (!%p374_p13, %s3803_s30), 1 }
  0x29   : > { %v1191_v46 = vrot.slane %v1189_v39, 1  ;;  %v1194_v47 = vrot.slane %v1192_v40, 2  ;;  %v1202_v53 = vrot.slane %v1200_v43, 2  ;;  %v1679_v57 = vshrl.u32 %v1541_v14, 16 }
  0x2a   : > { %v2168_v51 = vsel %vm2032_vm2, %v2159_v37, %v2167_v41  ;;  %v1673_v55 = vrot.slane %v1671_v44, 2  ;;  %v1676_v56 = vrot.slane %v1674_v48, 3  ;;  %v1682_v58 = vshll.u32 %v1541_v14, 16  ;;  %v463_v44 = vld [vmem:[%s3924_s18 + $0x44] sm:$0x3] }
  0x2b   : > { %v963_v60 = vsel %vm939_vm3, %v961_v38, %v962_v36  ;;  %v3960_v61 = vunpack.c.h.b16 %v3952_v49  ;;  %v1042_v62 = vunpack.c.l.b16 %v464_v45  ;;  %v1395_v63 = vunpack.c.l.b16 %v480_v50  ;;  %v479_v48 = vld [vmem:[%s3924_s18 + $0x3c] sm:$0xc] }
  0x2c   : > { %v1195_v1 = vor.u32 %v1194_v47, %v1191_v46  ;;  %v1681_v2 = vrot.slane %v1679_v57, 2  ;;  %v1684_v4 = vrot.slane %v1682_v58, 3  ;;  %v1524_v5 = vunpack.c.l.b16 %v496_v54  ;;  %v3990_v47 = vld [vmem:[%s3924_s18 + $0x40] sm:$0xff]  }
  0x2d   : > { %v1203_v6 = vor.u32 %v1202_v53, %v1199_v52  ;;  %v3964_v7 = vpack.c.b16 %v1042_v62, %v1042_v62  ;;  %v1411_v8 = vpack.c.b16 %v3960_v61, %v1395_v63  ;;  %v1877_v9 = vunpack.c.l.b16 %v512_v59 }
  0x2e   : > { %2319 = vrot.lane.b32.xlu1 %v2168_v51, %s3818_s21  ;;  %v1677_v10 = vor.u32 %v1676_v56, %v1673_v55  ;;  %v1685_v11 = vor.u32 %v1684_v4, %v1681_v2  ;;  %v1540_v12 = vpack.c.b16 %v1524_v5, %v1524_v5  ;;  %v584_v13 = vunpack.c.h.b16 %v408_v0 }
  0x2f   : > { %1002 = vrot.lane.b32.xlu0 %v963_v60, %s3819_s22  ;;  %vm1550_vm5 = vsmask.f32 5376  ;;  %v1440_v14 = vrot.slane %v1411_v8, 2  ;;  %v1441_v15 = vrot.slane %v3964_v7, 2  ;;  %v1654_v16 = vshrl.u32 %v1411_v8, 16 }
  0x30   : > { %v1657_v17 = vshll.u32 %v1411_v8, 16  ;;  %v1662_v18 = vshrl.u32 %v1540_v12, 16  ;;  %v1204_v21 = vsel %vm1068_vm4, %v1195_v1, %v1203_v6  ;;  %v1893_v23 = vpack.c.b16 %v3960_v61, %v1877_v9  ;;  %v511_v1 = vld [vmem:[%s3924_s18 + $0x3c] sm:$0x8]  ;;  %v495_v8 = vld [vmem:[%s3924_s18 + $0x44] sm:$0x7] }
  0x31   : > { %v1442_v22 = vsel %vm1421_vm1, %v1440_v14, %v1441_v15  ;;  %v1665_v24 = vshll.u32 %v1540_v12, 16  ;;  %v1686_v25 = vsel %vm1550_vm5, %v1677_v10, %v1685_v11  ;;  %v1656_v26 = vrot.slane %v1654_v16, 2 }
  0x32   : > { %1482 = vrot.lane.b32.xlu2 %v1442_v22, %s3817_s19  ;;  %v3976_v27 = vpack.c.b16 %v3933_v3, %v584_v13  ;;  %v759_v28 = vshll.u32 %v3941_v20, 16  ;;  %v1659_v29 = vrot.slane %v1657_v17, 3  ;;  %v1664_v30 = vrot.slane %v1662_v18, 2 }
  0x33   : > { %v1667_v31 = vrot.slane %v1665_v24, 3  ;;  %v640_v32 = vunpack.c.l.b16 %v432_v19  ;;  %v1922_v36 = vrot.slane %v1893_v23, 3  ;;  %v1923_v37 = vrot.slane %v1540_v12, 3 }
  0x34   : > { %v752_v34 = vshrl.u32 %v3976_v27, 16  ;;  %v754_v35 = vshll.u32 %v3976_v27, 16  ;;  %v761_v38 = vrot.slane %v759_v28, 1  ;;  %v742_v39 = vshll.u32 %v3952_v49, 16 }
  0x35   : > { %v3983_v3 = vpack.c.b16 %v640_v32, %v640_v32  ;;  %v913_v40 = vunpack.c.l.b16 %v448_v33  ;;  %v1660_v41 = vor.u32 %v1659_v29, %v1656_v26  ;;  %v1668_v42 = vor.u32 %v1667_v31, %v1664_v30 }
  0x36   : > { %1355 = vrot.lane.b32.xlu1 %v1204_v21, %s3820_s23  ;;  %v756_v20 = vrot.slane %v754_v35, 1  ;;  %vm666_vm6 = vsmask.f32 7424  ;;  %v2006_v43 = vunpack.c.l.b16 %v408_v0  ;;  %v740_v51 = vshrl.u32 %v3952_v49, 16 }
  0x37   : > { %1837 = vrot.lane.b32.xlu0 %v1686_v25, %s3821_s24  ;;  %v747_v46 = vshll.u32 %v3983_v3, 16  ;;  %v744_v52 = vrot.slane %v742_v39, 1  ;;  %v3995_v53 = vpack.c.b16 %v3960_v61, %v913_v40  ;;  %v1924_v54 = vsel %vm1903_vm0, %v1922_v36, %v1923_v37 }
  0x38   : > { %v757_v45 = vor.u32 %v756_v20, %v752_v34  ;;  %v2022_v50 = vpack.c.b16 %v2006_v43, %v2006_v43  ;;  %v1041_v56 = vunpack.c.l.b16 %v463_v44  ;;  %v1669_v57 = vsel %vm1550_vm5, %v1660_v41, %v1668_v42 }
  0x39   : > { %v4002_v58 = vunpack.c.l.b16 %v3990_v47  ;;  %v1394_v49 = vunpack.c.l.b16 %v479_v48  ;;  %v2136_v59 = vshrl.u32 %v1893_v23, 16  ;;  %v749_v60 = vrot.slane %v747_v46, 1  ;;  %v447_v46 = vld [vmem:[%s3924_s18 + $0x3c] sm:$0xe]  ;;  %v4035_v48 = vld [vmem:[%s3924_s18 + $0x30] sm:$0xff]  }
  0x3a   : > { %v762_v55 = vsel %vm666_vm6, %v757_v45, %v761_v38  ;;  %v1180_v62 = vshrl.u32 %v3964_v7, 16  ;;  %v1183_v63 = vshll.u32 %v3964_v7, 16  ;;  %v2139_v0 = vshll.u32 %v1893_v23, 16 }
  0x3b   : > { %873 = vrot.lane.b32.xlu2 %v762_v55, %s5540_s25  ;;  %v745_v2 = vor.u32 %v744_v52, %v740_v51  ;;  %v1172_v4 = vshrl.u32 %v3995_v53, 16  ;;  %v2138_v5 = vrot.slane %v2136_v59, 3  ;;  %v2144_v6 = vshrl.u32 %v2022_v50, 16  ;;  %v478_v55 = vld [vmem:[%s3924_s18 + $0x30] sm:$0xc] }
  0x3c   : > { %v1175_v9 = vshll.u32 %v3995_v53, 16  ;;  %v4012_v10 = vpack.c.b16 %v1041_v56, %v1041_v56  ;;  %v2141_v11 = vrot.slane %v2139_v0, 4  ;;  %v2147_v12 = vshll.u32 %v2022_v50, 16  ;;  %v404_v50 = vld [vmem:[%s3924_s18 + $0x38] sm:$0xff]  }
  0x3d   : > { %v1410_v7 = vpack.c.b16 %v4002_v58, %v1394_v49  ;;  %v2146_v13 = vrot.slane %v2144_v6, 3  ;;  %v1876_v14 = vunpack.c.l.b16 %v511_v1  ;;  %v2005_v15 = vunpack.c.h.b16 %v3990_v47 }
  0x3e   : > { %1964 = vrot.lane.b32.xlu1 %v1924_v54, %s3816_s17  ;;  %v2142_v16 = vor.u32 %v2141_v11, %v2138_v5  ;;  %v2149_v17 = vrot.slane %v2147_v12, 4  ;;  %v1523_v18 = vunpack.c.l.b16 %v495_v8  ;;  %v2343_v19 = vpack.c.b16 %v2006_v43, %v3960_v61 }
  0x3f   : > { %1835 = vrot.lane.b32.xlu0 %v1669_v57, %s3821_s24  ;;  %v4018_v21 = vpack.c.b16 %v4002_v58, %v1876_v14  ;;  %v2021_v22 = vpack.c.b16 %v2005_v15, %v2005_v15  ;;  %v750_v23 = vsel %vm666_vm6, %v745_v2, %v749_v60  ;;  %v1182_v24 = vrot.slane %v1180_v62, 1  ;;  %v494_v60 = vld [vmem:[%s3924_s18 + $0x38] sm:$0x7] }
  0x40   : > { %v1185_v25 = vrot.slane %v1183_v63, 2  ;;  %v2150_v26 = vor.u32 %v2149_v17, %v2146_v13  ;;  %v1174_v28 = vrot.slane %v1172_v4, 1  ;;  %v1177_v29 = vrot.slane %v1175_v9, 2 }
  0x41   : > { %v1437_v30 = vrot.slane %v1410_v7, 2  ;;  %v1438_v31 = vrot.slane %v4012_v10, 2  ;;  %v1539_v33 = vpack.c.b16 %v1523_v18, %v1523_v18  ;;  %v958_v61 = vrot.slane %v3995_v53, 1 }
  0x42   : > { %v2151_v32 = vsel %vm2032_vm2, %v2142_v16, %v2150_v26  ;;  %v959_v34 = vrot.slane %v3983_v3, 1  ;;  %v2119_v35 = vshrl.u32 %v4018_v21, 16  ;;  %v2122_v36 = vshll.u32 %v4018_v21, 16  ;;  %v431_v3 = vld [vmem:[%s3924_s18 + $0x44] sm:$0x1] }
  0x43   : > { %2317 = vrot.lane.b32.xlu2 %v2151_v32, %s3818_s21  ;;  %v2127_v37 = vshrl.u32 %v2021_v22, 16  ;;  %v2130_v20 = vshll.u32 %v2021_v22, 16  ;;  %v1186_v38 = vor.u32 %v1185_v25, %v1182_v24  ;;  %v1637_v39 = vshrl.u32 %v1410_v7, 16  ;;  %v510_v32 = vld [vmem:[%s3924_s18 + $0x30] sm:$0x8] }
  0x44   : > { %v1178_v40 = vor.u32 %v1177_v29, %v1174_v28  ;;  %v1640_v41 = vshll.u32 %v1410_v7, 16  ;;  %v1645_v42 = vshrl.u32 %v1539_v33, 16  ;;  %v1648_v43 = vshll.u32 %v1539_v33, 16 }
  0x45   : > { %v1439_v44 = vsel %vm1421_vm1, %v1437_v30, %v1438_v31  ;;  %v960_v45 = vsel %vm939_vm3, %v958_v61, %v959_v34  ;;  %v2121_v51 = vrot.slane %v2119_v35, 3  ;;  %v2124_v52 = vrot.slane %v2122_v36, 4  ;;  %v430_v36 = vld [vmem:[%s3924_s18 + $0x38] sm:$0x1] }
  0x46   : > { %2365 = vrot.lane.b32.xlu1 %v2343_v19, %s5538_s15  ;;  %v2129_v53 = vrot.slane %v2127_v37, 3  ;;  %v2132_v54 = vrot.slane %v2130_v20, 4  ;;  %v1639_v56 = vrot.slane %v1637_v39, 2  ;;  %v1642_v57 = vrot.slane %v1640_v41, 3  ;;  %v462_v19 = vld [vmem:[%s3924_s18 + $0x38] sm:$0x3] }
  0x47   : > { %871 = vrot.lane.b32.xlu0 %v750_v23, %s5540_s25  ;;  %v1647_v49 = vrot.slane %v1645_v42, 2  ;;  %v1650_v59 = vrot.slane %v1648_v43, 3  ;;  %v1187_v62 = vsel %vm1068_vm4, %v1178_v40, %v1186_v38  ;;  %v639_v63 = vunpack.c.l.b16 %v431_v3 }
  0x48   : > { %v912_v0 = vunpack.c.l.b16 %v447_v46  ;;  %v580_v1 = vunpack.c.h.b16 %v404_v50  ;;  %v4042_v2 = vunpack.c.h.b16 %v4035_v48  ;;  %v1393_v4 = vunpack.c.l.b16 %v478_v55 }
  0x49   : > { %v1920_v5 = vrot.slane %v1539_v33, 3  ;;  %v1522_v6 = vunpack.c.l.b16 %v494_v60  ;;  %v2125_v9 = vor.u32 %v2124_v52, %v2121_v51  ;;  %v2133_v11 = vor.u32 %v2132_v54, %v2129_v53 }
  0x4a   : > { %v4047_v8 = vpack.c.b16 %v4002_v58, %v580_v1  ;;  %v1643_v12 = vor.u32 %v1642_v57, %v1639_v56  ;;  %v1651_v7 = vor.u32 %v1650_v59, %v1647_v49  ;;  %v1919_v13 = vrot.slane %v4018_v21, 3  ;;  %v446_v49 = vld [vmem:[%s3924_s18 + $0x30] sm:$0xe] }
  0x4b   : > { %1000 = vrot.lane.b32.xlu2 %v960_v45, %s3819_s22  ;;  %v655_v14 = vpack.c.b16 %v639_v63, %v639_v63  ;;  %v928_v15 = vpack.c.b16 %v4002_v58, %v912_v0  ;;  %v4054_v17 = vpack.c.b16 %v4042_v2, %v1393_v4  ;;  %v4056_v18 = vpack.c.b16 %v1522_v6, %v1522_v6 }
  0x4c   : > { %v730_v16 = vshll.u32 %v4047_v8, 16  ;;  %v728_v22 = vshrl.u32 %v4047_v8, 16  ;;  %v2134_v25 = vsel %vm2032_vm2, %v2125_v9, %v2133_v11  ;;  %v1652_v21 = vsel %vm1550_vm5, %v1643_v12, %v1651_v7 }
  0x4d   : > { %v735_v24 = vshll.u32 %v655_v14, 16  ;;  %v1921_v58 = vsel %vm1903_vm0, %v1919_v13, %v1920_v5  ;;  %v955_v26 = vrot.slane %v928_v15, 1  ;;  %v956_v28 = vrot.slane %v655_v14, 1 }
  0x4e   : > { %1480 = vrot.lane.b32.xlu1 %v1439_v44, %s3817_s19  ;;  %v732_v23 = vrot.slane %v730_v16, 1  ;;  %v1620_v29 = vshrl.u32 %v4054_v17, 16  ;;  %v1623_v30 = vshll.u32 %v4054_v17, 16  ;;  %v1040_v31 = vunpack.c.l.b16 %v462_v19 }
  0x4f   : > { %1353 = vrot.lane.b32.xlu0 %v1187_v62, %s3820_s23  ;;  %v1628_v33 = vshrl.u32 %v4056_v18, 16  ;;  %v1631_v61 = vshll.u32 %v4056_v18, 16  ;;  %v737_v35 = vrot.slane %v735_v24, 1  ;;  %v1155_v37 = vshrl.u32 %v928_v15, 16 }
  0x50   : > { %v733_v34 = vor.u32 %v732_v23, %v728_v22  ;;  %v1158_v20 = vshll.u32 %v928_v15, 16  ;;  %v1163_v38 = vshrl.u32 %v4012_v10, 16  ;;  %v957_v39 = vsel %vm939_vm3, %v955_v26, %v956_v28  ;;  %v477_v26 = vld [vmem:[%s3924_s18 + $0x24] sm:$0xc] }
  0x51   : > { %v1875_v40 = vunpack.c.l.b16 %v510_v32  ;;  %v4074_v3 = vunpack.c.l.b16 %v404_v50  ;;  %v1622_v41 = vrot.slane %v1620_v29, 2  ;;  %v1056_v42 = vpack.c.b16 %v1040_v31, %v1040_v31 }
  0x52   : > { %v638_v43 = vunpack.c.l.b16 %v430_v36  ;;  %v1166_v44 = vshll.u32 %v4012_v10, 16  ;;  %v1625_v45 = vrot.slane %v1623_v30, 3  ;;  %v1630_v46 = vrot.slane %v1628_v33, 2 }
  0x53   : > { %1833 = vrot.lane.b32.xlu2 %v1652_v21, %s3821_s24  ;;  %v1633_v51 = vrot.slane %v1631_v61, 3  ;;  %v738_v52 = vsel %vm666_vm6, %v733_v34, %v737_v35  ;;  %v1157_v53 = vrot.slane %v1155_v37, 1  ;;  %v1160_v54 = vrot.slane %v1158_v20, 2 }
  0x54   : > { %v1165_v55 = vrot.slane %v1163_v38, 1  ;;  %v1168_v56 = vrot.slane %v1166_v44, 2  ;;  %v1891_v57 = vpack.c.b16 %v4042_v2, %v1875_v40  ;;  %v2020_v50 = vpack.c.b16 %v4074_v3, %v4074_v3  ;;  %v509_v40 = vld [vmem:[%s3924_s18 + $0x24] sm:$0x8] }
  0x55   : > { %v4082_v59 = vpack.c.b16 %v638_v43, %v638_v43  ;;  %v1626_v10 = vor.u32 %v1625_v45, %v1622_v41  ;;  %v1434_v60 = vrot.slane %v4054_v17, 2  ;;  %v1435_v62 = vrot.slane %v1056_v42, 2 }
  0x56   : > { %2315 = vrot.lane.b32.xlu1 %v2134_v25, %s3818_s21  ;;  %v718_v63 = vshll.u32 %v4035_v48, 16  ;;  %v1634_v0 = vor.u32 %v1633_v51, %v1630_v46  ;;  %v1161_v1 = vor.u32 %v1160_v54, %v1157_v53  ;;  %v1169_v4 = vor.u32 %v1168_v56, %v1165_v55  ;;  %v493_v25 = vld [vmem:[%s3924_s18 + $0x2c] sm:$0x7]  ;;  %v4114_v51 = vld [vmem:[%s3924_s18 + $0x20] sm:$0xff]  }
  0x57   : > { %1962 = vrot.lane.b32.xlu0 %v1921_v58, %s3816_s17  ;;  %v911_v5 = vunpack.c.l.b16 %v446_v49  ;;  %v2102_v6 = vshrl.u32 %v1891_v57, 16  ;;  %v2105_v9 = vshll.u32 %v1891_v57, 16  ;;  %v2110_v11 = vshrl.u32 %v2020_v50, 16  ;;  %v4098_v58 = vld [vmem:[%s3924_s18 + $0x28] sm:$0xff]  }
  0x58   : > { %v2113_v12 = vshll.u32 %v2020_v50, 16  ;;  %v723_v7 = vshll.u32 %v4082_v59, 16  ;;  %v716_v13 = vshrl.u32 %v4035_v48, 16  ;;  %v720_v14 = vrot.slane %v718_v63, 1  ;;  %v429_v49 = vld [vmem:[%s3924_s18 + $0x2c] sm:$0x1] }
  0x59   : > { %v1635_v15 = vsel %vm1550_vm5, %v1626_v10, %v1634_v0  ;;  %v1170_v16 = vsel %vm1068_vm4, %v1161_v1, %v1169_v4  ;;  %v927_v17 = vpack.c.b16 %v4042_v2, %v911_v5  ;;  %v2104_v19 = vrot.slane %v2102_v6, 3 }
  0x5a   : > { %v2107_v22 = vrot.slane %v2105_v9, 4  ;;  %v2112_v23 = vrot.slane %v2110_v11, 3  ;;  %v2115_v24 = vrot.slane %v2113_v12, 4  ;;  %v725_v21 = vrot.slane %v723_v7, 1  ;;  %v445_v7 = vld [vmem:[%s3924_s18 + $0x24] sm:$0xe] }
  0x5b   : > { %869 = vrot.lane.b32.xlu2 %v738_v52, %s5540_s25  ;;  %v721_v48 = vor.u32 %v720_v14, %v716_v13  ;;  %v1146_v28 = vshrl.u32 %v1056_v42, 16  ;;  %v1149_v29 = vshll.u32 %v1056_v42, 16  ;;  %v1916_v30 = vrot.slane %v1891_v57, 3  ;;  %v461_v52 = vld [vmem:[%s3924_s18 + $0x2c] sm:$0x3] }
  0x5c   : > { %v1138_v31 = vshrl.u32 %v927_v17, 16  ;;  %v1141_v32 = vshll.u32 %v927_v17, 16  ;;  %v1917_v33 = vrot.slane %v4056_v18, 3  ;;  %v1521_v61 = vunpack.c.l.b16 %v493_v25 }
  0x5d   : > { %v2108_v34 = vor.u32 %v2107_v22, %v2104_v19  ;;  %v2116_v35 = vor.u32 %v2115_v24, %v2112_v23  ;;  %v4106_v36 = vunpack.c.l.b16 %v4098_v58  ;;  %v1392_v37 = vunpack.c.l.b16 %v477_v26  ;;  %v4139_v23 = vld [vmem:[%s3924_s18 + $0x18] sm:$0xff]  }
  0x5e   : > { %998 = vrot.lane.b32.xlu1 %v957_v39, %s3819_s22  ;;  %v726_v20 = vsel %vm666_vm6, %v721_v48, %v725_v21  ;;  %v1148_v38 = vrot.slane %v1146_v28, 1  ;;  %v1151_v39 = vrot.slane %v1149_v29, 2  ;;  %v1140_v41 = vrot.slane %v1138_v31, 1 }
  0x5f   : > { %2363 = vrot.lane.b32.xlu0 %v3990_v47, %s5538_s15  ;;  %v1436_v47 = vsel %vm1421_vm1, %v1434_v60, %v1435_v62  ;;  %v1143_v42 = vrot.slane %v1141_v32, 2  ;;  %v1918_v43 = vsel %vm1903_vm0, %v1916_v30, %v1917_v33  ;;  %v1537_v18 = vpack.c.b16 %v1521_v61, %v1521_v61  ;;  %v460_v32 = vld [vmem:[%s3924_s18 + $0x20] sm:$0x3]  ;;  %v476_v33 = vld [vmem:[%s3924_s18 + $0x18] sm:$0xc] }
  0x60   : > { %v2117_v44 = vsel %vm2032_vm2, %v2108_v34, %v2116_v35  ;;  %v1408_v45 = vpack.c.b16 %v4106_v36, %v1392_v37  ;;  %v1874_v46 = vunpack.c.l.b16 %v509_v40  ;;  %v952_v53 = vrot.slane %v927_v17, 1 }
  0x61   : > { %v953_v54 = vrot.slane %v4082_v59, 1  ;;  %v1144_v55 = vor.u32 %v1143_v42, %v1140_v41  ;;  %v1152_v56 = vor.u32 %v1151_v39, %v1148_v38  ;;  %v1611_v57 = vshrl.u32 %v1537_v18, 16 }
  0x62   : > { %v1614_v50 = vshll.u32 %v1537_v18, 16  ;;  %v1603_v10 = vshrl.u32 %v1408_v45, 16  ;;  %v1606_v60 = vshll.u32 %v1408_v45, 16  ;;  %v576_v62 = vunpack.c.h.b16 %v4114_v51 }
  0x63   : > { %1351 = vrot.lane.b32.xlu2 %v1170_v16, %s3820_s23  ;;  %v1039_v63 = vunpack.c.l.b16 %v461_v52  ;;  %v1890_v0 = vpack.c.b16 %v4106_v36, %v1874_v46  ;;  %v2003_v1 = vunpack.c.h.b16 %v4098_v58  ;;  %v954_v59 = vsel %vm939_vm3, %v952_v53, %v953_v54 }
  0x64   : > { %v2341_v4 = vpack.c.b16 %v4074_v3, %v4042_v2  ;;  %v637_v5 = vunpack.c.l.b16 %v429_v49  ;;  %v1153_v6 = vsel %vm1068_vm4, %v1144_v55, %v1152_v56  ;;  %v1613_v9 = vrot.slane %v1611_v57, 2 }
  0x65   : > { %v1616_v11 = vrot.slane %v1614_v50, 3  ;;  %v2019_v12 = vpack.c.b16 %v2003_v1, %v2003_v1  ;;  %v1605_v13 = vrot.slane %v1603_v10, 2  ;;  %v1608_v14 = vrot.slane %v1606_v60, 3 }
  0x66   : > { %1831 = vrot.lane.b32.xlu1 %v1635_v15, %s3821_s24  ;;  %v4131_v15 = vpack.c.b16 %v4106_v36, %v576_v62  ;;  %v1913_v16 = vrot.slane %v1890_v0, 3  ;;  %v1914_v17 = vrot.slane %v1537_v18, 3  ;;  %v4135_v2 = vpack.c.b16 %v637_v5, %v637_v5 }
  0x67   : > { %1478 = vrot.lane.b32.xlu0 %v1436_v47, %s3817_s19  ;;  %v1055_v47 = vpack.c.b16 %v1039_v63, %v1039_v63  ;;  %v1431_v3 = vrot.slane %v1408_v45, 2  ;;  %v910_v22 = vunpack.c.l.b16 %v445_v7  ;;  %v2085_v24 = vshrl.u32 %v1890_v0, 16  ;;  %v492_v45 = vld [vmem:[%s3924_s18 + $0x20] sm:$0x7] }
  0x68   : > { %v2088_v25 = vshll.u32 %v1890_v0, 16  ;;  %v2093_v21 = vshrl.u32 %v2019_v12, 16  ;;  %v2096_v26 = vshll.u32 %v2019_v12, 16  ;;  %v1609_v48 = vor.u32 %v1608_v14, %v1605_v13 }
  0x69   : > { %v1432_v19 = vrot.slane %v1055_v47, 2  ;;  %v1617_v28 = vor.u32 %v1616_v11, %v1613_v9  ;;  %v706_v29 = vshll.u32 %v4131_v15, 16  ;;  %v1915_v30 = vsel %vm1903_vm0, %v1913_v16, %v1914_v17 }
  0x6a   : > { %v704_v31 = vshrl.u32 %v4131_v15, 16  ;;  %v711_v61 = vshll.u32 %v4135_v2, 16  ;;  %v4149_v35 = vpack.c.b16 %v4106_v36, %v910_v22  ;;  %v4152_v37 = vunpack.c.h.b16 %v4139_v23  ;;  %v444_v22 = vld [vmem:[%s3924_s18 + $0x18] sm:$0xe] }
  0x6b   : > { %1960 = vrot.lane.b32.xlu2 %v1918_v43, %s3816_s17  ;;  %v1433_v34 = vsel %vm1421_vm1, %v1431_v3, %v1432_v19  ;;  %v2087_v38 = vrot.slane %v2085_v24, 3  ;;  %v2090_v39 = vrot.slane %v2088_v25, 4  ;;  %v2095_v40 = vrot.slane %v2093_v21, 3  ;;  %v428_v19 = vld [vmem:[%s3924_s18 + $0x20] sm:$0x1] }
  0x6c   : > { %v2098_v41 = vrot.slane %v2096_v26, 4  ;;  %v1618_v42 = vsel %vm1550_vm5, %v1609_v48, %v1617_v28  ;;  %v708_v43 = vrot.slane %v706_v29, 1  ;;  %v1038_v18 = vunpack.c.l.b16 %v460_v32  ;;  %v4190_v32 = vld [vmem:[%s3924_s18 + $0x10] sm:$0xff]  }
  0x6d   : > { %v4158_v52 = vunpack.c.l.b16 %v4114_v51  ;;  %v713_v36 = vrot.slane %v711_v61, 1  ;;  %v1129_v53 = vshrl.u32 %v1055_v47, 16  ;;  %v1132_v54 = vshll.u32 %v1055_v47, 16 }
  0x6e   : > { %867 = vrot.lane.b32.xlu1 %v726_v20, %s5540_s25  ;;  %v508_v20 = vld [vmem:[%s3924_s18 + $0x18] sm:$0x8]  ;;  %v1121_v55 = vshrl.u32 %v4149_v35, 16  ;;  %v1124_v56 = vshll.u32 %v4149_v35, 16  ;;  %v2091_v57 = vor.u32 %v2090_v39, %v2087_v38  ;;  %v2099_v50 = vor.u32 %v2098_v41, %v2095_v40 }
  0x6f   : > { %2313 = vrot.lane.b32.xlu0 %v2117_v44, %s3818_s21  ;;  %v1391_v44 = vunpack.c.l.b16 %v476_v33  ;;  %v1873_v46 = vunpack.c.l.b16 %v508_v20  ;;  %v709_v49 = vor.u32 %v708_v43, %v704_v31  ;;  %v4165_v10 = vpack.c.b16 %v1038_v18, %v1038_v18  ;;  %v475_v33 = vld [vmem:[%s3924_s18 + $0xc] sm:$0xc] }
  0x70   : > { %v1520_v60 = vunpack.c.l.b16 %v492_v45  ;;  %v2018_v63 = vpack.c.b16 %v4158_v52, %v4158_v52  ;;  %v1131_v0 = vrot.slane %v1129_v53, 1  ;;  %v1123_v1 = vrot.slane %v1121_v55, 1 }
  0x71   : > { %v1407_v51 = vpack.c.b16 %v4152_v37, %v1391_v44  ;;  %v4169_v62 = vpack.c.b16 %v4152_v37, %v1873_v46  ;;  %v2100_v5 = vsel %vm2032_vm2, %v2091_v57, %v2099_v50  ;;  %v1429_v11 = vrot.slane %v4165_v10, 2 }
  0x72   : > { %v1536_v7 = vpack.c.b16 %v1520_v60, %v1520_v60  ;;  %v2076_v47 = vshrl.u32 %v2018_v63, 16  ;;  %v2079_v16 = vshll.u32 %v2018_v63, 16  ;;  %v949_v17 = vrot.slane %v4149_v35, 1 }
  0x73   : > { %2361 = vrot.lane.b32.xlu2 %v2341_v4, %s5538_s15  ;;  %v1134_v4 = vrot.slane %v1132_v54, 2  ;;  %v1428_v9 = vrot.slane %v1407_v51, 2  ;;  %v2068_v13 = vshrl.u32 %v4169_v62, 16  ;;  %v2071_v14 = vshll.u32 %v4169_v62, 16 }
  0x74   : > { %v950_v3 = vrot.slane %v4135_v2, 1  ;;  %v1586_v24 = vshrl.u32 %v1407_v51, 16  ;;  %v1589_v25 = vshll.u32 %v1407_v51, 16  ;;  %v1594_v21 = vshrl.u32 %v1536_v7, 16  ;;  %v491_v2 = vld [vmem:[%s3924_s18 + $0x14] sm:$0x7] }
  0x75   : > { %v1597_v26 = vshll.u32 %v1536_v7, 16  ;;  %v1135_v28 = vor.u32 %v1134_v4, %v1131_v0  ;;  %v2070_v29 = vrot.slane %v2068_v13, 3  ;;  %v909_v31 = vunpack.c.l.b16 %v444_v22  ;;  %v459_v0 = vld [vmem:[%s3924_s18 + $0x14] sm:$0x3] }
  0x76   : > { %1349 = vrot.lane.b32.xlu1 %v1153_v6, %s3820_s23  ;;  %v714_v6 = vsel %vm666_vm6, %v709_v49, %v713_v36  ;;  %v2073_v61 = vrot.slane %v2071_v14, 4  ;;  %v2081_v35 = vrot.slane %v2079_v16, 4  ;;  %v951_v20 = vsel %vm939_vm3, %v949_v17, %v950_v3 }
  0x77   : > { %996 = vrot.lane.b32.xlu0 %v954_v59, %s3819_s22  ;;  %v1126_v59 = vrot.slane %v1124_v56, 2  ;;  %v1588_v38 = vrot.slane %v1586_v24, 2  ;;  %v1591_v39 = vrot.slane %v1589_v25, 3  ;;  %v1596_v40 = vrot.slane %v1594_v21, 2 }
  0x78   : > { %v1599_v41 = vrot.slane %v1597_v26, 3  ;;  %v4197_v43 = vunpack.c.l.b16 %v4190_v32  ;;  %v1390_v18 = vunpack.c.l.b16 %v475_v33  ;;  %v1519_v44 = vunpack.c.l.b16 %v491_v2  ;;  %v427_v26 = vld [vmem:[%s3924_s18 + $0x14] sm:$0x1] }
  0x79   : > { %v1127_v48 = vor.u32 %v1126_v59, %v1123_v1  ;;  %v925_v46 = vpack.c.b16 %v4152_v37, %v909_v31  ;;  %v1910_v36 = vrot.slane %v4169_v62, 3  ;;  %v1911_v53 = vrot.slane %v1536_v7, 3  ;;  %v4219_v7 = vld [vmem:[%s3924_s18 + $0x8] sm:$0xff]  }
  0x7a   : > { %v4176_v12 = vpop.permute.xlu2 %2367  ;;  %v694_v55 = vshll.u32 %v4139_v23, 16  ;;  %v2074_v56 = vor.u32 %v2073_v61, %v2070_v29  ;;  %v1592_v50 = vor.u32 %v1591_v39, %v1588_v38  ;;  %v1600_v49 = vor.u32 %v1599_v41, %v1596_v40 }
  0x7b   : > { %1476 = vrot.lane.b32.xlu2 %v1433_v34, %s3817_s19  ;;  %v2078_v34 = vrot.slane %v2076_v47, 3  ;;  %v4208_v51 = vpack.c.b16 %v4197_v43, %v1390_v18  ;;  %v4210_v60 = vpack.c.b16 %v1519_v44, %v1519_v44  ;;  %v946_v62 = vrot.slane %v925_v46, 1 }
  0x7c   : > { %v692_v1 = vshrl.u32 %v4139_v23, 16  ;;  %v696_v59 = vrot.slane %v694_v55, 1  ;;  %v2339_v16 = vpack.c.b16 %v4158_v52, %v4152_v37  ;;  %v1037_v3 = vunpack.c.l.b16 %v459_v0 }
  0x7d   : > { %v2082_v57 = vor.u32 %v2081_v35, %v2078_v34  ;;  %v1569_v13 = vshrl.u32 %v4208_v51, 16  ;;  %v1572_v14 = vshll.u32 %v4208_v51, 16  ;;  %v1577_v47 = vshrl.u32 %v4210_v60, 16 }
  0x7e   : > { %1958 = vrot.lane.b32.xlu1 %v1915_v30, %s3816_s17  ;;  %v636_v30 = vunpack.c.l.b16 %v428_v19  ;;  %v1580_v23 = vshll.u32 %v4210_v60, 16  ;;  %v697_v22 = vor.u32 %v696_v59, %v692_v1  ;;  %v2001_v25 = vunpack.c.h.b16 %v4190_v32 }
  0x7f   : > { %1829 = vrot.lane.b32.xlu0 %v1618_v42, %s3821_s24  ;;  %v1136_v42 = vsel %vm1068_vm4, %v1127_v48, %v1135_v28  ;;  %v572_v21 = vunpack.c.h.b16 %v4219_v7  ;;  %v1104_v48 = vshrl.u32 %v925_v46, 16  ;;  %v1107_v37 = vshll.u32 %v925_v46, 16 }
  0x80   : > { %v652_v45 = vpack.c.b16 %v636_v30, %v636_v30  ;;  %v1112_v52 = vshrl.u32 %v4165_v10, 16  ;;  %v1115_v28 = vshll.u32 %v4165_v10, 16  ;;  %v1571_v30 = vrot.slane %v1569_v13, 2 }
  0x81   : > { %v1574_v31 = vrot.slane %v1572_v14, 3  ;;  %v1579_v33 = vrot.slane %v1577_v47, 2  ;;  %v1582_v2 = vrot.slane %v1580_v23, 3  ;;  %vm2385_vm7 = vcmask 441344  }
  0x82   : > { %v947_v63 = vrot.slane %v652_v45, 1  ;;  %v699_v4 = vshll.u32 %v652_v45, 16  ;;  %vm2418_vm8 = vcmask 883712   ;;  %v4240_v34 = vpack.c.b16 %v1037_v3, %v1037_v3  ;;  %v490_v3 = vld [vmem:[%s3924_s18 + $0x8] sm:$0x7] }
  0x83   : > { %2311 = vrot.lane.b32.xlu2 %v2100_v5, %s3818_s21  ;;  %v507_v5 = vld [vmem:[%s3924_s18 + $0xc] sm:$0x8]  ;;  %v2017_v10 = vpack.c.b16 %v2001_v25, %v2001_v25  ;;  %v4248_v39 = vpack.c.b16 %v4197_v43, %v572_v21  ;;  %v635_v40 = vunpack.c.l.b16 %v427_v26  ;;  %v1106_v41 = vrot.slane %v1104_v48, 1  ;;  %v474_v25 = vld [vmem:[%s3924_s18] sm:$0xc] }
  0x84   : > { %v948_v17 = vsel %vm939_vm3, %v946_v62, %v947_v63  ;;  %v1872_v19 = vunpack.c.l.b16 %v507_v5  ;;  %v701_v24 = vrot.slane %v699_v4, 1  ;;  %v1114_v18 = vrot.slane %v1112_v52, 1 }
  0x85   : > { %v1117_v44 = vrot.slane %v1115_v28, 2  ;;  %vm2664_vm9 = vcmask 392192   ;;  %v1575_v45 = vor.u32 %v1574_v31, %v1571_v30  ;;  %v1583_v46 = vor.u32 %v1582_v2, %v1579_v33  ;;  %v506_v31 = vld [vmem:[%s3924_s18] sm:$0x8] }
  0x86   : > { %2359 = vrot.lane.b32.xlu1 %v4098_v58, %s5538_s15  ;;  %v1430_v58 = vsel %vm1421_vm1, %v1428_v9, %v1429_v11  ;;  %v2083_v9 = vsel %vm2032_vm2, %v2074_v56, %v2082_v57  ;;  %v1601_v11 = vsel %vm1550_vm5, %v1592_v50, %v1600_v49  ;;  %v4243_v35 = vpack.c.b16 %v4197_v43, %v1872_v19 }
  0x87   : > { %865 = vrot.lane.b32.xlu0 %v714_v6, %s5540_s25  ;;  %v1912_v6 = vsel %vm1903_vm0, %v1910_v36, %v1911_v53  ;;  %v702_v38 = vsel %vm666_vm6, %v697_v22, %v701_v24  ;;  %v1425_v53 = vrot.slane %v4208_v51, 2  ;;  %v1426_v55 = vrot.slane %v4240_v34, 2  ;;  %v4281_v24 = vld [vmem:[%s3924_s18] sm:$0xff]  }
  0x88   : > { %v2051_v56 = vshrl.u32 %v4243_v35, 16  ;;  %v2054_v57 = vshll.u32 %v4243_v35, 16  ;;  %vm2837_vm10 = vcmask 834560   ;;  %v2059_v50 = vshrl.u32 %v2017_v10, 16 }
  0x89   : > { %v2062_v49 = vshll.u32 %v2017_v10, 16  ;;  %v4256_v62 = vpack.c.b16 %v635_v40, %v635_v40  ;;  %v682_v63 = vshll.u32 %v4248_v39, 16  ;;  %v1118_v1 = vor.u32 %v1117_v44, %v1114_v18 }
  0x8a   : > { %v1584_v4 = vsel %vm1550_vm5, %v1575_v45, %v1583_v46  ;;  %vm2467_vm11 = vcmask 277504   ;;  %v2053_v13 = vrot.slane %v2051_v56, 3  ;;  %v2056_v14 = vrot.slane %v2054_v57, 4 }
  0x8b   : > { %994 = vrot.lane.b32.xlu2 %v951_v20, %s3819_s22  ;;  %v443_v20 = vld [vmem:[%s3924_s18 + $0xc] sm:$0xe]  ;;  %v684_v19 = vrot.slane %v682_v63, 1  ;;  %v687_v22 = vshll.u32 %v4256_v62, 16  ;;  %v1095_v48 = vshrl.u32 %v4240_v34, 16  ;;  %vm2549_vm12 = vcmask 113664  }
  0x8c   : > { %v4202_v54 = vpop.permute.xlu2 %1482  ;;  %v908_v36 = vunpack.c.l.b16 %v443_v20  ;;  %vm2500_vm13 = vcmask 719872   ;;  %vm2582_vm14 = vcmask 556032   ;;  %v1518_v52 = vunpack.c.l.b16 %v490_v3 }
  0x8d   : > { %v2057_v28 = vor.u32 %v2056_v14, %v2053_v13  ;;  %v4291_v30 = vunpack.c.h.b16 %v4281_v24  ;;  %v1389_v33 = vunpack.c.l.b16 %v474_v25  ;;  %v689_v20 = vrot.slane %v687_v22, 1 }
  0x8e   : > { %1474 = vrot.lane.b32.xlu1 %v1430_v58, %s3817_s19  ;;  %vm2615_vm15 = vcmask 998400   ;;  %v4332_v22 = vunpack.c.l.b16 %v4219_v7 }
  0x8f   : > { %1347 = vrot.lane.b32.xlu0 %v1136_v42, %s3820_s23  ;;  %v1109_v42 = vrot.slane %v1107_v37, 2  ;;  %v1098_v37 = vshll.u32 %v4240_v34, 16  ;;  %v1907_v34 = vrot.slane %v4243_v35, 3  ;;  %v4306_v56 = vpack.c.b16 %v4291_v30, %v1389_v33 }
  0x91   : > { %v1110_v0 = vor.u32 %v1109_v42, %v1106_v41  ;;  %v1097_v42 = vrot.slane %v1095_v48, 1  ;;  %v1100_v18 = vrot.slane %v1098_v37, 2 }
  0x93   : > { %1827 = vrot.lane.b32.xlu2 %v1601_v11, %s3821_s24  ;;  %v1427_v11 = vsel %vm1421_vm1, %v1425_v53, %v1426_v55  ;;  %v1871_v53 = vunpack.c.l.b16 %v506_v31 }
  0x95   : > { %v874_v29 = vpop.permute.xlu2 %873 }
  0x96   : > { %2309 = vrot.lane.b32.xlu1 %v2083_v9, %s3818_s21  ;;  %v2401_v51 = vsel %vm2385_vm7, %v3976_v27, %v874_v29 }
  0x97   : > { %1956 = vrot.lane.b32.xlu0 %v1912_v6, %s3816_s17  ;;  %v4268_v6 = vpack.c.b16 %v4197_v43, %v908_v36  ;;  %v680_v43 = vshrl.u32 %v4248_v39, 16  ;;  %v1534_v36 = vpack.c.b16 %v1518_v52, %v1518_v52  ;;  %v2016_v52 = vpack.c.b16 %v4332_v22, %v4332_v22 }
  0x98   : > { %v4236_v58 = vpop.permute.xlu1 %1966 }
  0x99   : > { %v4238_v61 = vpop.permute.xlu0 %1484  ;;  %v1087_v21 = vshrl.u32 %v4268_v6, 16  ;;  %v1090_v26 = vshll.u32 %v4268_v6, 16  ;;  %v685_v2 = vor.u32 %v684_v19, %v680_v43  ;;  %v1905_v43 = vrot.slane %v1534_v36, 3 }
  0x9b   : > { %863 = vrot.lane.b32.xlu2 %v702_v38, %s5540_s25  ;;  %v1908_v38 = vrot.slane %v4210_v60, 3  ;;  %v1089_v40 = vrot.slane %v1087_v21, 1  ;;  %v1092_v41 = vrot.slane %v1090_v26, 2 }
  0x9d   : > { %v4265_v5 = vpop.permute.xlu2 %2317 }
  0x9e   : > { %992 = vrot.lane.b32.xlu1 %v948_v17, %s3819_s22  ;;  %v2064_v17 = vrot.slane %v2062_v49, 4  ;;  %v943_v49 = vrot.slane %v4268_v6, 1  ;;  %v1552_v6 = vshrl.u32 %v4306_v56, 16 }
  0x9f   : > { %2357 = vrot.lane.b32.xlu0 %v2339_v16, %s5538_s15  ;;  %v2061_v16 = vrot.slane %v2059_v50, 3  ;;  %v690_v50 = vsel %vm666_vm6, %v685_v2, %v689_v20  ;;  %v473_v20 = vld [vmem:[%s3924_s18 + $0xbc] sm:$0x3] }
  0xa0   : > { %v4262_v59 = vpop.permute.xlu1 %2319  ;;  %v1554_v21 = vrot.slane %v1552_v6, 2 }
  0xa1   : > { %v1003_v9 = vpop.permute.xlu0 %1002  ;;  %v2680_v27 = vsel %vm2664_vm9, %v4262_v59, %v4176_v12  ;;  %v1119_v12 = vsel %vm1068_vm4, %v1110_v0, %v1118_v1  ;;  %v2065_v29 = vor.u32 %v2064_v17, %v2061_v16  ;;  %v1093_v0 = vor.u32 %v1092_v41, %v1089_v40 }
  0xa2   : > { %v2441_v47 = vsel %vm2418_vm8, %v2401_v51, %v1003_v9  ;;  %v2864_v23 = vsel %vm2837_vm10, %v2680_v27, 0  ;;  %v1909_v51 = vsel %vm1903_vm0, %v1907_v34, %v1908_v38  ;;  %v1101_v1 = vor.u32 %v1100_v18, %v1097_v42  ;;  %v4353_v38 = vld [vmem:[%s3924_s18 + $0xb8] sm:$0xff]  }
  0xa3   : > { %2882 = vmatpush.bf16.xpose.msra.mxu0 %v2441_v47  ;;  %2969 = vmatpush.bf16.xpose.msra.mxu3 %v2864_v23  ;;  %v2066_v35 = vsel %vm2032_vm2, %v2057_v28, %v2065_v29  ;;  %v1560_v27 = vshrl.u32 %v1534_v36, 16  ;;  %v670_v29 = vshll.u32 %v4281_v24, 16  ;;  %v1422_v40 = vrot.slane %v4306_v56, 2 }
  0xa4   : > { %1345 = vrot.lane.b32.xlu2 %v1119_v12, %s3820_s23  ;;  %v1102_v47 = vsel %vm1068_vm4, %v1093_v0, %v1101_v1  ;;  %v442_v12 = vld [vmem:[%s3924_s18] sm:$0xe]  ;;  %v3725_v0 = vld [vmem:[%s3924_s18 + $0x48] sm:$0xff]  }
  0xa5   : > { %v4297_v44 = vpop.permute.xlu2 %1000  ;;  %v1562_v19 = vrot.slane %v1560_v27, 2  ;;  %v907_v33 = vunpack.c.l.b16 %v442_v12 }
  0xa6   : > { %1825 = vrot.lane.b32.xlu1 %v1584_v4, %s3821_s24  ;;  %v426_v4 = vld [vmem:[%s3924_s18 + $0x8] sm:$0x1] }
  0xa7   : > { %1472 = vrot.lane.b32.xlu0 %v1427_v11, %s3817_s19  ;;  %v1563_v11 = vshll.u32 %v1534_v36, 16  ;;  %v2045_v36 = vshll.u32 %v2016_v52, 16 }
  0xa8   : > { %v1356_v10 = vpop.permute.xlu1 %1355 }
  0xa9   : > { %v2483_v45 = vsel %vm2467_vm11, %v1003_v9, %v1356_v10  ;;  %v1838_v46 = vpop.permute.xlu0 %1837  ;;  %v4318_v9 = vpack.c.b16 %v4291_v30, %v1871_v53  ;;  %v1565_v26 = vrot.slane %v1563_v11, 3  ;;  %v489_v10 = vld [vmem:[%s3924_s18 + $0xb4] sm:$0xc]  ;;  %v2047_v6 = vrot.slane %v2045_v36, 4 }
  0xaa   : > { %v2565_v55 = vsel %vm2549_vm12, %v4238_v61, %v1838_v46  ;;  %v2523_v60 = vsel %vm2500_vm13, %v2483_v45, %v4238_v61  ;;  %v944_v61 = vrot.slane %v4256_v62, 1  ;;  %v1555_v62 = vshll.u32 %v4306_v56, 16 }
  0xab   : > { %2911 = vmatpush.bf16.xpose.msra.mxu1 %v2523_v60  ;;  %v2598_v57 = vsel %vm2582_vm14, %v2565_v55, %v4236_v58  ;;  %v458_v58 = vld [vmem:[%s3924_s18 + $0x8] sm:$0x3]  ;;  %v1904_v3 = vrot.slane %v4318_v9, 3  ;;  %v1566_v34 = vor.u32 %v1565_v26, %v1562_v19  ;;  %v2034_v42 = vshrl.u32 %v4318_v9, 16 }
  0xac   : > { %v2638_v63 = vsel %vm2615_vm15, %v2598_v57, %v4262_v59  ;;  %1954 = vrot.lane.b32.xlu2 %v1909_v51, %s3816_s17  ;;  %v634_v59 = vunpack.c.l.b16 %v426_v4  ;;  %v945_v14 = vsel %vm939_vm3, %v943_v49, %v944_v61  ;;  %v1036_v16 = vunpack.c.l.b16 %v458_v58  ;;  %v521_v61 = vld [vmem:[%s3924_s18 + $0xb4] sm:$0x8] }
  0xad   : > { %2940 = vmatpush.bf16.xpose.msra.mxu2 %v2638_v63  ;;  %v4328_v23 = vpop.permute.xlu2 %1833  ;;  %v1557_v37 = vrot.slane %v1555_v62, 3  ;;  %v1906_v2 = vsel %vm1903_vm0, %v1904_v3, %v1905_v43  ;;  %v2037_v45 = vshll.u32 %v4318_v9, 16  ;;  %v2042_v46 = vshrl.u32 %v2016_v52, 16  ;;  %v505_v43 = vld [vmem:[%s3924_s18 + $0xbc] sm:$0x7] }
  0xae   : > { %861 = vrot.lane.b32.xlu1 %v690_v50, %s5540_s25  ;;  %v4340_v28 = vpack.c.b16 %v634_v59, %v634_v59  ;;  %v4345_v31 = vpack.c.b16 %v1036_v16, %v1036_v16  ;;  %v672_v55 = vrot.slane %v670_v29, 1  ;;  %v4366_v56 = vpack.c.b16 %v4291_v30, %v907_v33 }
  0xaf   : > { %2307 = vrot.lane.b32.xlu0 %v2066_v35, %s3818_s21  ;;  %v1558_v18 = vor.u32 %v1557_v37, %v1554_v21  ;;  %v4371_v49 = vunpack.c.l.b16 %v4353_v38  ;;  %v1051_v51 = vunpack.c.l.b16 %v473_v20  ;;  %v1404_v63 = vunpack.c.l.b16 %v489_v10 }
  0xb0   : > { %v1965_v13 = vpop.permute.xlu1 %1964  ;;  %v1423_v41 = vrot.slane %v4345_v31, 2  ;;  %v675_v60 = vshll.u32 %v4340_v28, 16  ;;  %v2036_v9 = vrot.slane %v2034_v42, 3  ;;  %v2044_v58 = vrot.slane %v2042_v46, 3 }
  0xb1   : > { %v1836_v17 = vpop.permute.xlu0 %1835  ;;  %v1567_v11 = vsel %vm1550_vm5, %v1558_v18, %v1566_v34  ;;  %v1886_v62 = vunpack.c.l.b16 %v521_v61  ;;  %v2015_v59 = vunpack.c.h.b16 %v4353_v38  ;;  %v4388_v3 = vpack.c.b16 %v4371_v49, %v1404_v63  ;;  %v441_v61 = vld [vmem:[%s3924_s18 + $0xbc] sm:$0x1] }
  0xb2   : > { %v2563_v25 = vsel %vm2549_vm12, %v4202_v54, %v1836_v17  ;;  %v1424_v4 = vsel %vm1421_vm1, %v1422_v40, %v1423_v41  ;;  %v677_v16 = vrot.slane %v675_v60, 1  ;;  %v4385_v17 = vpack.c.b16 %v1051_v51, %v1051_v51  ;;  %v4427_v51 = vld [vmem:[%s3924_s18 + $0xb0] sm:$0xff]  }
  0xb3   : > { %v2596_v48 = vsel %vm2582_vm14, %v2563_v25, %v1965_v13  ;;  %v1070_v13 = vshrl.u32 %v4366_v56, 16  ;;  %v1078_v19 = vshrl.u32 %v4345_v31, 16  ;;  %v1081_v12 = vshll.u32 %v4345_v31, 16 }
  0xb4   : > { %v2635_v7 = vsel %vm2615_vm15, %v2596_v48, %v4265_v5  ;;  %2355 = vrot.lane.b32.xlu2 %v4190_v32, %s5538_s15  ;;  %v668_v32 = vshrl.u32 %v4281_v24, 16  ;;  %v2048_v21 = vor.u32 %v2047_v6, %v2044_v58  ;;  %v4400_v37 = vpack.c.b16 %v4371_v49, %v1886_v62 }
  0xb5   : > { %2941 = vmatpush.bf16.xpose.msra.mxu2 %v2635_v7  ;;  %v4363_v35 = vpop.permute.xlu2 %869  ;;  %v2031_v52 = vpack.c.b16 %v2015_v59, %v2015_v59  ;;  %v2337_v29 = vpack.c.b16 %v4332_v22, %v4291_v30  ;;  %v1072_v33 = vrot.slane %v1070_v13, 1  ;;  %v1533_v20 = vunpack.c.l.b16 %v505_v43  ;;  %v504_v59 = vld [vmem:[%s3924_s18 + $0xb0] sm:$0x7] }
  0xb6   : > { %1343 = vrot.lane.b32.xlu1 %v1102_v47, %s3820_s23  ;;  %v673_v47 = vor.u32 %v672_v55, %v668_v32  ;;  %v1467_v10 = vrot.slane %v4388_v3, 2  ;;  %v1468_v40 = vrot.slane %v4385_v17, 2  ;;  %v1080_v42 = vrot.slane %v1078_v19, 1  ;;  %v4417_v32 = vld [vmem:[%s3924_s18 + $0xa8] sm:$0xff]  }
  0xb7   : > { %990 = vrot.lane.b32.xlu0 %v945_v14, %s3819_s22  ;;  %v1073_v14 = vshll.u32 %v4366_v56, 16  ;;  %v1083_v18 = vrot.slane %v1081_v12, 2  ;;  %v2289_v22 = vshrl.u32 %v4400_v37, 16  ;;  %v2300_v46 = vshll.u32 %v2031_v52, 16 }
  0xb8   : > { %v2366_v53 = vpop.permute.xlu1 %2365  ;;  %v678_v34 = vsel %vm666_vm6, %v673_v47, %v677_v16  ;;  %v940_v55 = vrot.slane %v4366_v56, 1  ;;  %v941_v60 = vrot.slane %v4340_v28, 1  ;;  %v4441_v62 = vunpack.c.h.b16 %v4417_v32 }
  0xb9   : > { %v872_v57 = vpop.permute.xlu0 %871  ;;  %v2678_v50 = vsel %vm2664_vm9, %v4265_v5, %v2366_v53  ;;  %v2039_v5 = vrot.slane %v2037_v45, 4  ;;  %v2297_v45 = vshrl.u32 %v2031_v52, 16  ;;  %v4414_v53 = vpack.c.b16 %v1533_v20, %v1533_v20 }
  0xba   : > { %v2399_v24 = vsel %vm2385_vm7, %v3725_v0, %v872_v57  ;;  %v2862_v1 = vsel %vm2837_vm10, %v2678_v50, 0  ;;  %v488_v57 = vld [vmem:[%s3924_s18 + $0xa8] sm:$0xc]  ;;  %v1807_v50 = vshrl.u32 %v4388_v3, 16  ;;  %v1084_v63 = vor.u32 %v1083_v18, %v1080_v42 }
  0xbb   : > { %v2438_v27 = vsel %vm2418_vm8, %v2399_v24, %v4297_v44  ;;  %2970 = vmatpush.bf16.xpose.msra.mxu3 %v2862_v1  ;;  %v2040_v25 = vor.u32 %v2039_v5, %v2036_v9  ;;  %v1810_v0 = vshll.u32 %v4388_v3, 16  ;;  %v1815_v24 = vshrl.u32 %v4414_v53, 16 }
  0xbc   : > { %2883 = vmatpush.bf16.xpose.msra.mxu0 %v2438_v27  ;;  %1470 = vrot.lane.b32.xlu2 %v1424_v4, %s3817_s19  ;;  %v1818_v1 = vshll.u32 %v4414_v53, 16  ;;  %v2291_v4 = vrot.slane %v2289_v22, 3  ;;  %v2299_v9 = vrot.slane %v2297_v45, 3  ;;  %v2302_v27 = vrot.slane %v2300_v46, 4 }
  0xbd   : > { %v4397_v48 = vpop.permute.xlu2 %1351  ;;  %v2049_v30 = vsel %vm2032_vm2, %v2040_v25, %v2048_v21  ;;  %v1403_v13 = vunpack.c.l.b16 %v488_v57  ;;  %v649_v16 = vunpack.c.l.b16 %v441_v61  ;;  %v942_v3 = vsel %vm939_vm3, %v940_v55, %v941_v60  ;;  %v520_v60 = vld [vmem:[%s3924_s18 + $0xa8] sm:$0x8] }
  0xbe   : > { %1952 = vrot.lane.b32.xlu1 %v1906_v2, %s3816_s17  ;;  %v1075_v2 = vrot.slane %v1073_v14, 2  ;;  %v600_v14 = vunpack.c.h.b16 %v4427_v51  ;;  %v1809_v43 = vrot.slane %v1807_v50, 2  ;;  %v1812_v12 = vrot.slane %v1810_v0, 3  ;;  %v440_v0 = vld [vmem:[%s3924_s18 + $0xb0] sm:$0x1] }
  0xbf   : > { %1823 = vrot.lane.b32.xlu0 %v1567_v11, %s3821_s24  ;;  %v457_v11 = vld [vmem:[%s3924_s18 + $0xb4] sm:$0xe]  ;;  %v1820_v25 = vrot.slane %v1818_v1, 3  ;;  %v2397_v20 = vsel %vm2385_vm7, %v4047_v8, %v4363_v35  ;;  %v1950_v22 = vrot.slane %v4414_v53, 3 }
  0xc0   : > { %v4395_v26 = vpop.permute.xlu1 %1480  ;;  %v1076_v36 = vor.u32 %v1075_v2, %v1072_v33  ;;  %v922_v52 = vunpack.c.l.b16 %v457_v11  ;;  %v472_v33 = vld [vmem:[%s3924_s18 + $0xb0] sm:$0x3]  ;;  %v4454_v2 = vpack.c.b16 %v4371_v49, %v600_v14 }
  0xc1   : > { %v1354_v7 = vpop.permute.xlu0 %1353  ;;  %v2561_v58 = vsel %vm2549_vm12, %v4395_v26, %v4328_v23  ;;  %v1817_v23 = vrot.slane %v1815_v24, 2 }
  0xc2   : > { %v2481_v31 = vsel %vm2467_vm11, %v4297_v44, %v1354_v7  ;;  %v2292_v44 = vshll.u32 %v4400_v37, 16  ;;  %v1085_v21 = vsel %vm1068_vm4, %v1076_v36, %v1084_v63  ;;  %v1532_v7 = vunpack.c.l.b16 %v504_v59 }
  0xc3   : > { %v2520_v41 = vsel %vm2500_vm13, %v2481_v31, %v4202_v54  ;;  %v1469_v54 = vsel %vm1421_vm1, %v1467_v10, %v1468_v40  ;;  %v1949_v10 = vrot.slane %v4400_v37, 3  ;;  %v665_v40 = vpack.c.b16 %v649_v16, %v649_v16 }
  0xc4   : > { %2912 = vmatpush.bf16.xpose.msra.mxu1 %v2520_v41  ;;  %2305 = vrot.lane.b32.xlu2 %v2049_v30, %s3818_s21  ;;  %v2294_v28 = vrot.slane %v2292_v44, 4  ;;  %v1813_v41 = vor.u32 %v1812_v12, %v1809_v43  ;;  %v1821_v42 = vor.u32 %v1820_v25, %v1817_v23  ;;  %v850_v18 = vshll.u32 %v4454_v2, 16 }
  0xc5   : > { %v4434_v5 = vpop.permute.xlu2 %1960  ;;  %v938_v8 = vpack.c.b16 %v4371_v49, %v922_v52  ;;  %v4468_v44 = vpack.c.b16 %v1532_v7, %v1532_v7  ;;  %v1050_v37 = vunpack.c.l.b16 %v472_v33  ;;  %v855_v55 = vshll.u32 %v665_v40, 16 }
  0xc6   : > { %2353 = vrot.lane.b32.xlu1 %v2337_v29, %s5538_s15  ;;  %v4450_v29 = vpack.c.b16 %v4441_v62, %v1403_v13  ;;  %v2295_v31 = vor.u32 %v2294_v28, %v2291_v4  ;;  %v848_v57 = vshrl.u32 %v4454_v2, 16  ;;  %v852_v50 = vrot.slane %v850_v18, 1 }
  0xc7   : > { %859 = vrot.lane.b32.xlu0 %v678_v34, %s5540_s25  ;;  %v2303_v34 = vor.u32 %v2302_v27, %v2299_v9  ;;  %v1822_v61 = vsel %vm1550_vm5, %v1813_v41, %v1821_v42  ;;  %v1951_v24 = vsel %vm1903_vm0, %v1949_v10, %v1950_v22  ;;  %v985_v4 = vrot.slane %v938_v8, 1 }
  0xc8   : > { %v2316_v56 = vpop.permute.xlu1 %2315  ;;  %v1793_v1 = vshll.u32 %v4450_v29, 16  ;;  %v986_v28 = vrot.slane %v665_v40, 1  ;;  %v4487_v9 = vpack.c.b16 %v1050_v37, %v1050_v37  ;;  %v1885_v27 = vunpack.c.l.b16 %v520_v60 }
  0xc9   : > { %v1963_v6 = vpop.permute.xlu0 %1962  ;;  %v853_v11 = vor.u32 %v852_v50, %v848_v57  ;;  %v857_v59 = vrot.slane %v855_v55, 1  ;;  %v1325_v13 = vshrl.u32 %v938_v8, 16  ;;  %v1328_v14 = vshll.u32 %v938_v8, 16 }
  0xca   : > { %v2594_v47 = vsel %vm2582_vm14, %v2561_v58, %v1963_v6  ;;  %v648_v6 = vunpack.c.l.b16 %v440_v0  ;;  %v1336_v16 = vshll.u32 %v4385_v17, 16  ;;  %v1795_v43 = vrot.slane %v1793_v1, 3  ;;  %v4533_v0 = vld [vmem:[%s3924_s18 + $0xa0] sm:$0xff]  }
  0xcb   : > { %v2632_v19 = vsel %vm2615_vm15, %v2594_v47, %v2316_v56  ;;  %v1333_v47 = vshrl.u32 %v4385_v17, 16  ;;  %v4497_v25 = vunpack.c.l.b16 %v4427_v51  ;;  %v987_v52 = vsel %vm939_vm3, %v985_v4, %v986_v28 }
  0xcc   : > { %2942 = vmatpush.bf16.xpose.msra.mxu2 %v2632_v19  ;;  %988 = vrot.lane.b32.xlu2 %v942_v3, %s3819_s22  ;;  %v838_v7 = vshll.u32 %v4417_v32, 16  ;;  %v4504_v33 = vpack.c.b16 %v4441_v62, %v1885_v27  ;;  %v1464_v17 = vrot.slane %v4450_v29, 2  ;;  %v858_v10 = vsel %vm666_vm6, %v853_v11, %v857_v59 }
  0xcd   : > { %v4466_v35 = vpop.permute.xlu2 %2361  ;;  %v1327_v51 = vrot.slane %v1325_v13, 1  ;;  %v1330_v40 = vrot.slane %v1328_v14, 2  ;;  %v1335_v41 = vrot.slane %v1333_v47, 1  ;;  %v1338_v42 = vrot.slane %v1336_v16, 2 }
  0xce   : > { %1500 = vrot.lane.b32.xlu1 %v1469_v54, %s3817_s19  ;;  %v1790_v54 = vshrl.u32 %v4450_v29, 16  ;;  %v2030_v22 = vpack.c.b16 %v4497_v25, %v4497_v25  ;;  %v836_v37 = vshrl.u32 %v4417_v32, 16  ;;  %v840_v29 = vrot.slane %v838_v7, 1 }
  0xcf   : > { %1341 = vrot.lane.b32.xlu0 %v1085_v21, %s3820_s23  ;;  %v1331_v55 = vor.u32 %v1330_v40, %v1327_v51  ;;  %v4544_v13 = vunpack.c.l.b16 %v4533_v0 }
  0xd0   : > { %v999_v30 = vpop.permute.xlu1 %998  ;;  %v1792_v58 = vrot.slane %v1790_v54, 2  ;;  %v2280_v50 = vshrl.u32 %v2030_v22, 16 }
  0xd1   : > { %v2364_v45 = vpop.permute.xlu0 %2363  ;;  %v2479_v46 = vsel %vm2467_vm11, %v999_v30, %v4397_v48  ;;  %v2435_v36 = vsel %vm2418_vm8, %v2397_v20, %v999_v30  ;;  %v2304_v48 = vsel %vm2032_vm2, %v2295_v31, %v2303_v34  ;;  %v456_v20 = vld [vmem:[%s3924_s18 + $0xa8] sm:$0xe]  ;;  %v1465_v31 = vrot.slane %v4487_v9, 2 }
  0xd2   : > { %2884 = vmatpush.bf16.xpose.msra.mxu0 %v2435_v36  ;;  %v2517_v53 = vsel %vm2500_vm13, %v2479_v46, %v4395_v26  ;;  %v2676_v49 = vsel %vm2664_vm9, %v2316_v56, %v2364_v45  ;;  %v1798_v26 = vshrl.u32 %v4468_v44, 16  ;;  %v1801_v56 = vshll.u32 %v4468_v44, 16 }
  0xd3   : > { %2913 = vmatpush.bf16.xpose.msra.mxu1 %v2517_v53  ;;  %v2860_v63 = vsel %vm2837_vm10, %v2676_v49, 0  ;;  %v4509_v34 = vpack.c.b16 %v648_v6, %v648_v6  ;;  %v1796_v18 = vor.u32 %v1795_v43, %v1792_v58  ;;  %v921_v8 = vunpack.c.l.b16 %v456_v20  ;;  %v503_v49 = vld [vmem:[%s3924_s18 + $0xa4] sm:$0x7] }
  0xd4   : > { %2971 = vmatpush.bf16.xpose.msra.mxu3 %v2860_v63  ;;  %1853 = vrot.lane.b32.xlu2 %v1822_v61, %s3821_s24  ;;  %v1800_v19 = vrot.slane %v1798_v26, 2  ;;  %v1803_v12 = vrot.slane %v1801_v56, 3  ;;  %v2272_v45 = vshrl.u32 %v4504_v33, 16  ;;  %v2275_v46 = vshll.u32 %v4504_v33, 16 }
  0xd5   : > { %v4494_v23 = vpop.permute.xlu2 %1476  ;;  %v843_v54 = vshll.u32 %v4509_v34, 16  ;;  %v1466_v32 = vsel %vm1421_vm1, %v1464_v17, %v1465_v31  ;;  %v1339_v53 = vor.u32 %v1338_v42, %v1335_v41  ;;  %v2283_v63 = vshll.u32 %v2030_v22, 16  ;;  %v3726_v42 = vld [vmem:[%s3924_s18 + $0x30] sm:$0xff]  }
  0xd6   : > { %2335 = vrot.lane.b32.xlu1 %v2304_v48, %s3818_s21  ;;  %v1804_v30 = vor.u32 %v1803_v12, %v1800_v19  ;;  %v4530_v61 = vpack.c.b16 %v4441_v62, %v921_v8  ;;  %v841_v26 = vor.u32 %v840_v29, %v836_v37  ;;  %v2274_v56 = vrot.slane %v2272_v45, 3  ;;  %v519_v19 = vld [vmem:[%s3924_s18 + $0x9c] sm:$0x8] }
  0xd7   : > { %1982 = vrot.lane.b32.xlu0 %v1951_v24, %s3816_s17  ;;  %v487_v24 = vld [vmem:[%s3924_s18 + $0x9c] sm:$0xc]  ;;  %v2277_v4 = vrot.slane %v2275_v46, 4  ;;  %v845_v58 = vrot.slane %v843_v54, 1  ;;  %v1531_v6 = vunpack.c.l.b16 %v503_v49  ;;  %v1340_v59 = vsel %vm1068_vm4, %v1331_v55, %v1339_v53 }
  0xd8   : > { %v1832_v3 = vpop.permute.xlu1 %1831  ;;  %v1805_v57 = vsel %vm1550_vm5, %v1796_v18, %v1804_v30  ;;  %v2282_v14 = vrot.slane %v2280_v50, 3  ;;  %v2285_v47 = vrot.slane %v2283_v63, 4  ;;  %v1308_v16 = vshrl.u32 %v4530_v61, 16  ;;  %v4571_v46 = vld [vmem:[%s3924_s18 + $0x98] sm:$0xff]   ;;  %v439_v63 = vld [vmem:[%s3924_s18 + $0xa4] sm:$0x1] }
  0xd9   : > { %v4499_v21 = vpop.permute.xlu0 %1478  ;;  %v1319_v43 = vshll.u32 %v4487_v9, 16  ;;  %v4553_v12 = vpack.c.b16 %v1531_v6, %v1531_v6  ;;  %v1946_v20 = vrot.slane %v4504_v33, 3  ;;  %v1947_v17 = vrot.slane %v4468_v44, 3 }
  0xda   : > { %v2559_v36 = vsel %vm2549_vm12, %v4499_v21, %v1832_v3  ;;  %v1316_v3 = vshrl.u32 %v4487_v9, 16  ;;  %v846_v9 = vsel %vm666_vm6, %v841_v26, %v845_v58  ;;  %v1310_v51 = vrot.slane %v1308_v16, 1 }
  0xdb   : > { %v1321_v8 = vrot.slane %v1319_v43, 2  ;;  %v1884_v37 = vunpack.c.l.b16 %v519_v19  ;;  %v1781_v29 = vshrl.u32 %v4553_v12, 16  ;;  %v1784_v45 = vshll.u32 %v4553_v12, 16 }
  0xdc   : > { %889 = vrot.lane.b32.xlu2 %v858_v10, %s5540_s25  ;;  %v2286_v10 = vor.u32 %v2285_v47, %v2282_v14  ;;  %v1318_v40 = vrot.slane %v1316_v3, 1  ;;  %v1948_v55 = vsel %vm1903_vm0, %v1946_v20, %v1947_v17  ;;  %v982_v49 = vrot.slane %v4530_v61, 1  ;;  %v455_v14 = vld [vmem:[%s3924_s18 + $0x9c] sm:$0xe] }
  0xdd   : > { %v4527_v48 = vpop.permute.xlu2 %2311  ;;  %v983_v50 = vrot.slane %v4509_v34, 1  ;;  %v647_v34 = vunpack.c.l.b16 %v439_v63  ;;  %v1944_v3 = vrot.slane %v4553_v12, 3 }
  0xde   : > { %1018 = vrot.lane.b32.xlu1 %v987_v52, %s3819_s22  ;;  %v2278_v52 = vor.u32 %v2277_v4, %v2274_v56  ;;  %v1786_v56 = vrot.slane %v1784_v45, 3 }
  0xdf   : > { %2383 = vrot.lane.b32.xlu0 %v4353_v38, %s5538_s15  ;;  %v2592_v38 = vsel %vm2582_vm14, %v2559_v36, %v4434_v5  ;;  %v1402_v5 = vunpack.c.l.b16 %v487_v24  ;;  %v596_v24 = vunpack.c.h.b16 %v4571_v46 }
  0xe0   : > { %v868_v60 = vpop.permute.xlu1 %867  ;;  %v2287_v53 = vsel %vm2032_vm2, %v2278_v52, %v2286_v10 }
  0xe1   : > { %v2314_v1 = vpop.permute.xlu0 %2313  ;;  %v4557_v7 = vpack.c.b16 %v4544_v13, %v1402_v5  ;;  %v2395_v18 = vsel %vm2385_vm7, %v3726_v42, %v868_v60  ;;  %v4594_v5 = vpack.c.b16 %v4544_v13, %v596_v24 }
  0xe2   : > { %v2629_v28 = vsel %vm2615_vm15, %v2592_v38, %v2314_v1  ;;  %v2674_v27 = vsel %vm2664_vm9, %v2314_v1, %v4466_v35  ;;  %v1311_v35 = vshll.u32 %v4530_v61, 16  ;;  %v471_v1 = vld [vmem:[%s3924_s18 + $0xa4] sm:$0x3]  ;;  %v1783_v61 = vrot.slane %v1781_v29, 2 }
  0xe3   : > { %2943 = vmatpush.bf16.xpose.msra.mxu2 %v2629_v28  ;;  %v2858_v11 = vsel %vm2837_vm10, %v2674_v27, 0  ;;  %v1773_v54 = vshrl.u32 %v4557_v7, 16  ;;  %v1049_v27 = vunpack.c.l.b16 %v471_v1  ;;  %v1461_v12 = vrot.slane %v4557_v7, 2 }
  0xe4   : > { %2972 = vmatpush.bf16.xpose.msra.mxu3 %v2858_v11  ;;  %1371 = vrot.lane.b32.xlu2 %v1340_v59, %s3820_s23  ;;  %v1313_v22 = vrot.slane %v1311_v35, 2  ;;  %v984_v11 = vsel %vm939_vm3, %v982_v49, %v983_v50  ;;  %v2013_v59 = vunpack.c.h.b16 %v4533_v0  ;;  %v2351_v35 = vpack.c.b16 %v4497_v25, %v4441_v62  ;;  %v4611_v62 = vld [vmem:[%s3924_s18 + $0x90] sm:$0xff]   ;;  %v470_v25 = vld [vmem:[%s3924_s18 + $0x98] sm:$0x3] }
  0xe5   : > { %v4562_v41 = vpop.permute.xlu2 %994  ;;  %v1775_v38 = vrot.slane %v1773_v54, 2  ;;  %v1787_v52 = vor.u32 %v1786_v56, %v1783_v61  ;;  %v1065_v10 = vpack.c.b16 %v1049_v27, %v1049_v27  ;;  %v1048_v49 = vunpack.c.l.b16 %v470_v25 }
  0xe6   : > { %1851 = vrot.lane.b32.xlu1 %v1805_v57, %s3821_s24  ;;  %v1314_v60 = vor.u32 %v1313_v22, %v1310_v51  ;;  %v1322_v57 = vor.u32 %v1321_v8, %v1318_v40  ;;  %v2029_v20 = vpack.c.b16 %v2013_v59, %v2013_v59  ;;  %v826_v51 = vshll.u32 %v4594_v5, 16 }
  0xe7   : > { %1498 = vrot.lane.b32.xlu0 %v1466_v32, %s3817_s19  ;;  %v1776_v32 = vshll.u32 %v4557_v7, 16  ;;  %v1462_v40 = vrot.slane %v1065_v10, 2  ;;  %v1299_v56 = vshrl.u32 %v1065_v10, 16 }
  0xe8   : > { %v1350_v31 = vpop.permute.xlu1 %1349  ;;  %v1323_v6 = vsel %vm1068_vm4, %v1314_v60, %v1322_v57  ;;  %v2263_v22 = vshrl.u32 %v2029_v20, 16  ;;  %v2266_v8 = vshll.u32 %v2029_v20, 16  ;;  %v518_v60 = vld [vmem:[%s3924_s18 + $0x90] sm:$0x8] }
  0xe9   : > { %v997_v30 = vpop.permute.xlu0 %996  ;;  %v1778_v26 = vrot.slane %v1776_v32, 3  ;;  %v828_v32 = vrot.slane %v826_v51, 1  ;;  %v1463_v63 = vsel %vm1421_vm1, %v1461_v12, %v1462_v40 }
  0xea   : > { %v2477_v33 = vsel %vm2467_vm11, %v997_v30, %v1350_v31  ;;  %v2432_v44 = vsel %vm2418_vm8, %v2395_v18, %v997_v30  ;;  %v4605_v31 = vpack.c.b16 %v647_v34, %v647_v34  ;;  %v2265_v1 = vrot.slane %v2263_v22, 3 }
  0xeb   : > { %2885 = vmatpush.bf16.xpose.msra.mxu0 %v2432_v44  ;;  %v2514_v36 = vsel %vm2500_vm13, %v2477_v33, %v4499_v21  ;;  %v1900_v21 = vpack.c.b16 %v4544_v13, %v1884_v37  ;;  %v1779_v19 = vor.u32 %v1778_v26, %v1775_v38  ;;  %v824_v44 = vshrl.u32 %v4594_v5, 16 }
  0xec   : > { %2914 = vmatpush.bf16.xpose.msra.mxu1 %v2514_v36  ;;  %1980 = vrot.lane.b32.xlu2 %v1948_v55, %s3816_s17  ;;  %v831_v29 = vshll.u32 %v4605_v31, 16  ;;  %v4628_v55 = vunpack.c.h.b16 %v4611_v62  ;;  %v4641_v34 = vunpack.c.l.b16 %v4571_v46 }
  0xed   : > { %v4588_v28 = vpop.permute.xlu2 %1827  ;;  %v1943_v16 = vrot.slane %v1900_v21, 3  ;;  %v2255_v42 = vshrl.u32 %v1900_v21, 16  ;;  %v2258_v30 = vshll.u32 %v1900_v21, 16  ;;  %v1788_v33 = vsel %vm1550_vm5, %v1779_v19, %v1787_v52 }
  0xee   : > { %887 = vrot.lane.b32.xlu1 %v846_v9, %s5540_s25  ;;  %v920_v9 = vunpack.c.l.b16 %v455_v14  ;;  %v2268_v21 = vrot.slane %v2266_v8, 4  ;;  %v833_v27 = vrot.slane %v831_v29, 1  ;;  %v1301_v52 = vrot.slane %v1299_v56, 1 }
  0xef   : > { %2333 = vrot.lane.b32.xlu0 %v2287_v53, %s3818_s21  ;;  %v1945_v18 = vsel %vm1903_vm0, %v1943_v16, %v1944_v3  ;;  %v486_v53 = vld [vmem:[%s3924_s18 + $0x90] sm:$0xc] }
  0xf0   : > { %v1959_v4 = vpop.permute.xlu1 %1958  ;;  %v4623_v7 = vpack.c.b16 %v4544_v13, %v920_v9  ;;  %v2257_v13 = vrot.slane %v2255_v42, 3  ;;  %v1401_v38 = vunpack.c.l.b16 %v486_v53  ;;  %v2269_v14 = vor.u32 %v2268_v21, %v2265_v1  ;;  %v485_v1 = vld [vmem:[%s3924_s18 + $0x84] sm:$0xc] }
  0xf1   : > { %v1830_v58 = vpop.permute.xlu0 %1829 }
  0xf2   : > { %v2557_v47 = vsel %vm2549_vm12, %v4494_v23, %v1830_v58  ;;  %v1291_v26 = vshrl.u32 %v4623_v7, 16  ;;  %v1294_v61 = vshll.u32 %v4623_v7, 16  ;;  %v502_v58 = vld [vmem:[%s3924_s18 + $0x98] sm:$0x7]  ;;  %v1417_v16 = vpack.c.b16 %v4628_v55, %v1401_v38 }
  0xf3   : > { %v2590_v43 = vsel %vm2582_vm14, %v2557_v47, %v1959_v4  ;;  %v1302_v4 = vshll.u32 %v1065_v10, 16  ;;  %v1530_v9 = vunpack.c.l.b16 %v502_v58 }
  0xf4   : > { %v2626_v17 = vsel %vm2615_vm15, %v2590_v43, %v4527_v48  ;;  %2381 = vrot.lane.b32.xlu2 %v2351_v35, %s5538_s15  ;;  %v1293_v3 = vrot.slane %v1291_v26, 1  ;;  %v1296_v46 = vrot.slane %v1294_v61, 2  ;;  %v1458_v40 = vrot.slane %v1417_v16, 2  ;;  %v501_v61 = vld [vmem:[%s3924_s18 + $0x8c] sm:$0x7] }
  0xf5   : > { %2944 = vmatpush.bf16.xpose.msra.mxu2 %v2626_v17  ;;  %v4620_v45 = vpop.permute.xlu2 %863  ;;  %v1304_v20 = vrot.slane %v1302_v4, 2  ;;  %v2028_v17 = vpack.c.b16 %v4641_v34, %v4641_v34  ;;  %v1756_v29 = vshrl.u32 %v1417_v16, 16 }
  0xf6   : > { %1369 = vrot.lane.b32.xlu1 %v1323_v6, %s3820_s23  ;;  %v829_v6 = vor.u32 %v828_v32, %v824_v44  ;;  %v1297_v22 = vor.u32 %v1296_v46, %v1293_v3  ;;  %v980_v44 = vrot.slane %v4605_v31, 1  ;;  %v3727_v3 = vld [vmem:[%s3924_s18 + $0x18] sm:$0xff]  }
  0xf7   : > { %1016 = vrot.lane.b32.xlu0 %v984_v11, %s3819_s22  ;;  %v4647_v11 = vpack.c.b16 %v1048_v49, %v1048_v49  ;;  %v1305_v8 = vor.u32 %v1304_v20, %v1301_v52  ;;  %v2391_v46 = vsel %vm2385_vm7, %v3727_v3, %v4620_v45  ;;  %v814_v52 = vshll.u32 %v4611_v62, 16 }
  0xf8   : > { %v2360_v37 = vpop.permute.xlu1 %2359  ;;  %v834_v25 = vsel %vm666_vm6, %v829_v6, %v833_v27 }
  0xf9   : > { %v866_v36 = vpop.permute.xlu0 %865  ;;  %v2672_v54 = vsel %vm2664_vm9, %v4527_v48, %v2360_v37  ;;  %v2260_v48 = vrot.slane %v2258_v30, 4  ;;  %v1459_v42 = vrot.slane %v4647_v11, 2  ;;  %v2246_v37 = vshrl.u32 %v2028_v17, 16 }
  0xfa   : > { %v2393_v57 = vsel %vm2385_vm7, %v4131_v15, %v866_v36  ;;  %v2856_v50 = vsel %vm2837_vm10, %v2672_v54, 0  ;;  %v1883_v15 = vunpack.c.l.b16 %v518_v60  ;;  %v1759_v36 = vshll.u32 %v1417_v16, 16 }
  0xfb   : > { %v2429_v24 = vsel %vm2418_vm8, %v2393_v57, %v4562_v41  ;;  %2973 = vmatpush.bf16.xpose.msra.mxu3 %v2856_v50  ;;  %v2261_v59 = vor.u32 %v2260_v48, %v2257_v13  ;;  %v1460_v50 = vsel %vm1421_vm1, %v1458_v40, %v1459_v42  ;;  %v2248_v13 = vrot.slane %v2246_v37, 3  ;;  %v4688_v48 = vld [vmem:[%s3924_s18 + $0x88] sm:$0xff]  }
  0xfc   : > { %2886 = vmatpush.bf16.xpose.msra.mxu0 %v2429_v24  ;;  %1496 = vrot.lane.b32.xlu2 %v1463_v63, %s3817_s19  ;;  %v4655_v43 = vpack.c.b16 %v4628_v55, %v1883_v15  ;;  %v1306_v63 = vsel %vm1068_vm4, %v1297_v22, %v1305_v8  ;;  %v454_v24 = vld [vmem:[%s3924_s18 + $0x90] sm:$0xe]  ;;  %v1758_v15 = vrot.slane %v1756_v29, 2  ;;  %v1761_v56 = vrot.slane %v1759_v36, 3 }
  0xfd   : > { %v2270_v12 = vsel %vm2032_vm2, %v2261_v59, %v2269_v14  ;;  %v919_v6 = vunpack.c.l.b16 %v454_v24  ;;  %v4696_v59 = vunpack.c.l.b16 %v4688_v48  ;;  %v1400_v14 = vunpack.c.l.b16 %v485_v1 }
  0xfe   : > { %1978 = vrot.lane.b32.xlu1 %v1945_v18, %s3816_s17  ;;  %v4652_v35 = vpop.permute.xlu2 %1345  ;;  %v2238_v18 = vshrl.u32 %v4655_v43, 16  ;;  %v2241_v30 = vshll.u32 %v4655_v43, 16  ;;  %v1529_v16 = vunpack.c.l.b16 %v501_v61  ;;  %v812_v8 = vshrl.u32 %v4611_v62, 16  ;;  %v517_v62 = vld [vmem:[%s3924_s18 + $0x84] sm:$0x8] }
  0xff   : > { %1849 = vrot.lane.b32.xlu0 %v1788_v33, %s3821_s24  ;;  %v979_v33 = vrot.slane %v4623_v7, 1  ;;  %v438_v7 = vld [vmem:[%s3924_s18 + $0x98] sm:$0x1]  ;;  %v935_v45 = vpack.c.b16 %v4628_v55, %v919_v6 }
 0x100   : > { %v4649_v47 = vpop.permute.xlu1 %1474  ;;  %v2243_v49 = vrot.slane %v2241_v30, 4  ;;  %v646_v58 = vunpack.c.l.b16 %v438_v7  ;;  %v4716_v22 = vpack.c.b16 %v1529_v16, %v1529_v16  ;;  %v469_v7 = vld [vmem:[%s3924_s18 + $0x8c] sm:$0x3] }
 0x101   : > { %v1348_v19 = vpop.permute.xlu0 %1347  ;;  %v2555_v31 = vsel %vm2549_vm12, %v4649_v47, %v4588_v28  ;;  %v981_v26 = vsel %vm939_vm3, %v979_v33, %v980_v44  ;;  %v816_v33 = vrot.slane %v814_v52, 1  ;;  %v1274_v1 = vshrl.u32 %v935_v45, 16 }
 0x102   : > { %v2475_v10 = vsel %vm2467_vm11, %v4562_v41, %v1348_v19  ;;  %v4668_v41 = vpack.c.b16 %v1530_v9, %v1530_v9  ;;  %v1940_v19 = vrot.slane %v4655_v43, 3  ;;  %v1762_v9 = vor.u32 %v1761_v56, %v1758_v15 }
 0x103   : > { %v2511_v51 = vsel %vm2500_vm13, %v2475_v10, %v4494_v23  ;;  %v2249_v23 = vshll.u32 %v2028_v17, 16  ;;  %v4711_v43 = vpack.c.b16 %v4696_v59, %v1400_v14  ;;  %v1047_v56 = vunpack.c.l.b16 %v469_v7 }
 0x104   : > { %2915 = vmatpush.bf16.xpose.msra.mxu1 %v2511_v51  ;;  %2331 = vrot.lane.b32.xlu2 %v2270_v12, %s3818_s21  ;;  %v1764_v54 = vshrl.u32 %v4668_v41, 16  ;;  %v1767_v32 = vshll.u32 %v4668_v41, 16  ;;  %v662_v12 = vpack.c.b16 %v646_v58, %v646_v58 }
 0x105   : > { %v2251_v38 = vrot.slane %v2249_v23, 4  ;;  %v4723_v23 = vld [vmem:[%s3924_s18 + $0x80] sm:$0xff]  }
 0x106   : > { %2379 = vrot.lane.b32.xlu1 %v4533_v0, %s5538_s15  ;;  %v2240_v0 = vrot.slane %v2238_v18, 3  ;;  %v4678_v60 = vpop.permute.xlu2 %1954  ;;  %v1766_v4 = vrot.slane %v1764_v54, 2  ;;  %v1769_v27 = vrot.slane %v1767_v32, 3  ;;  %v819_v44 = vshll.u32 %v662_v12, 16 }
 0x107   : > { %885 = vrot.lane.b32.xlu0 %v834_v25, %s5540_s25  ;;  %v2252_v17 = vor.u32 %v2251_v38, %v2248_v13  ;;  %v1941_v25 = vrot.slane %v4668_v41, 3  ;;  %v977_v32 = vrot.slane %v662_v12, 1  ;;  %v817_v13 = vor.u32 %v816_v33, %v812_v8 }
 0x108   : > { %v2310_v53 = vpop.permute.xlu1 %2309  ;;  %v2244_v20 = vor.u32 %v2243_v49, %v2240_v0  ;;  %v1770_v10 = vor.u32 %v1769_v27, %v1766_v4  ;;  %v1742_v0 = vshll.u32 %v4711_v43, 16  ;;  %v1747_v49 = vshrl.u32 %v4716_v22, 16 }
 0x109   : > { %v1957_v57 = vpop.permute.xlu0 %1956  ;;  %v1942_v54 = vsel %vm1903_vm0, %v1940_v19, %v1941_v25  ;;  %v821_v24 = vrot.slane %v819_v44, 1  ;;  %v1282_v38 = vshrl.u32 %v4647_v11, 16  ;;  %v2011_v27 = vunpack.c.h.b16 %v4688_v48 }
 0x10a   : > { %v2588_v21 = vsel %vm2582_vm14, %v2555_v31, %v1957_v57  ;;  %v2253_v29 = vsel %vm2032_vm2, %v2244_v20, %v2252_v17  ;;  %v1771_v36 = vsel %vm1550_vm5, %v1762_v9, %v1770_v10  ;;  %v592_v31 = vunpack.c.h.b16 %v4723_v23 }
 0x10b   : > { %v2623_v28 = vsel %vm2615_vm15, %v2588_v21, %v2310_v53  ;;  %v1750_v57 = vshll.u32 %v4716_v22, 16  ;;  %v1277_v21 = vshll.u32 %v935_v45, 16  ;;  %v1744_v14 = vrot.slane %v1742_v0, 3 }
 0x10c   : > { %2945 = vmatpush.bf16.xpose.msra.mxu2 %v2623_v28  ;;  %1014 = vrot.lane.b32.xlu2 %v981_v26, %s3819_s22  ;;  %v1285_v26 = vshll.u32 %v4647_v11, 16  ;;  %v2349_v28 = vpack.c.b16 %v4641_v34, %v4628_v55  ;;  %v4751_v16 = vpack.c.b16 %v4696_v59, %v592_v31  ;;  %v1749_v3 = vrot.slane %v1747_v49, 2 }
 0x10d   : > { %v822_v55 = vsel %vm666_vm6, %v817_v13, %v821_v24  ;;  %v1276_v34 = vrot.slane %v1274_v1, 1  ;;  %v1279_v52 = vrot.slane %v1277_v21, 2  ;;  %v1284_v20 = vrot.slane %v1282_v38, 1 }
 0x10e   : > { %1494 = vrot.lane.b32.xlu1 %v1460_v50, %s3817_s19  ;;  %v4708_v40 = vpop.permute.xlu2 %2355  ;;  %v437_v50 = vld [vmem:[%s3924_s18 + $0x8c] sm:$0x1]  ;;  %v1287_v17 = vrot.slane %v1285_v26, 2  ;;  %v4757_v9 = vpack.c.b16 %v1047_v56, %v1047_v56  ;;  %v2027_v10 = vpack.c.b16 %v2011_v27, %v2011_v27  ;;  %v802_v12 = vshll.u32 %v4751_v16, 16  ;;  %v484_v56 = vld [vmem:[%s3924_s18 + $0x78] sm:$0xc] }
 0x10f   : > { %1367 = vrot.lane.b32.xlu0 %v1306_v63, %s3820_s23  ;;  %v1882_v63 = vunpack.c.l.b16 %v517_v62  ;;  %v645_v11 = vunpack.c.l.b16 %v437_v50  ;;  %v500_v50 = vld [vmem:[%s3924_s18 + $0x80] sm:$0x7] }
 0x110   : > { %v993_v51 = vpop.permute.xlu1 %992  ;;  %v1288_v33 = vor.u32 %v1287_v17, %v1284_v20  ;;  %v2232_v62 = vshll.u32 %v2027_v10, 16  ;;  %v804_v0 = vrot.slane %v802_v12, 1 }
 0x111   : > { %v2358_v42 = vpop.permute.xlu0 %2357  ;;  %v2473_v18 = vsel %vm2467_vm11, %v993_v51, %v4652_v35  ;;  %v2426_v30 = vsel %vm2418_vm8, %v2391_v46, %v993_v51  ;;  %v1752_v46 = vrot.slane %v1750_v57, 3  ;;  %v4754_v19 = vpack.c.b16 %v4696_v59, %v1882_v63  ;;  %v453_v51 = vld [vmem:[%s3924_s18 + $0x84] sm:$0xe] }
 0x112   : > { %2887 = vmatpush.bf16.xpose.msra.mxu0 %v2426_v30  ;;  %v2508_v37 = vsel %vm2500_vm13, %v2473_v18, %v4649_v47  ;;  %v2670_v41 = vsel %vm2664_vm9, %v2310_v53, %v2358_v42  ;;  %v976_v47 = vrot.slane %v935_v45, 1  ;;  %v1739_v53 = vshrl.u32 %v4711_v43, 16 }
 0x113   : > { %2916 = vmatpush.bf16.xpose.msra.mxu1 %v2508_v37  ;;  %v2854_v35 = vsel %vm2837_vm10, %v2670_v41, 0  ;;  %v4760_v25 = vpack.c.b16 %v645_v11, %v645_v11  ;;  %v2221_v18 = vshrl.u32 %v4754_v19, 16  ;;  %v2224_v30 = vshll.u32 %v4754_v19, 16 }
 0x114   : > { %2974 = vmatpush.bf16.xpose.msra.mxu3 %v2854_v35  ;;  %1847 = vrot.lane.b32.xlu2 %v1771_v36, %s3821_s24  ;;  %v978_v15 = vsel %vm939_vm3, %v976_v47, %v977_v32  ;;  %v1741_v6 = vrot.slane %v1739_v53, 2  ;;  %v1753_v8 = vor.u32 %v1752_v46, %v1749_v3  ;;  %v918_v37 = vunpack.c.l.b16 %v453_v51 }
 0x115   : > { %v1280_v41 = vor.u32 %v1279_v52, %v1276_v34  ;;  %v1455_v35 = vrot.slane %v4711_v43, 2  ;;  %v2229_v36 = vshrl.u32 %v2027_v10, 16  ;;  %v800_v53 = vshrl.u32 %v4751_v16, 16 }
 0x116   : > { %2329 = vrot.lane.b32.xlu1 %v2253_v29, %s3818_s21  ;;  %v4745_v4 = vpop.permute.xlu2 %1470  ;;  %v1745_v42 = vor.u32 %v1744_v14, %v1741_v6  ;;  %v1456_v29 = vrot.slane %v4757_v9, 2  ;;  %v807_v49 = vshll.u32 %v4760_v25, 16  ;;  %v2223_v31 = vrot.slane %v2221_v18, 3 }
 0x117   : > { %1976 = vrot.lane.b32.xlu0 %v1942_v54, %s3816_s17  ;;  %v2226_v57 = vrot.slane %v2224_v30, 4  ;;  %v4785_v13 = vpack.c.b16 %v4696_v59, %v918_v37  ;;  %v1289_v24 = vsel %vm1068_vm4, %v1280_v41, %v1288_v33  ;;  %v2231_v21 = vrot.slane %v2229_v36, 3 }
 0x118   : > { %v1826_v61 = vpop.permute.xlu1 %1825  ;;  %v1457_v1 = vsel %vm1421_vm1, %v1455_v35, %v1456_v29  ;;  %v805_v38 = vor.u32 %v804_v0, %v800_v53  ;;  %v809_v26 = vrot.slane %v807_v49, 1  ;;  %v1265_v59 = vshrl.u32 %v4757_v9, 16  ;;  %v436_v53 = vld [vmem:[%s3924_s18 + $0x80] sm:$0x1] }
 0x119   : > { %v4748_v58 = vpop.permute.xlu0 %1472  ;;  %v2227_v27 = vor.u32 %v2226_v57, %v2223_v31  ;;  %v1268_v6 = vshll.u32 %v4757_v9, 16  ;;  %v1257_v14 = vshrl.u32 %v4785_v13, 16  ;;  %v1260_v11 = vshll.u32 %v4785_v13, 16 }
 0x11a   : > { %v2553_v45 = vsel %vm2549_vm12, %v4748_v58, %v1826_v61  ;;  %v4790_v61 = vld [vmem:[%s3924_s18 + $0x78] sm:$0xff]   ;;  %v1937_v3 = vrot.slane %v4754_v19, 3  ;;  %v1938_v46 = vrot.slane %v4716_v22, 3  ;;  %v1399_v9 = vunpack.c.l.b16 %v484_v56 }
 0x11b   : > { %v2586_v32 = vsel %vm2582_vm14, %v2553_v45, %v4678_v60  ;;  %v1754_v60 = vsel %vm1550_vm5, %v1745_v42, %v1753_v8  ;;  %v4806_v20 = vunpack.c.h.b16 %v4790_v61  ;;  %v810_v12 = vsel %vm666_vm6, %v805_v38, %v809_v26 }
 0x11c   : > { %883 = vrot.lane.b32.xlu2 %v822_v55, %s5540_s25  ;;  %v1267_v42 = vrot.slane %v1265_v59, 1  ;;  %v1270_v18 = vrot.slane %v1268_v6, 2  ;;  %v1259_v8 = vrot.slane %v1257_v14, 1  ;;  %v1262_v37 = vrot.slane %v1260_v11, 2  ;;  %v4851_v14 = vld [vmem:[%s3924_s18 + $0x70] sm:$0xff]  }
 0x11d   : > { %v790_v6 = vshll.u32 %v4790_v61, 16 }
 0x11e   : > { %1012 = vrot.lane.b32.xlu1 %v978_v15, %s3819_s22  ;;  %v4772_v54 = vpop.permute.xlu2 %2305  ;;  %v516_v15 = vld [vmem:[%s3924_s18 + $0x78] sm:$0x8]  ;;  %v1263_v36 = vor.u32 %v1262_v37, %v1259_v8 }
 0x11f   : > { %2377 = vrot.lane.b32.xlu0 %v2349_v28, %s5538_s15  ;;  %v1528_v28 = vunpack.c.l.b16 %v500_v50  ;;  %v1881_v17 = vunpack.c.l.b16 %v516_v15 }
 0x120   : > { %v862_v44 = vpop.permute.xlu1 %861 }
 0x121   : > { %v2308_v47 = vpop.permute.xlu0 %2307  ;;  %v2389_v10 = vsel %vm2385_vm7, %v4248_v39, %v862_v44  ;;  %v1544_v45 = vpack.c.b16 %v1528_v28, %v1528_v28  ;;  %v1939_v39 = vsel %vm1903_vm0, %v1937_v3, %v1938_v46  ;;  %v4818_v33 = vpack.c.b16 %v4806_v20, %v1881_v17  ;;  %v3494_v3 = vld [vmem:[%s5530_s1 + $0x8] sm:$0xf]  ;;  %v3589_v46 = vld [vmem:[%s5530_s1 + $0x14] sm:$0xf0]  ;;  %v483_v17 = vld [vmem:[%s3924_s18 + $0x6c] sm:$0xc] }
 0x122   : > { %v2620_v7 = vsel %vm2615_vm15, %v2586_v32, %v2308_v47  ;;  %v2668_v43 = vsel %vm2664_vm9, %v2308_v47, %v4708_v40  ;;  %v2234_v40 = vrot.slane %v2232_v62, 4  ;;  %v4821_v44 = vpack.c.b16 %v4806_v20, %v1399_v9  ;;  %v515_v9 = vld [vmem:[%s3924_s18 + $0x6c] sm:$0x8] }
 0x123   : > { %2946 = vmatpush.bf16.xpose.msra.mxu2 %v2620_v7  ;;  %v2852_v63 = vsel %vm2837_vm10, %v2668_v43, 0  ;;  %v1730_v35 = vshrl.u32 %v1544_v45, 16  ;;  %v1733_v29 = vshll.u32 %v1544_v45, 16  ;;  %v1271_v62 = vor.u32 %v1270_v18, %v1267_v42 }
 0x124   : > { %2975 = vmatpush.bf16.xpose.msra.mxu3 %v2852_v63  ;;  %1365 = vrot.lane.b32.xlu2 %v1289_v24, %s3820_s23  ;;  %v2235_v34 = vor.u32 %v2234_v40, %v2231_v21  ;;  %v973_v47 = vrot.slane %v4785_v13, 1  ;;  %v974_v32 = vrot.slane %v4760_v25, 1  ;;  %v1934_v49 = vrot.slane %v4818_v33, 3  ;;  %v452_v24 = vld [vmem:[%s3924_s18 + $0x78] sm:$0xe] }
 0x125   : > { %v1722_v7 = vshrl.u32 %v4821_v44, 16  ;;  %v1725_v43 = vshll.u32 %v4821_v44, 16  ;;  %v1935_v50 = vrot.slane %v1544_v45, 3  ;;  %v1732_v63 = vrot.slane %v1730_v35, 2 }
 0x126   : > { %1845 = vrot.lane.b32.xlu1 %v1754_v60, %s3821_s24  ;;  %v4803_v52 = vpop.permute.xlu2 %988  ;;  %v2236_v41 = vsel %vm2032_vm2, %v2227_v27, %v2235_v34  ;;  %v4836_v60 = vunpack.c.l.b16 %v4723_v23  ;;  %v644_v21 = vunpack.c.l.b16 %v436_v53  ;;  %v1272_v38 = vsel %vm1068_vm4, %v1263_v36, %v1271_v62  ;;  %v467_v62 = vld [vmem:[%s3924_s18 + $0x74] sm:$0x3] }
 0x127   : > { %1492 = vrot.lane.b32.xlu0 %v1457_v1, %s3817_s19  ;;  %v1735_v1 = vrot.slane %v1733_v29, 3  ;;  %v975_v26 = vsel %vm939_vm3, %v973_v47, %v974_v32  ;;  %v1724_v28 = vrot.slane %v1722_v7, 2  ;;  %v1727_v56 = vrot.slane %v1725_v43, 3  ;;  %v3728_v29 = vld [vmem:[%s3924_s18] sm:$0xff]   ;;  %v3496_v43 = vld [vmem:[%s5530_s1 + $0x18] sm:$0xf0] }
 0x128   : > { %v1344_v55 = vpop.permute.xlu1 %1343  ;;  %v2026_v15 = vpack.c.b16 %v4836_v60, %v4836_v60  ;;  %v917_v27 = vunpack.c.l.b16 %v452_v24  ;;  %v1936_v59 = vsel %vm1903_vm0, %v1934_v49, %v1935_v50  ;;  %v4862_v34 = vpack.c.b16 %v644_v21, %v644_v21  ;;  %v3587_v7 = vld [vmem:[%s5530_s1 + $0xc] sm:$0xf] }
 0x129   : > { %v991_v51 = vpop.permute.xlu0 %990  ;;  %v1728_v18 = vor.u32 %v1727_v56, %v1724_v28  ;;  %v4879_v37 = vor.u32 %v3589_v46, %v3494_v3  ;;  %v1880_v35 = vunpack.c.l.b16 %v515_v9  ;;  %v792_v50 = vrot.slane %v790_v6, 1 }
 0x12a   : > { %v2471_v19 = vsel %vm2467_vm11, %v991_v51, %v1344_v55  ;;  %v2423_v22 = vsel %vm2418_vm8, %v2389_v10, %v991_v51  ;;  %v1736_v55 = vor.u32 %v1735_v1, %v1732_v63  ;;  %v2204_v10 = vshrl.u32 %v4818_v33, 16 }
 0x12b   : > { %2888 = vmatpush.bf16.xpose.msra.mxu0 %v2423_v22  ;;  %v2505_v30 = vsel %vm2500_vm13, %v2471_v19, %v4748_v58  ;;  %v468_v58 = vld [vmem:[%s3924_s18 + $0x80] sm:$0x3]  ;;  %v2207_v51 = vshll.u32 %v4818_v33, 16  ;;  %v2212_v19 = vshrl.u32 %v2026_v15, 16  ;;  %v2215_v22 = vshll.u32 %v2026_v15, 16 }
 0x12c   : > { %2917 = vmatpush.bf16.xpose.msra.mxu1 %v2505_v30  ;;  %1974 = vrot.lane.b32.xlu2 %v1939_v39, %s3816_s17  ;;  %v1046_v13 = vunpack.c.l.b16 %v468_v58  ;;  %v4877_v8 = vpack.c.b16 %v4806_v20, %v917_v27  ;;  %v4884_v33 = vunpack.c.l.b16 %v4851_v14  ;;  %v2206_v47 = vrot.slane %v2204_v10, 3 }
 0x12d   : > { %v2209_v32 = vrot.slane %v2207_v51, 4  ;;  %v2217_v49 = vrot.slane %v2215_v22, 4  ;;  %v795_v63 = vshll.u32 %v4862_v34, 16  ;;  %v2009_v24 = vunpack.c.h.b16 %v4851_v14 }
 0x12e   : > { %881 = vrot.lane.b32.xlu1 %v810_v12, %s5540_s25  ;;  %v4833_v31 = vpop.permute.xlu2 %1853  ;;  %v4853_v11 = vpack.c.b16 %v1046_v13, %v1046_v13  ;;  %v1452_v12 = vrot.slane %v4821_v44, 2  ;;  %v1398_v44 = vunpack.c.l.b16 %v483_v17  ;;  %v3486_v13 = vld [vmem:[%s5530_s1] sm:$0xf]  ;;  %v1045_v1 = vunpack.c.l.b16 %v467_v62  ;;  %v4957_v62 = vld [vmem:[%s3924_s18 + $0x60] sm:$0xff]  }
 0x12f   : > { %2327 = vrot.lane.b32.xlu0 %v2236_v41, %s3818_s21  ;;  %v1240_v21 = vshrl.u32 %v4877_v8, 16  ;;  %v4919_v28 = vor.u32 %v3587_v7, %v3496_v43  ;;  %v4923_v56 = vpack.c.b16 %v4884_v33, %v1880_v35  ;;  %v2210_v27 = vor.u32 %v2209_v32, %v2206_v47  ;;  %v482_v47 = vld [vmem:[%s3924_s18 + $0x60] sm:$0xc]  ;;  %v3593_v7 = vld [vmem:[%s5530_s1 + $0x34] sm:$0xf0] }
 0x130   : > { %v1953_v0 = vpop.permute.xlu1 %1952  ;;  %v1453_v45 = vrot.slane %v4853_v11, 2  ;;  %v1248_v15 = vshrl.u32 %v4853_v11, 16  ;;  %v2347_v51 = vpack.c.b16 %v4836_v60, %v4806_v20 }
 0x131   : > { %v1824_v57 = vpop.permute.xlu0 %1823  ;;  %v2187_v20 = vshrl.u32 %v4923_v56, 16  ;;  %v2190_v60 = vshll.u32 %v4923_v56, 16 }
 0x132   : > { %v2551_v25 = vsel %vm2549_vm12, %v4745_v4, %v1824_v57  ;;  %v1737_v57 = vsel %vm1550_vm5, %v1728_v18, %v1736_v55  ;;  %v797_v55 = vrot.slane %v795_v63, 1  ;;  %v1250_v18 = vrot.slane %v1248_v15, 1 }
 0x133   : > { %v2584_v40 = vsel %vm2582_vm14, %v2551_v25, %v1953_v0  ;;  %v1454_v0 = vsel %vm1421_vm1, %v1452_v12, %v1453_v45  ;;  %v3588_v25 = vld [vmem:[%s5530_s1 + $0xc] sm:$0xf0]  ;;  %v4933_v12 = vpack.c.b16 %v1045_v1, %v1045_v1  ;;  %v1242_v45 = vrot.slane %v1240_v21, 1 }
 0x134   : > { %v2617_v23 = vsel %vm2615_vm15, %v2584_v40, %v4772_v54  ;;  %2375 = vrot.lane.b32.xlu2 %v4688_v48, %s5538_s15  ;;  %v788_v48 = vshrl.u32 %v4790_v61, 16  ;;  %v1243_v40 = vshll.u32 %v4877_v8, 16  ;;  %v4925_v3 = vor.u32 %v3588_v25, %v3486_v13 }
 0x135   : > { %2947 = vmatpush.bf16.xpose.msra.mxu2 %v2617_v23  ;;  %v1251_v23 = vshll.u32 %v4853_v11, 16  ;;  %v2025_v11 = vpack.c.b16 %v2009_v24, %v2009_v24  ;;  %v970_v24 = vrot.slane %v4877_v8, 1  ;;  %v971_v13 = vrot.slane %v4862_v34, 1  ;;  %v451_v8 = vld [vmem:[%s3924_s18 + $0x6c] sm:$0xe] }
 0x136   : > { %1363 = vrot.lane.b32.xlu1 %v1272_v38, %s3820_s23  ;;  %v4874_v30 = vpop.permute.xlu2 %889  ;;  %v499_v38 = vld [vmem:[%s3924_s18 + $0x74] sm:$0x7]  ;;  %v793_v46 = vor.u32 %v792_v50, %v788_v48  ;;  %v2189_v50 = vrot.slane %v2187_v20, 3  ;;  %v2192_v1 = vrot.slane %v2190_v60, 4 }
 0x137   : > { %1010 = vrot.lane.b32.xlu0 %v975_v26, %s3819_s22  ;;  %v4914_v26 = vpack.c.b16 %v4884_v33, %v1398_v44  ;;  %v1527_v9 = vunpack.c.l.b16 %v499_v38  ;;  %v1253_v48 = vrot.slane %v1251_v23, 2  ;;  %v2195_v44 = vshrl.u32 %v2025_v11, 16 }
 0x138   : > { %v2354_v42 = vpop.permute.xlu1 %2353  ;;  %v2198_v35 = vshll.u32 %v2025_v11, 16  ;;  %v498_v11 = vld [vmem:[%s3924_s18 + $0x68] sm:$0x7]  ;;  %v2193_v20 = vor.u32 %v2192_v1, %v2189_v50 }
 0x139   : > { %v860_v39 = vpop.permute.xlu0 %859  ;;  %v2666_v41 = vsel %vm2664_vm9, %v4772_v54, %v2354_v42  ;;  %v2214_v54 = vrot.slane %v2212_v19, 3  ;;  %v1245_v19 = vrot.slane %v1243_v40, 2  ;;  %v1449_v42 = vrot.slane %v4914_v26, 2 }
 0x13a   : > { %v2387_v58 = vsel %vm2385_vm7, %v3728_v29, %v860_v39  ;;  %v2850_v36 = vsel %vm2837_vm10, %v2666_v41, 0  ;;  %v4947_v29 = vpack.c.b16 %v1527_v9, %v1527_v9  ;;  %v1705_v32 = vshrl.u32 %v4914_v26, 16 }
 0x13b   : > { %v2420_v53 = vsel %vm2418_vm8, %v2387_v58, %v4803_v52  ;;  %2976 = vmatpush.bf16.xpose.msra.mxu3 %v2850_v36  ;;  %v2218_v6 = vor.u32 %v2217_v49, %v2214_v54  ;;  %v3586_v58 = vld [vmem:[%s5530_s1 + $0x4] sm:$0xf]  ;;  %v1450_v36 = vrot.slane %v4933_v12, 2  ;;  %v1254_v54 = vor.u32 %v1253_v48, %v1250_v18  ;;  %v3510_v49 = vld [vmem:[%s5530_s1 + $0x28] sm:$0xf] }
 0x13c   : > { %2889 = vmatpush.bf16.xpose.msra.mxu0 %v2420_v53  ;;  %2948 = vmatmul.bf16.vlgmr.msra.gmra.mxu2 %v4879_v37  ;;  %v1708_v53 = vshll.u32 %v4914_v26, 16  ;;  %v1713_v43 = vshrl.u32 %v4947_v29, 16  ;;  %v2197_v21 = vrot.slane %v2195_v44, 3  ;;  %v2200_v40 = vrot.slane %v2198_v35, 4  ;;  %v3591_v48 = vld [vmem:[%s5530_s1 + $0x2c] sm:$0xf] }
 0x13d   : > { %1490 = vrot.lane.b32.xlu2 %v1454_v0, %s3817_s19  ;;  %v2219_v41 = vsel %vm2032_vm2, %v2210_v27, %v2218_v6  ;;  %v1246_v0 = vor.u32 %v1245_v19, %v1242_v45  ;;  %v4980_v26 = vunpack.c.h.b16 %v4957_v62  ;;  %v435_v27 = vld [vmem:[%s3924_s18 + $0x74] sm:$0x1]  ;;  %v1397_v6 = vunpack.c.l.b16 %v482_v47  ;;  %v4992_v45 = vld [vmem:[%s3924_s18 + $0x68] sm:$0xff]  }
 0x13e   : > { %1972 = vrot.lane.b32.xlu1 %v1936_v59, %s3816_s17  ;;  %v4929_v17 = vpop.permute.xlu2 %1371  ;;  %v1707_v34 = vrot.slane %v1705_v32, 2  ;;  %v1710_v9 = vrot.slane %v1708_v53, 3  ;;  %v972_v18 = vsel %vm939_vm3, %v970_v24, %v971_v13  ;;  %v2201_v60 = vor.u32 %v2200_v40, %v2197_v21  ;;  %v3592_v44 = vld [vmem:[%s5530_s1 + $0x2c] sm:$0xf0] }
 0x13f   : > { %1843 = vrot.lane.b32.xlu0 %v1737_v57, %s3821_s24  ;;  %v1716_v57 = vshll.u32 %v4947_v29, 16  ;;  %v2417_v35 = vsel %vm2385_vm7, %v4454_v2, %v4874_v30  ;;  %v1931_v2 = vrot.slane %v4923_v56, 3 }
 0x140   : > { %v4927_v59 = vpop.permute.xlu1 %1500  ;;  %v1711_v47 = vor.u32 %v1710_v9, %v1707_v34 }
 0x141   : > { %v1342_v10 = vpop.permute.xlu0 %1341  ;;  %v2581_v15 = vsel %vm2549_vm12, %v4927_v59, %v4833_v31  ;;  %v1255_v31 = vsel %vm1068_vm4, %v1246_v0, %v1254_v54 }
 0x142   : > { %v2469_v22 = vsel %vm2467_vm11, %v4803_v52, %v1342_v10  ;;  %3548 = vmatmul.msk.bf16.vlgmr.msra.gmra.mxu3 %vm2837_vm10, %v4919_v28  ;;  %v798_v52 = vsel %vm666_vm6, %v793_v46, %v797_v55  ;;  %v4987_v46 = vor.u32 %v3593_v7, %v3510_v49  ;;  %v1715_v10 = vrot.slane %v1713_v43, 2 }
 0x143   : > { %v2502_v39 = vsel %vm2500_vm13, %v2469_v22, %v4745_v4  ;;  %2890 = vmatmul.bf16.vlgmr.msra.gmra.mxu0 %v4925_v3  ;;  %v3488_v4 = vld [vmem:[%s5530_s1 + $0x10] sm:$0xf0]  ;;  %v1451_v22 = vsel %vm1421_vm1, %v1449_v42, %v1450_v36  ;;  %v3502_v42 = vld [vmem:[%s5530_s1 + $0x20] sm:$0xf]  ;;  %v588_v36 = vunpack.c.h.b16 %v4992_v45  ;;  %v2202_v49 = vsel %vm2032_vm2, %v2193_v20, %v2201_v60  ;;  %v3597_v20 = vld [vmem:[%s5530_s1 + $0x54] sm:$0xf0] }
 0x144   : > { %2918 = vmatpush.bf16.xpose.msra.mxu1 %v2502_v39  ;;  %v4973_v63 = vor.u32 %v3586_v58, %v3488_v4  ;;  %v3512_v39 = vld [vmem:[%s5530_s1 + $0x38] sm:$0xf0]  ;;  %v5015_v58 = vpack.c.b16 %v4980_v26, %v1397_v6  ;;  %v1526_v4 = vunpack.c.l.b16 %v498_v11  ;;  %v5025_v30 = vor.u32 %v3592_v44, %v3502_v42  ;;  %v3504_v11 = vld [vmem:[%s5530_s1 + $0x30] sm:$0xf0] }
 0x145   : > { %2325 = vrot.lane.b32.xlu2 %v2219_v41, %s3818_s21  ;;  %v643_v41 = vunpack.c.l.b16 %v435_v27  ;;  %v5021_v53 = vor.u32 %v3591_v48, %v3512_v39  ;;  %v5028_v0 = vpack.c.b16 %v4884_v33, %v588_v36  ;;  %v1932_v7 = vrot.slane %v4947_v29, 3  ;;  %v514_v27 = vld [vmem:[%s3924_s18 + $0x60] sm:$0x8] }
 0x146   : > { %2373 = vrot.lane.b32.xlu1 %v2347_v51, %s5538_s15  ;;  %v4977_v38 = vpop.permute.xlu2 %1980  ;;  %v1718_v51 = vrot.slane %v1716_v57, 3  ;;  %v5040_v1 = vpack.c.b16 %v1526_v4, %v1526_v4  ;;  %v1688_v40 = vshrl.u32 %v5015_v58, 16  ;;  %v1691_v34 = vshll.u32 %v5015_v58, 16  ;;  %v3526_v39 = vld [vmem:[%s5530_s1 + $0x48] sm:$0xf]  ;;  %s5543_s15 = smov 54  }
 0x147   : > { %879 = vrot.lane.b32.xlu0 %v798_v52, %s5540_s25  ;;  %v916_v52 = vunpack.c.l.b16 %v451_v8  ;;  %v659_v43 = vpack.c.b16 %v643_v41, %v643_v41  ;;  %v778_v21 = vshll.u32 %v5028_v0, 16  ;;  %v776_v8 = vshrl.u32 %v5028_v0, 16  ;;  %s5544_s25 = smov 48  }
 0x148   : > { %v2336_v25 = vpop.permute.xlu1 %2335  ;;  %v1719_v32 = vor.u32 %v1718_v51, %v1715_v10  ;;  %v1696_v51 = vshrl.u32 %v5040_v1, 16  ;;  %v1879_v48 = vunpack.c.l.b16 %v514_v27  ;;  %v1693_v4 = vrot.slane %v1691_v34, 3  ;;  %v3518_v27 = vld [vmem:[%s5530_s1 + $0x40] sm:$0xf] }
 0x149   : > { %v1983_v23 = vpop.permute.xlu0 %1982  ;;  %v5033_v57 = vpack.c.b16 %v4884_v33, %v916_v52  ;;  %v783_v6 = vshll.u32 %v659_v43, 16  ;;  %v968_v10 = vrot.slane %v659_v43, 1  ;;  %v766_v34 = vshll.u32 %v4957_v62, 16 }
 0x14a   : > { %v2614_v55 = vsel %vm2582_vm14, %v2581_v15, %v1983_v23  ;;  %v466_v15 = vld [vmem:[%s3924_s18 + $0x68] sm:$0x3]  ;;  %v1720_v23 = vsel %vm1550_vm5, %v1711_v47, %v1719_v32  ;;  %v5085_v47 = vunpack.c.l.b16 %v4992_v45  ;;  %v1231_v32 = vshrl.u32 %v4933_v12, 16  ;;  %v3595_v45 = vld [vmem:[%s5530_s1 + $0x4c] sm:$0xf] }
 0x14b   : > { %v2662_v19 = vsel %vm2615_vm15, %v2614_v55, %v2336_v25  ;;  %2919 = vmatmul.bf16.vlgmr.msra.gmra.mxu1 %v4973_v63  ;;  %v3590_v55 = vld [vmem:[%s5530_s1 + $0x24] sm:$0xf]  ;;  %v967_v9 = vrot.slane %v5033_v57, 1  ;;  %v1223_v60 = vshrl.u32 %v5033_v57, 16  ;;  %v785_v42 = vrot.slane %v783_v6, 1 }
 0x14c   : > { %3056 = vmatpush.bf16.xpose.msrb.mxu2 %v2662_v19  ;;  %v1699_v19 = vshll.u32 %v5040_v1, 16  ;;  %v5079_v41 = vor.u32 %v3590_v55, %v3504_v11  ;;  %v1226_v44 = vshll.u32 %v5033_v57, 16 }
 0x14d   : > { %2953 = vmatmul.bf16.gmra.mxu2 %v4987_v46  ;;  %1008 = vrot.lane.b32.xlu2 %v972_v18, %s3819_s22  ;;  %v1044_v18 = vunpack.c.l.b16 %v466_v15  ;;  %v969_v57 = vsel %vm939_vm3, %v967_v9, %v968_v10  ;;  %v3528_v15 = vld [vmem:[%s5530_s1 + $0x58] sm:$0xf0] }
 0x14e   : > { %1488 = vrot.lane.b32.xlu1 %v1451_v22, %s3817_s19  ;;  %v5035_v50 = vpop.permute.xlu2 %2381  ;;  %v434_v22 = vld [vmem:[%s3924_s18 + $0x68] sm:$0x1]  ;;  %v5126_v10 = vor.u32 %v3595_v45, %v3528_v15  ;;  %v3594_v45 = vld [vmem:[%s5530_s1 + $0x44] sm:$0xf] }
 0x14f   : > { %1361 = vrot.lane.b32.xlu0 %v1255_v31, %s3820_s23  ;;  %v5068_v31 = vrot.slane %v1688_v40, 2  ;;  %v642_v43 = vunpack.c.l.b16 %v434_v22 }
 0x150   : > { %v1019_v54 = vpop.permute.xlu1 %1018 }
 0x151   : > { %v2384_v24 = vpop.permute.xlu0 %2383  ;;  %v2499_v56 = vsel %vm2467_vm11, %v1019_v54, %v4929_v17  ;;  %v2465_v13 = vsel %vm2418_vm8, %v2417_v35, %v1019_v54 }
 0x152   : > { %2998 = vmatpush.bf16.xpose.msrb.mxu0 %v2465_v13  ;;  %v2547_v29 = vsel %vm2500_vm13, %v2499_v56, %v4927_v59  ;;  %v2696_v33 = vsel %vm2664_vm9, %v2336_v25, %v2384_v24  ;;  %3549 = vmatmul.msk.bf16.gmra.mxu3 %vm2837_vm10, %v5021_v53  ;;  %v780_v59 = vrot.slane %v778_v21, 1  ;;  %v1933_v25 = vsel %vm1903_vm0, %v1931_v2, %v1932_v7  ;;  %v450_v13 = vld [vmem:[%s3924_s18 + $0x60] sm:$0xe] }
 0x153   : > { %3027 = vmatpush.bf16.xpose.msrb.mxu1 %v2547_v29  ;;  %v2880_v17 = vsel %vm2837_vm10, %v2696_v33, 0  ;;  %2895 = vmatmul.bf16.gmra.mxu0 %v5025_v30  ;;  %v1234_v2 = vshll.u32 %v4933_v12, 16  ;;  %v1701_v7 = vrot.slane %v1699_v19, 3  ;;  %v5091_v24 = vor.u32 %v3597_v20, %v3526_v39 }
 0x154   : > { %3085 = vmatpush.bf16.xpose.msrb.mxu3 %v2880_v17  ;;  %v781_v52 = vor.u32 %v780_v59, %v776_v8  ;;  %v5095_v56 = vpack.c.b16 %v4980_v26, %v1879_v48  ;;  %v1225_v21 = vrot.slane %v1223_v60, 1  ;;  %v1228_v29 = vrot.slane %v1226_v44, 2  ;;  %v3596_v8 = vld [vmem:[%s5530_s1 + $0x4c] sm:$0xf0] }
 0x155   : > { %1841 = vrot.lane.b32.xlu2 %v1720_v23, %s3821_s24  ;;  %v1233_v33 = vrot.slane %v1231_v32, 1  ;;  %v1236_v40 = vrot.slane %v1234_v2, 2  ;;  %v5106_v23 = vpack.c.b16 %v1044_v18, %v1044_v18  ;;  %v2024_v17 = vpack.c.b16 %v5085_v47, %v5085_v47 }
 0x156   : > { %2323 = vrot.lane.b32.xlu1 %v2202_v49, %s3818_s21  ;;  %v5082_v36 = vpop.permute.xlu2 %1496  ;;  %v1698_v49 = vrot.slane %v1696_v51, 2  ;;  %v786_v12 = vsel %vm666_vm6, %v781_v52, %v785_v42  ;;  %v1694_v59 = vor.u32 %v1693_v4, %v5068_v31  ;;  %v2170_v11 = vshrl.u32 %v5095_v56, 16 }
 0x157   : > { %1970 = vrot.lane.b32.xlu0 %v1933_v25, %s3816_s17  ;;  %v5117_v25 = vpack.c.b16 %v642_v43, %v642_v43  ;;  %v915_v9 = vunpack.c.l.b16 %v450_v13  ;;  %v2173_v51 = vshll.u32 %v5095_v56, 16  ;;  %v1229_v19 = vor.u32 %v1228_v29, %v1225_v21 }
 0x158   : > { %v1852_v35 = vpop.permute.xlu1 %1851  ;;  %v1702_v6 = vor.u32 %v1701_v7, %v1698_v49  ;;  %v1237_v22 = vor.u32 %v1236_v40, %v1233_v33  ;;  %v5131_v31 = vor.u32 %v3596_v8, %v3518_v27  ;;  %v1446_v48 = vrot.slane %v5015_v58, 2  ;;  %v3542_v27 = vld [vmem:[%s5530_s1 + $0x68] sm:$0xf]  ;;  %v3601_v8 = vld [vmem:[%s5530_s1 + $0x74] sm:$0xf0] }
 0x159   : > { %v5089_v54 = vpop.permute.xlu0 %1498  ;;  %v1447_v39 = vrot.slane %v5106_v23, 2  ;;  %v2178_v20 = vshrl.u32 %v2024_v17, 16  ;;  %v2181_v60 = vshll.u32 %v2024_v17, 16  ;;  %v771_v4 = vshll.u32 %v5117_v25, 16 }
 0x15a   : > { %v2579_v55 = vsel %vm2549_vm12, %v5089_v54, %v1852_v35  ;;  %v768_v35 = vrot.slane %v766_v34, 1  ;;  %v1703_v2 = vsel %vm1550_vm5, %v1694_v59, %v1702_v6  ;;  %v5146_v49 = vpack.c.b16 %v4980_v26, %v915_v9 }
 0x15b   : > { %2924 = vmatmul.bf16.gmra.mxu1 %v5079_v41  ;;  %v2612_v42 = vsel %vm2582_vm14, %v2579_v55, %v4977_v38  ;;  %v2172_v7 = vrot.slane %v2170_v11, 3  ;;  %v2175_v43 = vrot.slane %v2173_v51, 4  ;;  %v2180_v13 = vrot.slane %v2178_v20, 3 }
 0x15c   : > { %v2183_v21 = vrot.slane %v2181_v60, 4  ;;  %v773_v33 = vrot.slane %v771_v4, 1  ;;  %v1214_v40 = vshrl.u32 %v5106_v23, 16  ;;  %v1206_v15 = vshrl.u32 %v5146_v49, 16  ;;  %v3599_v4 = vld [vmem:[%s5530_s1 + $0x6c] sm:$0xf] }
 0x15d   : > { %2958 = vmatmul.bf16.gmra.mxu2 %v5091_v24  ;;  %877 = vrot.lane.b32.xlu2 %v786_v12, %s5543_s15  ;;  %v3520_v12 = vld [vmem:[%s5530_s1 + $0x50] sm:$0xf0]  ;;  %v1217_v17 = vshll.u32 %v5106_v23, 16  ;;  %v1209_v59 = vshll.u32 %v5146_v49, 16  ;;  %v1928_v34 = vrot.slane %v5095_v56, 3  ;;  %v1929_v23 = vrot.slane %v5040_v1, 3 }
 0x15e   : > { %1006 = vrot.lane.b32.xlu1 %v969_v57, %s3819_s22  ;;  %v5135_v52 = vpop.permute.xlu2 %2331  ;;  %v1238_v57 = vsel %vm1068_vm4, %v1229_v19, %v1237_v22  ;;  %v5173_v6 = vor.u32 %v3594_v45, %v3520_v12  ;;  %v2176_v11 = vor.u32 %v2175_v43, %v2172_v7  ;;  %v2184_v9 = vor.u32 %v2183_v21, %v2180_v13  ;;  %v3729_v19 = vld [vmem:[%s3924_s18 + $0xa8] sm:$0xff]  }
 0x15f   : > { %2371 = vrot.lane.b32.xlu0 %v4851_v14, %s5544_s25  ;;  %v764_v14 = vshrl.u32 %v4957_v62, 16  ;;  %v5182_v20 = vor.u32 %v3601_v8, %v3542_v27  ;;  %v1216_v56 = vrot.slane %v1214_v40, 1  ;;  %v964_v13 = vrot.slane %v5146_v49, 1 }
 0x160   : > { %v888_v18 = vpop.permute.xlu1 %887  ;;  %v965_v21 = vrot.slane %v5117_v25, 1 }
 0x161   : > { %v2334_v44 = vpop.permute.xlu0 %2333  ;;  %v769_v29 = vor.u32 %v768_v35, %v764_v14  ;;  %v2415_v22 = vsel %vm2385_vm7, %v3729_v19, %v888_v18  ;;  %v1208_v14 = vrot.slane %v1206_v15, 1  ;;  %v1211_v35 = vrot.slane %v1209_v59, 2  ;;  %v2717_v19 = vld [vmem:[%s5531_s2 + $0x20] sm:$0xff] }
 0x162   : > { %v2659_v32 = vsel %vm2615_vm15, %v2612_v42, %v2334_v44  ;;  %v2694_v58 = vsel %vm2664_vm9, %v2334_v44, %v5035_v50  ;;  %3550 = vmatmul.msk.bf16.gmra.mxu3 %vm2837_vm10, %v5126_v10  ;;  %v1448_v50 = vsel %vm1421_vm1, %v1446_v48, %v1447_v39  ;;  %v1219_v44 = vrot.slane %v1217_v17, 2  ;;  %v3598_v17 = vld [vmem:[%s5530_s1 + $0x64] sm:$0xf] }
 0x163   : > { %3057 = vmatpush.bf16.xpose.msrb.mxu2 %v2659_v32  ;;  %v2878_v38 = vsel %vm2837_vm10, %v2694_v58, 0  ;;  %2900 = vmatmul.bf16.gmra.mxu0 %v5131_v31  ;;  %v774_v39 = vsel %vm666_vm6, %v769_v29, %v773_v33  ;;  %v1930_v18 = vsel %vm1903_vm0, %v1928_v34, %v1929_v23  ;;  %v3544_v32 = vld [vmem:[%s5530_s1 + $0x78] sm:$0xf0]  ;;  %v2185_v58 = vsel %vm2032_vm2, %v2176_v11, %v2184_v9 }
 0x164   : > { %3086 = vmatpush.bf16.xpose.msrb.mxu3 %v2878_v38  ;;  %v5206_v38 = vor.u32 %v3599_v4, %v3544_v32  ;;  %v1212_v7 = vor.u32 %v1211_v35, %v1208_v14  ;;  %v1220_v43 = vor.u32 %v1219_v44, %v1216_v56  ;;  %v2345_v33 = vpack.c.b16 %v5085_v47, %v4980_v26  ;;  %v3536_v26 = vld [vmem:[%s5530_s1 + $0x70] sm:$0xf0]  ;;  %v2713_v56 = vld [vmem:[%s5531_s2] sm:$0xff]  ;;  %v3730_v32 = vld [vmem:[%s3924_s18 + $0x90] sm:$0xff]   ;;  %s3584_s18 = sshll.u32 %s5553_s30, 3 }
 0x165   : > { %1359 = vrot.lane.b32.xlu2 %v1238_v57, %s3820_s23  ;;  %v966_v49 = vsel %vm939_vm3, %v964_v13, %v965_v21  ;;  %v3823_v47 = vmov 0   ;;  %v5234_v27 = vor.u32 %v3598_v17, %v3536_v26  ;;  %v2719_v4 = vld [vmem:[%s5531_s2 + $0x30] sm:$0xff]  ;;  %vm3214_vm0 = vcmask 523264   ;;  %s391_s20 = scalar_lea.vmem %s5537_s8, %s3584_s18 }
 0x166   : > { %1839 = vrot.lane.b32.xlu1 %v1703_v2, %s3821_s24  ;;  %v5177_v51 = vpop.permute.xlu2 %1014  ;;  %v3600_v2 = vld [vmem:[%s5530_s1 + $0x6c] sm:$0xf0]  ;;  %v1221_v15 = vsel %vm1068_vm4, %v1212_v7, %v1220_v43  ;;  %3722 = vset.pattern.permute.xlu2 %v3823_v47  ;;  %vm3357_vm1 = vcmask 1043456  }
 0x167   : > { %1486 = vrot.lane.b32.xlu0 %v1448_v50, %s3817_s19  ;;  %3724 = vset.pattern.permute.xlu1 %v3823_v47 }
 0x168   : > { %v1370_v55 = vpop.permute.xlu1 %1369  ;;  %3723 = vset.pattern.permute.xlu0 %v3823_v47 }
 0x169   : > { %v1017_v48 = vpop.permute.xlu0 %1016 }
 0x16a   : > { %v2497_v60 = vsel %vm2467_vm11, %v1017_v48, %v1370_v55  ;;  %v2462_v42 = vsel %vm2418_vm8, %v2415_v22, %v1017_v48 }
 0x16b   : > { %2999 = vmatpush.bf16.xpose.msrb.mxu0 %v2462_v42  ;;  %v2544_v1 = vsel %vm2500_vm13, %v2497_v60, %v5089_v54  ;;  %2929 = vmatmul.bf16.gmra.mxu1 %v5173_v6  ;;  %v3534_v54 = vld [vmem:[%s5530_s1 + $0x60] sm:$0xf]  ;;  %v2715_v42 = vld [vmem:[%s5531_s2 + $0x10] sm:$0xff] }
 0x16c   : > { %3028 = vmatpush.bf16.xpose.msrb.mxu1 %v2544_v1  ;;  %v5209_v57 = vor.u32 %v3600_v2, %v3534_v54 }
 0x16d   : > { %2963 = vmatmul.bf16.gmra.mxu2 %v5182_v20  ;;  %1968 = vrot.lane.b32.xlu2 %v1930_v18, %s3816_s17  ;;  %v2714_v18 = vld [vmem:[%s5531_s2 + $0x8] sm:$0xff] }
 0x16e   : > { %875 = vrot.lane.b32.xlu1 %v774_v39, %s5543_s15  ;;  %v1848_v45 = vpop.permute.xlu2 %1847 }
 0x16f   : > { %2321 = vrot.lane.b32.xlu0 %v2185_v58, %s3818_s21 }
 0x170   : > { %v1979_v50 = vpop.permute.xlu1 %1978 }
 0x171   : > { %v1850_v12 = vpop.permute.xlu0 %1849 }
 0x172   : > { %v2577_v29 = vsel %vm2549_vm12, %v5082_v36, %v1850_v12  ;;  %3551 = vmatmul.msk.bf16.gmra.mxu3 %vm2837_vm10, %v5206_v38 }
 0x173   : > { %v2610_v40 = vsel %vm2582_vm14, %v2577_v29, %v1979_v50  ;;  %2905 = vmatmul.bf16.gmra.mxu0 %v5209_v57 }
 0x174   : > { %v2656_v25 = vsel %vm2615_vm15, %v2610_v40, %v5135_v52 }
 0x175   : > { %3058 = vmatpush.bf16.xpose.msrb.mxu2 %v2656_v25  ;;  %2369 = vrot.lane.b32.xlu2 %v2345_v33, %s5544_s25  ;;  %s381_s25 = scalar_lea.vmem %s5536_s7, %s3584_s18 }
 0x176   : > { %1357 = vrot.lane.b32.xlu1 %v1221_v15, %s3820_s23  ;;  %v884_v59 = vpop.permute.xlu2 %883  ;;  %v2716_v15 = vld [vmem:[%s5531_s2 + $0x18] sm:$0xff] }
 0x177   : > { %1004 = vrot.lane.b32.xlu0 %v966_v49, %s3819_s22  ;;  %v2411_v58 = vsel %vm2385_vm7, %v3730_v32, %v884_v59 }
 0x178   : > { %v2380_v8 = vpop.permute.xlu1 %2379 }
 0x179   : > { %v886_v34 = vpop.permute.xlu0 %885  ;;  %v2692_v23 = vsel %vm2664_vm9, %v5135_v52, %v2380_v8  ;;  %v2720_v52 = vld [vmem:[%s5531_s2 + $0x38] sm:$0xff] }
 0x17a   : > { %v2413_v55 = vsel %vm2385_vm7, %v4594_v5, %v886_v34  ;;  %v2876_v11 = vsel %vm2837_vm10, %v2692_v23, 0 }
 0x17b   : > { %v2459_v9 = vsel %vm2418_vm8, %v2413_v55, %v5177_v51  ;;  %3087 = vmatpush.bf16.xpose.msrb.mxu3 %v2876_v11  ;;  %2934 = vmatmul.bf16.gmra.mxu1 %v5234_v27 }
 0x17c   : > { %3000 = vmatpush.bf16.xpose.msrb.mxu0 %v2459_v9 }
 0x17d   : > { %2753 = vperm.xlu2 %3722, %v2719_v4  }
 0x17e   : > { %2743 = vperm.xlu1 %3724, %v2717_v19   ;;  %v1366_v22 = vpop.permute.xlu2 %1365 }
 0x17f   : > { %2758 = vperm.xlu0 %3723, %v2720_v52  }
 0x180   : > { %v1495_v5 = vpop.permute.xlu1 %1494 }
 0x181   : > { %v1368_v48 = vpop.permute.xlu0 %1367  ;;  %v2575_v14 = vsel %vm2549_vm12, %v1495_v5, %v1848_v45  ;;  %v2718_v45 = vld [vmem:[%s5531_s2 + $0x28] sm:$0xff] }
 0x182   : > { %v2495_v39 = vsel %vm2467_vm11, %v5177_v51, %v1368_v48 }
 0x183   : > { %v2541_v60 = vsel %vm2500_vm13, %v2495_v39, %v5082_v36 }
 0x184   : > { %3029 = vmatpush.bf16.xpose.msrb.mxu1 %v2541_v60 }
 0x185   : > { %2748 = vperm.xlu2 %3722, %v2718_v45  }
 0x186   : > { %2733 = vperm.xlu1 %3724, %v2715_v42   ;;  %v1975_v1 = vpop.permute.xlu2 %1974 }
 0x187   : > { %2723 = vperm.xlu0 %3723, %v2713_v56  }
 0x188   : > { %v2330_v44 = vpop.permute.xlu1 %2329 }
 0x189   : > { %v1977_v51 = vpop.permute.xlu0 %1976 }
 0x18a   : > { %v2608_v35 = vsel %vm2582_vm14, %v2575_v14, %v1977_v51 }
 0x18b   : > { %v2653_v36 = vsel %vm2615_vm15, %v2608_v35, %v2330_v44 }
 0x18c   : > { %3059 = vmatpush.bf16.xpose.msrb.mxu2 %v2653_v36 }
 0x18d   : > { %2738 = vperm.xlu2 %3722, %v2716_v15  }
 0x18e   : > { %2728 = vperm.xlu1 %3724, %v2714_v18   ;;  %v2376_v2 = vpop.permute.xlu2 %2375 }
 0x190   : > { %v1013_v54 = vpop.permute.xlu1 %1012 }
 0x191   : > { %v2378_v7 = vpop.permute.xlu0 %2377  ;;  %v2493_v43 = vsel %vm2467_vm11, %v1013_v54, %v1366_v22  ;;  %v2456_v50 = vsel %vm2418_vm8, %v2411_v58, %v1013_v54 }
 0x192   : > { %3001 = vmatpush.bf16.xpose.msrb.mxu0 %v2456_v50  ;;  %v2538_v13 = vsel %vm2500_vm13, %v2493_v43, %v1495_v5  ;;  %v2690_v21 = vsel %vm2664_vm9, %v2330_v44, %v2378_v7 }
 0x193   : > { %3030 = vmatpush.bf16.xpose.msrb.mxu1 %v2538_v13  ;;  %v2874_v12 = vsel %vm2837_vm10, %v2690_v21, 0 }
 0x194   : > { %3088 = vmatpush.bf16.xpose.msrb.mxu3 %v2874_v12 }
 0x197   : > { %v1491_v33 = vpop.permute.xlu2 %1490 }
 0x198   : > { %v1846_v29 = vpop.permute.xlu1 %1845 }
 0x199   : > { %v1493_v40 = vpop.permute.xlu0 %1492 }
 0x19a   : > { %v2573_v25 = vsel %vm2549_vm12, %v1493_v40, %v1846_v29 }
 0x19b   : > { %v2606_v17 = vsel %vm2582_vm14, %v2573_v25, %v1975_v1 }
 0x19f   : > { %v2326_v59 = vpop.permute.xlu2 %2325 }
 0x1a0   : > { %v882_v49 = vpop.permute.xlu1 %881 }
 0x1a1   : > { %v2328_v26 = vpop.permute.xlu0 %2327  ;;  %v2409_v55 = vsel %vm2385_vm7, %v4751_v16, %v882_v49 }
 0x1a2   : > { %v2650_v47 = vsel %vm2615_vm15, %v2606_v17, %v2328_v26  ;;  %v2688_v8 = vsel %vm2664_vm9, %v2328_v26, %v2376_v2 }
 0x1a3   : > { %3060 = vmatpush.bf16.xpose.msrb.mxu2 %v2650_v47  ;;  %v2872_v34 = vsel %vm2837_vm10, %v2688_v8, 0 }
 0x1a4   : > { %3089 = vmatpush.bf16.xpose.msrb.mxu3 %v2872_v34 }
 0x1a7   : > { %v1009_v5 = vpop.permute.xlu2 %1008 }
 0x1a8   : > { %v1364_v23 = vpop.permute.xlu1 %1363 }
 0x1a9   : > { %v1011_v11 = vpop.permute.xlu0 %1010 }
 0x1aa   : > { %v2491_v9 = vsel %vm2467_vm11, %v1011_v11, %v1364_v23  ;;  %v2453_v19 = vsel %vm2418_vm8, %v2409_v55, %v1011_v11 }
 0x1ab   : > { %3002 = vmatpush.bf16.xpose.msrb.mxu0 %v2453_v19  ;;  %v2535_v52 = vsel %vm2500_vm13, %v2491_v9, %v1493_v40 }
 0x1ac   : > { %3031 = vmatpush.bf16.xpose.msrb.mxu1 %v2535_v52 }
 0x1af   : > { %v1842_v16 = vpop.permute.xlu2 %1841 }
 0x1b0   : > { %v1973_v22 = vpop.permute.xlu1 %1972 }
 0x1b1   : > { %v1844_v48 = vpop.permute.xlu0 %1843 }
 0x1b2   : > { %v2571_v39 = vsel %vm2549_vm12, %v1491_v33, %v1844_v48 }
 0x1b3   : > { %v2604_v60 = vsel %vm2582_vm14, %v2571_v39, %v1973_v22 }
 0x1b4   : > { %v2647_v42 = vsel %vm2615_vm15, %v2604_v60, %v2326_v59 }
 0x1b5   : > { %3061 = vmatpush.bf16.xpose.msrb.mxu2 %v2647_v42 }
 0x1b7   : > { %v878_v4 = vpop.permute.xlu2 %877 }
 0x1b8   : > { %v2374_v56 = vpop.permute.xlu1 %2373  ;;  %v2405_v15 = vsel %vm2385_vm7, %v5028_v0, %v878_v4 }
 0x1b9   : > { %v880_v44 = vpop.permute.xlu0 %879  ;;  %v2686_v1 = vsel %vm2664_vm9, %v2326_v59, %v2374_v56 }
 0x1ba   : > { %v2407_v14 = vsel %vm2385_vm7, %v4790_v61, %v880_v44  ;;  %v2870_v51 = vsel %vm2837_vm10, %v2686_v1, 0 }
 0x1bb   : > { %v2450_v35 = vsel %vm2418_vm8, %v2407_v14, %v1009_v5  ;;  %3090 = vmatpush.bf16.xpose.msrb.mxu3 %v2870_v51 }
 0x1bc   : > { %3003 = vmatpush.bf16.xpose.msrb.mxu0 %v2450_v35 }
 0x1bf   : > { %v5300_v36 = vpop.f32.mrf.mxu2  ;;  %v1360_v12 = vpop.permute.xlu2 %1359 }
 0x1c0   : > { %v1489_v18 = vpop.permute.xlu1 %1488  ;;  %v5302_v58 = vpop.f32.mrf.mxu0 }
 0x1c1   : > { %v1362_v32 = vpop.permute.xlu0 %1361  ;;  %v2569_v13 = vsel %vm2549_vm12, %v1489_v18, %v1842_v16 }
 0x1c2   : > { %v2489_v54 = vsel %vm2467_vm11, %v1009_v5, %v1362_v32 }
 0x1c3   : > { %v2532_v2 = vsel %vm2500_vm13, %v2489_v54, %v1491_v33 }
 0x1c4   : > { %3032 = vmatpush.bf16.xpose.msrb.mxu1 %v2532_v2 }
 0x1c5   : > { %v5306_v7 = vpop.f32.mrf.mxu3 }
 0x1c7   : > { %v5308_v61 = vpop.f32.mrf.mxu2  ;;  %v1969_v55 = vpop.permute.xlu2 %1968 }
 0x1c8   : > { %v2324_v43 = vpop.permute.xlu1 %2323  ;;  %v5310_v50 = vpop.f32.mrf.mxu1 }
 0x1c9   : > { %v1971_v21 = vpop.permute.xlu0 %1970  ;;  %v5314_v29 = vpop.f32.mrf.mxu0 }
 0x1ca   : > { %v2602_v45 = vsel %vm2582_vm14, %v2569_v13, %v1971_v21 }
 0x1cb   : > { %v2644_v40 = vsel %vm2615_vm15, %v2602_v45, %v2324_v43 }
 0x1cc   : > { %3062 = vmatpush.bf16.xpose.msrb.mxu2 %v2644_v40 }
 0x1cd   : > { %v5317_v33 = vpop.f32.mrf.mxu3 }
 0x1cf   : > { %v2370_v60 = vpop.permute.xlu2 %2369 }
 0x1d0   : > { %v1007_v25 = vpop.permute.xlu1 %1006  ;;  %v5321_v49 = vpop.f32.mrf.mxu1 }
 0x1d1   : > { %v2372_v17 = vpop.permute.xlu0 %2371  ;;  %v2487_v26 = vsel %vm2467_vm11, %v1007_v25, %v1360_v12  ;;  %v2447_v47 = vsel %vm2418_vm8, %v2405_v15, %v1007_v25  ;;  %v5327_v34 = vpop.f32.mrf.mxu0 }
 0x1d2   : > { %3004 = vmatpush.bf16.xpose.msrb.mxu0 %v2447_v47  ;;  %v2529_v8 = vsel %vm2500_vm13, %v2487_v26, %v1489_v18  ;;  %v2684_v59 = vsel %vm2664_vm9, %v2324_v43, %v2372_v17  ;;  %v5329_v23 = vpop.f32.mrf.mxu2 }
 0x1d3   : > { %3033 = vmatpush.bf16.xpose.msrb.mxu1 %v2529_v8  ;;  %v2868_v0 = vsel %vm2837_vm10, %v2684_v59, 0 }
 0x1d4   : > { %3091 = vmatpush.bf16.xpose.msrb.mxu3 %v2868_v0 }
 0x1d5   : > { %v5332_v11 = vpop.f32.mrf.mxu3 }
 0x1d7   : > { %v5345_v32 = vpop.permute.xlu2 %2753 }
 0x1d8   : > { %v1840_v9 = vpop.permute.xlu1 %1839  ;;  %v5334_v19 = vpop.f32.mrf.mxu1 }
 0x1d9   : > { %v1487_v52 = vpop.permute.xlu0 %1486  ;;  %v2898_v5 = vpop.f32.mrf.mxu0 }
 0x1da   : > { %v5336_v22 = vpop.f32.mrf.mxu2  ;;  %v2567_v39 = vsel %vm2549_vm12, %v1487_v52, %v1840_v9 }
 0x1db   : > { %v2600_v56 = vsel %vm2582_vm14, %v2567_v39, %v1969_v55 }
 0x1dd   : > { %v5338_v48 = vpop.f32.mrf.mxu3 }
 0x1df   : > { %v5355_v17 = vpop.permute.xlu2 %2748 }
 0x1e0   : > { %v876_v42 = vpop.permute.xlu1 %875  ;;  %v2927_v16 = vpop.f32.mrf.mxu1 }
 0x1e1   : > { %v2322_v44 = vpop.permute.xlu0 %2321  ;;  %v2901_v51 = vpop.f32.mrf.mxu0  ;;  %v2403_v43 = vsel %vm2385_vm7, %v4957_v62, %v876_v42 }
 0x1e2   : > { %v2641_v1 = vsel %vm2615_vm15, %v2600_v56, %v2322_v44  ;;  %v2682_v14 = vsel %vm2664_vm9, %v2322_v44, %v2370_v60  ;;  %v2959_v35 = vpop.f32.mrf.mxu2 }
 0x1e3   : > { %3063 = vmatpush.bf16.xpose.msrb.mxu2 %v2641_v1  ;;  %v2866_v18 = vsel %vm2837_vm10, %v2682_v14, 0 }
 0x1e4   : > { %3092 = vmatpush.bf16.xpose.msrb.mxu3 %v2866_v18 }
 0x1e5   : > { %v2988_v4 = vpop.f32.mrf.mxu3 }
 0x1e7   : > { %v5366_v9 = vpop.permute.xlu2 %2738 }
 0x1e8   : > { %v1358_v54 = vpop.permute.xlu1 %1357  ;;  %v2930_v2 = vpop.f32.mrf.mxu1  ;;  %v2899_v14 = vadd.f32 %v2898_v5, %v5366_v9 }
 0x1e9   : > { %v1005_v13 = vpop.permute.xlu0 %1004  ;;  %v2903_v12 = vpop.f32.mrf.mxu0 }
 0x1ea   : > { %v2485_v21 = vsel %vm2467_vm11, %v1005_v13, %v1358_v54  ;;  %3064 = vmatmul.bf16.vlgmr.msrb.gmra.mxu2 %v4879_v37  ;;  %v2444_v45 = vsel %vm2418_vm8, %v2403_v43, %v1005_v13  ;;  %v2961_v15 = vpop.f32.mrf.mxu2  ;;  %v2904_v0 = vadd.f32 %v2903_v12, %v5355_v17 }
 0x1eb   : > { %3005 = vmatpush.bf16.xpose.msrb.mxu0 %v2444_v45  ;;  %3552 = vmatmul.msk.bf16.vlgmr.msrb.gmra.mxu3 %vm2837_vm10, %v4919_v28  ;;  %v2526_v40 = vsel %vm2500_vm13, %v2485_v21, %v1487_v52  ;;  %v2928_v21 = vadd.f32 %v2927_v16, %v2899_v14 }
 0x1ec   : > { %3034 = vmatpush.bf16.xpose.msrb.mxu1 %v2526_v40 }
 0x1ed   : > { %v2990_v25 = vpop.f32.mrf.mxu3 }
 0x1f0   : > { %v2932_v62 = vpop.f32.mrf.mxu1  ;;  %v5357_v26 = vpop.permute.xlu1 %2743 }
 0x1f1   : > { %v5359_v47 = vpop.permute.xlu0 %2758  ;;  %v2906_v37 = vpop.f32.mrf.mxu0  ;;  %v2902_v59 = vadd.f32 %v2901_v51, %v5357_v26  ;;  %v2933_v56 = vadd.f32 %v2932_v62, %v2904_v0  ;;  %v2957_v62 = vadd.f32 %v5336_v22, %v2928_v21 }
 0x1f2   : > { %3006 = vmatmul.bf16.vlgmr.msrb.gmra.mxu0 %v4925_v3  ;;  %v2907_v8 = vadd.f32 %v2906_v37, %v5345_v32  ;;  %v2964_v28 = vpop.f32.mrf.mxu2 }
 0x1f3   : > { %3035 = vmatmul.bf16.vlgmr.msrb.gmra.mxu1 %v4973_v63  ;;  %v2931_v3 = vadd.f32 %v2930_v2, %v2902_v59  ;;  %v2962_v2 = vadd.f32 %v2961_v15, %v2933_v56  ;;  %v3148_v59 = vld [vmem:[%s5533_s4 + $0x10] sm:$0xff] }
 0x1f5   : > { %v2993_v55 = vpop.f32.mrf.mxu3  ;;  %v2991_v16 = vadd.f32 %v2990_v25, %v2962_v2 }
 0x1f8   : > { %v2935_v52 = vpop.f32.mrf.mxu1  ;;  %v5368_v39 = vpop.permute.xlu1 %2733 }
 0x1f9   : > { %v2936_v60 = vadd.f32 %v2935_v52, %v2907_v8  ;;  %v5370_v42 = vpop.permute.xlu0 %2723  ;;  %v2908_v63 = vpop.f32.mrf.mxu0  ;;  %v2897_v1 = vadd.f32 %v5327_v34, %v5368_v39  ;;  %v3150_v34 = vld [vmem:[%s5533_s4 + $0x20] sm:$0xff] }
 0x1fa   : > { %3069 = vmatmul.bf16.gmra.mxu2 %v4987_v46  ;;  %v2892_v44 = vadd.f32 %v5302_v58, %v5370_v42  ;;  %v2909_v54 = vadd.f32 %v2908_v63, %v5359_v47  ;;  %v2960_v46 = vadd.f32 %v2959_v35, %v2931_v3  ;;  %v2966_v58 = vpop.f32.mrf.mxu2  ;;  %3176 = vperm.xlu1 %3724, %v3150_v34  }
 0x1fb   : > { %3553 = vmatmul.msk.bf16.gmra.mxu3 %vm2837_vm10, %v5021_v53  ;;  %v2965_v18 = vadd.f32 %v2964_v28, %v2936_v60  ;;  %v2926_v13 = vadd.f32 %v5334_v19, %v2897_v1  ;;  %v3124_v28 = vmax.f32 %v2991_v16, 0.0 }
 0x1fc   : > { %v2921_v51 = vadd.f32 %v5310_v50, %v2892_v44  ;;  %v2989_v19 = vadd.f32 %v2988_v4, %v2960_v46 }
 0x1fd   : > { %v2994_v5 = vadd.f32 %v2993_v55, %v2965_v18  ;;  %v2955_v40 = vadd.f32 %v5329_v23, %v2926_v13  ;;  %v2986_v23 = vadd.f32 %v5338_v48, %v2957_v62 }
 0x1fe   : > { %v2950_v43 = vadd.f32 %v5300_v36, %v2921_v51  ;;  %v2995_v36 = vpop.f32.mrf.mxu3 }
 0x1ff   : > { %v3120_v0 = vmax.f32 %v2986_v23, 0.0 }
 0x200   : > { %v2937_v45 = vpop.f32.mrf.mxu1  ;;  %v5384_v53 = vpop.permute.xlu1 %2728  ;;  %v2979_v35 = vadd.f32 %v5306_v7, %v2950_v43  ;;  %v3126_v7 = vmax.f32 %v2994_v5, 0.0 }
 0x201   : > { %v2938_v50 = vadd.f32 %v2937_v45, %v2909_v54  ;;  %v2894_v12 = vadd.f32 %v5314_v29, %v5384_v53  ;;  %v3153_v29 = vld [vmem:[%s5533_s4 + $0x38] sm:$0xff] }
 0x202   : > { %3011 = vmatmul.bf16.gmra.mxu0 %v5025_v30  ;;  %3191 = vperm.xlu0 %3723, %v3153_v29   ;;  %v3122_v30 = vmax.f32 %v2989_v19, 0.0  ;;  %v3114_v52 = vmax.f32 %v2979_v35, 0.0 }
 0x203   : > { %3040 = vmatmul.bf16.gmra.mxu1 %v5079_v41  ;;  %v2967_v15 = vadd.f32 %v2966_v58, %v2938_v50  ;;  %v2923_v37 = vadd.f32 %v5321_v49, %v2894_v12  ;;  %v2984_v41 = vadd.f32 %v5332_v11, %v2955_v40  ;;  %v3149_v49 = vld [vmem:[%s5533_s4 + $0x18] sm:$0xff] }
 0x204   : > { %3171 = vperm.xlu1 %3724, %v3149_v49  }
 0x205   : > { %v2996_v8 = vadd.f32 %v2995_v36, %v2967_v15  ;;  %v2952_v25 = vadd.f32 %v5308_v61, %v2923_v37  ;;  %v3142_v61 = vpack.c.bf16 %v3124_v28, %v3122_v30  ;;  %v3118_v11 = vmax.f32 %v2984_v41, 0.0 }
 0x207   : > { %v3128_v4 = vmax.f32 %v2996_v8, 0.0  ;;  %v2981_v48 = vadd.f32 %v5317_v33, %v2952_v25  ;;  %v3140_v55 = vpack.c.bf16 %v3120_v0, %v3118_v11  ;;  %v3152_v33 = vld [vmem:[%s5533_s4 + $0x30] sm:$0xff] }
 0x208   : > { %3186 = vperm.xlu2 %3722, %v3152_v33  }
 0x209   : > { %v3144_v22 = vpack.c.bf16 %v3128_v4, %v3126_v7  ;;  %v3116_v60 = vmax.f32 %v2981_v48, 0.0 }
 0x20a   : > { %3074 = vmatmul.bf16.gmra.mxu2 %v5091_v24  ;;  %3166 = vperm.xlu0 %3723, %v3148_v59   ;;  %v3310_v24 = vld [vmem:[%s5535_s6] sm:$0x7] }
 0x20b   : > { %3554 = vmatmul.msk.bf16.gmra.mxu3 %vm2837_vm10, %v5126_v10  ;;  %3645 = vmatpush.bf16.msra.mxu2 %v3144_v22  ;;  %v3147_v10 = vld [vmem:[%s5533_s4 + $0x8] sm:$0xff]  ;;  %v3138_v3 = vpack.c.bf16 %v3116_v60, %v3114_v52 }
 0x20c   : > { %3231 = vmatpush.bf16.msra.mxu0 %v3144_v22  ;;  %3313 = vperm.xlu1 %3724, %v3310_v24  }
 0x20f   : > { %3646 = vmatpush.bf16.msra.mxu2 %v3142_v61 }
 0x210   : > { %3232 = vmatpush.bf16.msra.mxu0 %v3142_v61 }
 0x212   : > { %3016 = vmatmul.bf16.gmra.mxu0 %v5131_v31  ;;  %3161 = vperm.xlu0 %3723, %v3147_v10   ;;  %v3151_v31 = vld [vmem:[%s5533_s4 + $0x28] sm:$0xff] }
 0x213   : > { %3045 = vmatmul.bf16.gmra.mxu1 %v5173_v6  ;;  %3647 = vmatpush.bf16.msra.mxu2 %v3140_v55  ;;  %v3146_v6 = vld [vmem:[%s5533_s4] sm:$0xff] }
 0x214   : > { %3233 = vmatpush.bf16.msra.mxu0 %v3140_v55  ;;  %3181 = vperm.xlu2 %3722, %v3151_v31  }
 0x217   : > { %3648 = vmatpush.bf16.msra.mxu2 %v3138_v3 }
 0x218   : > { %3234 = vmatpush.bf16.msra.mxu0 %v3138_v3 }
 0x21a   : > { %3079 = vmatmul.bf16.gmra.mxu2 %v5182_v20  ;;  %v5438_v20 = vld [vmem:[%s5532_s3 + $0x18] sm:$0xff] }
 0x21b   : > { %3555 = vmatmul.msk.bf16.gmra.mxu3 %vm2837_vm10, %v5206_v38  ;;  %v5445_v38 = vld [vmem:[%s5532_s3] sm:$0xff] }
 0x21c   : > { %3156 = vperm.xlu2 %3722, %v3146_v6  }
 0x222   : > { %3021 = vmatmul.bf16.gmra.mxu0 %v5209_v57  ;;  %v5452_v57 = vld [vmem:[%s5532_s3 + $0x8] sm:$0xff] }
 0x223   : > { %3050 = vmatmul.bf16.gmra.mxu1 %v5234_v27  ;;  %v5459_v27 = vld [vmem:[%s5532_s3 + $0x10] sm:$0xff] }
 0x22a   : > { %3575 = vmatmul.msk.bf16.vlgmr.msra.gmra.mxu2 %vm3214_vm0, %v5438_v20 }
 0x232   : > { %3572 = vmatmul.msk.bf16.vlgmr.msra.gmra.mxu0 %vm3214_vm0, %v5445_v38 }
 0x242   : > { %3573 = vmatmul.msk.bf16.gmra.mxu0 %vm3214_vm0, %v5452_v57 }
 0x252   : > { %3574 = vmatmul.msk.bf16.gmra.mxu0 %vm3214_vm0, %v5459_v27 }
 0x26d   : > { %v3065_v63 = vpop.f32.mrf.mxu2 }
 0x26e   : > { %v3094_v56 = vpop.f32.mrf.mxu3 }
 0x26f   : > { %v3007_v44 = vpop.f32.mrf.mxu0 }
 0x270   : > { %v3008_v1 = vadd.f32 %v3007_v44, %v5370_v42  ;;  %v3036_v14 = vpop.f32.mrf.mxu1 }
 0x272   : > { %v3037_v51 = vadd.f32 %v3036_v14, %v3008_v1 }
 0x274   : > { %v3066_v18 = vadd.f32 %v3065_v63, %v3037_v51 }
 0x275   : > { %v3067_v54 = vpop.f32.mrf.mxu2 }
 0x276   : > { %v3095_v46 = vadd.f32 %v3094_v56, %v3066_v18  ;;  %v3096_v2 = vpop.f32.mrf.mxu3 }
 0x277   : > { %v3009_v43 = vpop.f32.mrf.mxu0 }
 0x278   : > { %v3010_v13 = vadd.f32 %v3009_v43, %v5384_v53  ;;  %v3038_v58 = vpop.f32.mrf.mxu1  ;;  %v3115_v35 = vmax.f32 %v3095_v46, 0.0 }
 0x27a   : > { %v3039_v21 = vadd.f32 %v3038_v58, %v3010_v13  ;;  %v5473_v58 = vpop.permute.xlu2 %3186 }
 0x27c   : > { %v3068_v45 = vadd.f32 %v3067_v54, %v3039_v21 }
 0x27d   : > { %v3070_v34 = vpop.f32.mrf.mxu2 }
 0x27e   : > { %v3097_v5 = vadd.f32 %v3096_v2, %v3068_v45  ;;  %v3099_v50 = vpop.f32.mrf.mxu3 }
 0x27f   : > { %v3012_v12 = vpop.f32.mrf.mxu0 }
 0x280   : > { %v3117_v36 = vmax.f32 %v3097_v5, 0.0  ;;  %v3041_v19 = vpop.f32.mrf.mxu1  ;;  %v3013_v60 = vadd.f32 %v3012_v12, %v5368_v39  ;;  %v5476_v12 = vpop.permute.xlu0 %3191 }
 0x282   : > { %v5465_v42 = vpack.c.bf16 %v3117_v36, %v3115_v35 }
 0x285   : > { %v3072_v16 = vpop.f32.mrf.mxu2 }
 0x286   : > { %v3101_v40 = vpop.f32.mrf.mxu3 }
 0x287   : > { %v3014_v15 = vpop.f32.mrf.mxu0 }
 0x288   : > { %v3043_v62 = vpop.f32.mrf.mxu1  ;;  %v3015_v48 = vadd.f32 %v3014_v15, %v5366_v9 }
 0x28d   : > { %v3075_v37 = vpop.f32.mrf.mxu2 }
 0x28e   : > { %v3104_v29 = vpop.f32.mrf.mxu3 }
 0x28f   : > { %v3017_v7 = vpop.f32.mrf.mxu0 }
 0x290   : > { %v3046_v53 = vpop.f32.mrf.mxu1  ;;  %v3018_v61 = vadd.f32 %v3017_v7, %v5357_v26 }
 0x292   : > { %v3047_v24 = vadd.f32 %v3046_v53, %v3018_v61  ;;  %v3177_v53 = vpop.permute.xlu1 %3176 }
 0x294   : > { %v3076_v63 = vadd.f32 %v3075_v37, %v3047_v24 }
 0x295   : > { %v3077_v8 = vpop.f32.mrf.mxu2 }
 0x296   : > { %v3106_v4 = vpop.f32.mrf.mxu3  ;;  %v3105_v39 = vadd.f32 %v3104_v29, %v3076_v63 }
 0x297   : > { %v3019_v30 = vpop.f32.mrf.mxu0 }
 0x298   : > { %v3048_v28 = vpop.f32.mrf.mxu1  ;;  %v3020_v22 = vadd.f32 %v3019_v30, %v5355_v17  ;;  %v3042_v17 = vadd.f32 %v3041_v19, %v3013_v60  ;;  %v3123_v45 = vmax.f32 %v3105_v39, 0.0  ;;  %v3167_v30 = vpop.permute.xlu0 %3166 }
 0x29a   : > { %v3049_v55 = vadd.f32 %v3048_v28, %v3020_v22  ;;  %v3071_v54 = vadd.f32 %v3070_v34, %v3042_v17  ;;  %v3182_v28 = vpop.permute.xlu2 %3181 }
 0x29c   : > { %v3078_v31 = vadd.f32 %v3077_v8, %v3049_v55  ;;  %v3100_v21 = vadd.f32 %v3099_v50, %v3071_v54 }
 0x29d   : > { %v3080_v25 = vpop.f32.mrf.mxu2 }
 0x29e   : > { %v3109_v59 = vpop.f32.mrf.mxu3  ;;  %v3107_v9 = vadd.f32 %v3106_v4, %v3078_v31  ;;  %v3119_v15 = vmax.f32 %v3100_v21, 0.0 }
 0x29f   : > { %v3022_v41 = vpop.f32.mrf.mxu0 }
 0x2a0   : > { %v3023_v23 = vadd.f32 %v3022_v41, %v5345_v32  ;;  %v3051_v49 = vpop.f32.mrf.mxu1  ;;  %v3044_v32 = vadd.f32 %v3043_v62, %v3015_v48 }
 0x2a2   : > { %v3052_v11 = vadd.f32 %v3051_v49, %v3023_v23  ;;  %v3073_v14 = vadd.f32 %v3072_v16, %v3044_v32 }
 0x2a4   : > { %v3081_v10 = vadd.f32 %v3080_v25, %v3052_v11  ;;  %v3102_v43 = vadd.f32 %v3101_v40, %v3073_v14  ;;  %v3172_v25 = vpop.permute.xlu1 %3171 }
 0x2a5   : > { %v3082_v0 = vpop.f32.mrf.mxu2 }
 0x2a6   : > { %v3110_v56 = vadd.f32 %v3109_v59, %v3081_v10  ;;  %v3111_v44 = vpop.f32.mrf.mxu3  ;;  %v3121_v36 = vmax.f32 %v3102_v43, 0.0  ;;  %v3301_v10 = vld [vmem:[%s5534_s5] sm:$0x3] }
 0x2a7   : > { %v3024_v52 = vpop.f32.mrf.mxu0 }
 0x2a8   : > { %v3025_v33 = vadd.f32 %v3024_v52, %v5359_v47  ;;  %v3053_v3 = vpop.f32.mrf.mxu1  ;;  %v3127_v46 = vmax.f32 %v3110_v56, 0.0  ;;  %v3125_v47 = vmax.f32 %v3107_v9, 0.0  ;;  %v3141_v50 = vpack.c.bf16 %v3121_v36, %v3119_v15 }
 0x2aa   : > { %v3054_v6 = vadd.f32 %v3053_v3, %v3025_v33  ;;  %v3143_v19 = vpack.c.bf16 %v3125_v47, %v3123_v45  ;;  %v3345_v3 = vld [vmem:[%s381_s25] sm:$0x77] }
 0x2ab   : > { %3347 = vst [vmem:[#allocation1] ss:$2 sm:$0xff] %v3345_v3 }
 0x2ac   : > { %v3083_v26 = vadd.f32 %v3082_v0, %v3054_v6  ;;  %v3157_v0 = vpop.permute.xlu2 %3156 }
 0x2ad   : > { %v3251_v1 = vpop.f32.mrf.mxu2 }
 0x2ae   : > { %v3112_v51 = vadd.f32 %v3111_v44, %v3083_v26  ;;  %v3252_v5 = vadd.f32 %v3251_v1, %v5473_v58 }
 0x2af   : > { %v3236_v18 = vpop.f32.mrf.mxu0 }
 0x2b0   : > { %v3129_v2 = vmax.f32 %v3112_v51, 0.0  ;;  %v3297_v40 = vmax.f32 %v3252_v5, 0.0  ;;  %v3237_v48 = vadd.f32 %v3236_v18, %v3157_v0 }
 0x2b2   : > { %v3145_v13 = vpack.c.bf16 %v3129_v2, %v3127_v46  ;;  %v3285_v60 = vmax.f32 %v3237_v48, 0.0  ;;  %v3349_v15 = vld.sshfl [vmem:[#allocation1 + $0x8] sm:$0xff pattern:$0x75316420] }
 0x2b4   : > { %3260 = vmatpush.bf16.msra.mxu1 %v3145_v13  ;;  %3649 = vmatpush.bf16.msra.mxu3 %v3145_v13 }
 0x2b5   : > { %v3253_v35 = vpop.f32.mrf.mxu2 }
 0x2b6   : > { %v3254_v34 = vadd.f32 %v3253_v35, %v5476_v12 }
 0x2b7   : > { %v3238_v16 = vpop.f32.mrf.mxu0 }
 0x2b8   : > { %v3299_v62 = vmax.f32 %v3254_v34, 0.0  ;;  %3261 = vmatpush.bf16.msra.mxu1 %v3143_v19  ;;  %3650 = vmatpush.bf16.msra.mxu3 %v3143_v19  ;;  %v3314_v19 = vpop.permute.xlu1 %3313 }
 0x2ba   : > { %v3308_v37 = vpack.c.bf16 %v3299_v62, %v3297_v40 }
 0x2bc   : > { %3262 = vmatpush.bf16.msra.mxu1 %v3141_v50  ;;  %3651 = vmatpush.bf16.msra.mxu3 %v3141_v50 }
 0x2bd   : > { %3323 = vmatpush.bf16.msrb.mxu2 %v3308_v37  ;;  %v3348_v37 = vld.sshfl [vmem:[#allocation1] sm:$0xff pattern:$0x75316420] }
 0x2bf   : > { %v3241_v29 = vpop.f32.mrf.mxu0 }
 0x2c0   : > { %3263 = vmatpush.bf16.msra.mxu1 %v5465_v42  ;;  %3652 = vmatpush.bf16.msra.mxu3 %v5465_v42  ;;  %v3242_v42 = vadd.f32 %v3241_v29, %v3167_v30 }
 0x2c2   : > { %v3289_v55 = vmax.f32 %v3242_v42, 0.0 }
 0x2c3   : > { %3576 = vmatmul.msk.bf16.vlgmr.msra.gmra.mxu1 %vm3214_vm0, %v5445_v38  ;;  %3579 = vmatmul.msk.bf16.vlgmr.msra.gmra.mxu3 %vm3214_vm0, %v5438_v20  ;;  %v3162_v38 = vpop.permute.xlu0 %3161 }
 0x2c4   : > { %v3239_v61 = vadd.f32 %v3238_v16, %v3162_v38 }
 0x2c6   : > { %v3287_v52 = vmax.f32 %v3239_v61, 0.0 }
 0x2c7   : > { %v3243_v7 = vpop.f32.mrf.mxu0 }
 0x2c8   : > { %v3244_v23 = vadd.f32 %v3243_v7, %v3172_v25  ;;  %v3302_v24 = vpack.c.bf16 %v3287_v52, %v3285_v60 }
 0x2ca   : > { %v3291_v20 = vmax.f32 %v3244_v23, 0.0 }
 0x2cf   : > { %v3246_v8 = vpop.f32.mrf.mxu0 }
 0x2d0   : > { %v3247_v4 = vadd.f32 %v3246_v8, %v3177_v53 }
 0x2d2   : > { %v3293_v22 = vmax.f32 %v3247_v4, 0.0 }
 0x2d3   : > { %3577 = vmatmul.msk.bf16.gmra.mxu1 %vm3214_vm0, %v5452_v57  ;;  %v3304_v57 = vpack.c.bf16 %v3291_v20, %v3289_v55 }
 0x2d7   : > { %v3248_v41 = vpop.f32.mrf.mxu0 }
 0x2d8   : > { %v3249_v49 = vadd.f32 %v3248_v41, %v3182_v28 }
 0x2da   : > { %v3295_v59 = vmax.f32 %v3249_v49, 0.0 }
 0x2dc   : > { %v3306_v11 = vpack.c.bf16 %v3295_v59, %v3293_v22 }
 0x2de   : > { %3324 = vmatpush.bf16.msrb.mxu2 %v3306_v11 }
 0x2e2   : > { %3325 = vmatpush.bf16.msrb.mxu2 %v3304_v57 }
 0x2e3   : > { %3578 = vmatmul.msk.bf16.gmra.mxu1 %vm3214_vm0, %v5459_v27 }
 0x2e6   : > { %3326 = vmatpush.bf16.msrb.mxu2 %v3302_v24 }
 0x2e9   : > { %3580 = vmatmul.msk.bf16.vlgmr.msrb.gmra.mxu2 %vm3214_vm0, %v3301_v10 }
 0x340   : > { %v3265_v33 = vpop.f32.mrf.mxu1 }
 0x341   : > { %v3266_v21 = vadd.f32 %v3265_v33, %v3157_v0 }
 0x343   : > { %v3286_v35 = vmax.f32 %v3266_v21, 0.0 }
 0x346   : > { %v3280_v27 = vpop.f32.mrf.mxu3 }
 0x347   : > { %v3281_v31 = vadd.f32 %v3280_v27, %v5473_v58 }
 0x348   : > { %v3267_v32 = vpop.f32.mrf.mxu1 }
 0x349   : > { %v3298_v56 = vmax.f32 %v3281_v31, 0.0  ;;  %v3268_v47 = vadd.f32 %v3267_v32, %v3162_v38 }
 0x34b   : > { %v3288_v5 = vmax.f32 %v3268_v47, 0.0 }
 0x34d   : > { %v3303_v34 = vpack.c.bf16 %v3288_v5, %v3286_v35 }
 0x34e   : > { %v3282_v6 = vpop.f32.mrf.mxu3 }
 0x34f   : > { %v3283_v17 = vadd.f32 %v3282_v6, %v5476_v12 }
 0x350   : > { %v3270_v63 = vpop.f32.mrf.mxu1 }
 0x351   : > { %v3300_v26 = vmax.f32 %v3283_v17, 0.0  ;;  %v3271_v39 = vadd.f32 %v3270_v63, %v3167_v30 }
 0x353   : > { %v3309_v44 = vpack.c.bf16 %v3300_v26, %v3298_v56  ;;  %v3290_v45 = vmax.f32 %v3271_v39, 0.0 }
 0x355   : > { %3336 = vmatpush.bf16.msrb.mxu3 %v3309_v44 }
 0x358   : > { %v3272_v1 = vpop.f32.mrf.mxu1 }
 0x359   : > { %v3273_v18 = vadd.f32 %v3272_v1, %v3172_v25 }
 0x35b   : > { %v3292_v13 = vmax.f32 %v3273_v18, 0.0 }
 0x35d   : > { %v3305_v12 = vpack.c.bf16 %v3292_v13, %v3290_v45 }
 0x360   : > { %v3275_v14 = vpop.f32.mrf.mxu1 }
 0x361   : > { %v3276_v9 = vadd.f32 %v3275_v14, %v3177_v53 }
 0x363   : > { %v3294_v46 = vmax.f32 %v3276_v9, 0.0 }
 0x368   : > { %v3277_v51 = vpop.f32.mrf.mxu1 }
 0x369   : > { %v3278_v54 = vadd.f32 %v3277_v51, %v3182_v28 }
 0x36b   : > { %v3296_v2 = vmax.f32 %v3278_v54, 0.0 }
 0x36c   : > { %v3328_v43 = vpop.f32.mrf.mxu2 }
 0x36d   : > { %v3307_v58 = vpack.c.bf16 %v3296_v2, %v3294_v46  ;;  %v3329_v40 = vadd.f32 %v3328_v43, %v3314_v19 }
 0x36f   : > { %3337 = vmatpush.bf16.msrb.mxu3 %v3307_v58  ;;  %v3352_v29 = vadd.f32 %v3348_v37, %v3329_v40 }
 0x373   : > { %3338 = vmatpush.bf16.msrb.mxu3 %v3305_v12 }
 0x374   : > { %v3330_v36 = vpop.f32.mrf.mxu2 }
 0x377   : > { %3339 = vmatpush.bf16.msrb.mxu3 %v3303_v34 }
 0x37a   : > { %3581 = vmatmul.msk.bf16.vlgmr.msrb.gmra.mxu3 %vm3214_vm0, %v3301_v10 }
 0x3fd   : > { %v3341_v16 = vpop.f32.mrf.mxu3 }
 0x3fe   : > { %v3342_v62 = vadd.f32 %v3341_v16, %v3314_v19 }
 0x400   : > { %v3353_v50 = vadd.f32 %v3349_v15, %v3342_v62 }
 0x402   : > { %v3356_v7 = vrot.slane %v3353_v50, 4 }
 0x404   : > { %v3358_v53 = vsel %vm3357_vm1, %v3352_v29, %v3356_v7 }
 0x405   : > { %3360 = vst [vmem:[%s391_s20] sm:$0x77] %v3358_v53  ;;  %v3343_v8 = vpop.f32.mrf.mxu3 }
 0x406 PF: > { %s21_s10 = sadd.s32 1, %s3811_s10   ;;  %s5545_s27 = smov %s3795_s28 }
 0x407   : > { %p18_p0 = scmp.ge.s32.totalorder %s21_s10, 4   ;;  %s5546_s28 = smov %s3799_s29 }
 0x408   : > { %s5547_s29 = smov %s3914_s16  ;;  %s5548_s30 = smov %s3807_s9 }
 0x409   : > { %s5549_s9 = smov %s5551_s12  ;;  %20 = sbr.rel (!%p18_p0) target bundleno = 4 (0x4), region = 95 }
 0x40e   :  { %3391 = vsyncpa [#allocation3], 1 }
 0x40f   :  { %3393 = vsyncpa [#allocation3 + $0x1], 1 }

</bundles_post_ra>
